<compile_context>
chip_gen: v6e
topology: v6e:2x2x1
jax: 0.10.0
libtpu: 0.0.40
codegen_flags: <defaults>
</compile_context>

<pallas_src>
import numpy as np
import jax
import jax.numpy as jnp
from jax import lax
from jax.experimental import pallas as pl
from jax.experimental.pallas import tpu as pltpu

# Fixed dims from the PyTorch module
L = 13        # number of transformer layers stacked in x's last dim
D_IN = 768    # inputs_dim
D_CMP = 128   # compression_dim
N_HEAD = 8    # head_nb
D_OUT = 256   # outputs_dim
D_IMG = 512   # image embedding dim


def _l2norm(a):
    # torch.nn.functional.normalize (p=2, eps=1e-12) along last dim
    n = jnp.sqrt(jnp.sum(a * a, axis=-1, keepdims=True))
    return a / jnp.maximum(n, 1e-12)


def mhfa_kernel(dbatt_ref,                    # SMEM (1,): batt[1] - batt[0]
                kvq_ref,                      # VMEM (3, Bblk, T, D_IN) bf16: layer-weighted k/v/quality
                img_ref,                      # VMEM (Bblk, T, D_IMG)   bf16: upsampled image embeddings
                wv_ref, bv_ref,               # (D_IN, D_CMP), (1, D_CMP)
                wka_t_ref, bka_ref,           # (N_HEAD, D_IN), (1, N_HEAD): folded cmp_linear_k @ att_head
                dwq_ref, dwi_ref,             # (1, D_IN), (1, D_IMG): attention_layer column difference
                wimg_ref, bimg_ref,           # (D_IMG, D_IMG), (1, D_IMG)
                wpool_r_ref, bpool_ref,       # (N_HEAD, D_CMP, D_OUT), (1, D_OUT)
                waud_ref, baud_ref,           # (D_OUT, D_IMG), (1, D_IMG)
                wlast_ref, blast_ref,         # (D_IMG, D_IMG), (1, D_IMG)
                out_ref):                     # (Bblk, 1, D_IMG)
    _, bblk, t, _ = kvq_ref.shape
    m = bblk * t
    f32 = jnp.float32

    # Upcast the bf16 activations once; all math below is f32.
    k = kvq_ref[0].astype(f32).reshape(m, D_IN)
    v = kvq_ref[1].astype(f32).reshape(m, D_IN)
    q = kvq_ref[2].astype(f32).reshape(m, D_IN)
    img = img_ref[...].astype(f32).reshape(m, D_IMG)

    # compression linear for v; folded (cmp_linear_k -> att_head) for k
    v_c = jnp.dot(v, wv_ref[...], preferred_element_type=f32) + bv_ref[0]          # (m, D_CMP)
    att_k = lax.dot_general(k, wka_t_ref[...],
                            dimension_numbers=(((1,), (1,)), ((), ())),
                            preferred_element_type=f32) + bka_ref[0]               # (m, N_HEAD)

    # 2-way quality/image attention: softmax over width 2 == sigmoid of logit diff
    q_n = _l2norm(q)
    img_n = _l2norm(img)
    logit = (jnp.sum(q_n * dwq_ref[0], axis=-1, keepdims=True)
             + jnp.sum(img_n * dwi_ref[0], axis=-1, keepdims=True)
             + dbatt_ref[0])                                                       # (m, 1)
    p_img = 1.0 / (1.0 + jnp.exp(-logit))        # attentions[..., 1]
    p_aud = 1.0 - p_img                          # attentions[..., 0]

    v_w = v_c * p_aud                                                              # (m, D_CMP)

    img_t = (jnp.dot(img_n, wimg_ref[...], preferred_element_type=f32)
             + bimg_ref[0]) * p_img                                                # (m, D_IMG)
    mean_img = jnp.mean(img_t.reshape(bblk, t, D_IMG), axis=1)                     # (Bblk, D_IMG)

    # multi-head attentive pooling over time (softmax over T, per batch / head)
    att = att_k.reshape(bblk, t, N_HEAD)
    att = att - jnp.max(att, axis=1, keepdims=True)
    e = jnp.exp(att)
    att_soft = e / jnp.sum(e, axis=1, keepdims=True)                               # (Bblk, T, H)

    v_w_b = v_w.reshape(bblk, t, D_CMP)
    # pooled[b, h, f] = sum_t att_soft[b, t, h] * v_w_b[b, t, f]
    pooled = lax.dot_general(att_soft, v_w_b,
                             dimension_numbers=(((1,), (1,)), ((0,), (0,))),
                             preferred_element_type=f32)                           # (Bblk, H, D_CMP)

    # pooling_fc applied per head: wpool reshaped to (H, D_CMP, D_OUT), no (8,128)->(1,1024) relayout
    outs = jnp.zeros((bblk, D_OUT), f32) + bpool_ref[0]
    for h in range(N_HEAD):
        outs = outs + jnp.dot(pooled[:, h, :], wpool_r_ref[h],
                              preferred_element_type=f32)                          # (Bblk, D_OUT)
    outs = _l2norm(outs)
    outs = jnp.dot(outs, waud_ref[...], preferred_element_type=f32) + baud_ref[0]  # (Bblk, D_IMG)

    mean_img_n = _l2norm(mean_img)
    last_img = jnp.dot(mean_img_n, wlast_ref[...], preferred_element_type=f32) + blast_ref[0]

    out_ref[...] = (outs + last_img)[:, None, :].astype(out_ref.dtype)


def _choose_block_b(B, T):
    """Largest batch-block (divisor of B) s.t. block_b*T ~ fills MXU rows and fits a VMEM budget."""
    target_rows = 256                                   # MXU M-rows on v6e/v7x
    per_b_bytes = (3 * D_IN + D_IMG) * T * 2 * 2        # bf16 activations, double-buffered
    budget = 8 * (1 << 20)
    best = 1
    for bb in range(1, B + 1):
        if B % bb != 0:
            continue
        if bb > 1 and bb * per_b_bytes > budget:
            break
        best = bb
        if bb * T >= target_rows:
            break
    return best


def mhfa_fusion_forward(params, x, image_embeddings, *, input_dtype=jnp.bfloat16):
    """x: (B, 768, T, 13) float32, image_embeddings: (B, N_img, 512) float32."""
    B, Din, T, Lx = x.shape
    assert Din == D_IN and Lx == L
    f32 = jnp.float32

    # --- XLA-side glue: fuse layer softmax weighting + transpose into one einsum ---
    lw = jnp.stack([jax.nn.softmax(params['weights_k']),
                    jax.nn.softmax(params['weights_v']),
                    jax.nn.softmax(params['weights_quality'])], axis=0)            # (3, L)
    kvq = jnp.einsum('bdtl,wl->wbtd', x.astype(f32), lw).astype(input_dtype)        # (3, B, T, D_IN)

    # Upsample image embeddings to T frames.
    # TODO(synk): torch's upsample() assigns remainder frames via torch.randperm
    # (nondeterministic); only the exact-multiple block-repeat case is implemented.
    n_img = image_embeddings.shape[1]
    assert T % n_img == 0, "deterministic upsample requires T % n_img == 0"
    img_up = jnp.repeat(image_embeddings.astype(f32), T // n_img,
                        axis=1).astype(input_dtype)                                 # (B, T, D_IMG)

    # --- folded / reshaped weights (small, stay resident in VMEM) ---
    wka_t = (params['wk'] @ params['wa']).T.astype(f32)                             # (8, 768)
    bka = (params['bk'] @ params['wa'] + params['ba'])[None, :].astype(f32)         # (1, 8)
    dwq = (params['watt'][:D_IN, 1] - params['watt'][:D_IN, 0])[None, :].astype(f32)   # (1, 768)
    dwi = (params['watt'][D_IN:, 1] - params['watt'][D_IN:, 0])[None, :].astype(f32)   # (1, 512)
    dbatt = (params['batt'][1] - params['batt'][0]).reshape(1).astype(f32)          # (1,) SMEM scalar
    wpool_r = params['wpool'].reshape(N_HEAD, D_CMP, D_OUT).astype(f32)             # (8, 128, 256)

    weight_args = [params['wv'], params['bv'][None, :],
                   wka_t, bka,
                   dwq, dwi,
                   params['wimg'], params['bimg'][None, :],
                   wpool_r, params['bpool'][None, :],
                   params['waud'], params['baud'][None, :],
                   params['wlast'], params['blast'][None, :]]

    block_b = _choose_block_b(B, T)
    grid = (B // block_b,)
    m = block_b * T

    def full_spec(shape):
        return pl.BlockSpec(shape, lambda b, _n=len(shape): (0,) * _n)

    in_specs = ([pl.BlockSpec(memory_space=pltpu.MemorySpace.SMEM),                 # dbatt scalar
                 pl.BlockSpec((3, block_b, T, D_IN), lambda b: (0, b, 0, 0)),       # kvq activations
                 pl.BlockSpec((block_b, T, D_IMG), lambda b: (b, 0, 0))]            # upsampled images
                + [full_spec(np.shape(w)) for w in weight_args])                    # resident weights

    # VMEM budget: double-buffered bf16 activation blocks + generous f32 working
    # set + resident weights (~4 MiB incl. lane padding, x2 buffers) + slack.
    act_bytes = 2 * 2 * m * (3 * D_IN + D_IMG)
    interm_bytes = 12 * m * D_IN * 4
    vmem_limit = int(min(max(act_bytes + interm_bytes + 12 * (1 << 20),
                             16 * (1 << 20)),
                         48 * (1 << 20)))

    out = pl.pallas_call(
        mhfa_kernel,
        grid=grid,
        in_specs=in_specs,
        out_specs=pl.BlockSpec((block_b, 1, D_IMG), lambda b: (b, 0, 0)),
        out_shape=jax.ShapeDtypeStruct((B, 1, D_IMG), jnp.float32),
        compiler_params=pltpu.CompilerParams(
            dimension_semantics=("parallel",),     # batch blocks independent -> v7x dual-TC sharding
            vmem_limit_bytes=vmem_limit),
    )(dbatt, kvq, img_up, *weight_args)
    return out[:, 0, :]


# ----------------------- pure-JAX reference (for checking) -----------------------
def mhfa_fusion_reference(params, x, image_embeddings):
    sm = jax.nn.softmax
    wk, wv, wq = sm(params['weights_k']), sm(params['weights_v']), sm(params['weights_quality'])
    k = jnp.sum(x * wk, axis=-1).transpose(0, 2, 1)          # (B, T, 768)
    v = jnp.sum(x * wv, axis=-1).transpose(0, 2, 1)
    quality = jnp.sum(x * wq, axis=-1).transpose(0, 2, 1)
    k = k @ params['wk'] + params['bk']
    v = v @ params['wv'] + params['bv']
    att_k = k @ params['wa'] + params['ba']
    T = k.shape[1]
    n_img = image_embeddings.shape[1]
    img = jnp.repeat(image_embeddings, T // n_img, axis=1)
    quality = _l2norm(quality)
    img = _l2norm(img)
    embs = jnp.concatenate([quality, img], axis=2)
    attn = sm(embs @ params['watt'] + params['batt'], axis=2)
    v = v * attn[:, :, 0:1]
    img = img @ params['wimg'] + params['bimg']
    img = img * attn[:, :, 1:2]
    mean_img = jnp.mean(img, axis=1)
    pooled = jnp.sum(v[:, :, None, :] * sm(att_k, axis=1)[:, :, :, None], axis=1)  # (B, 8, 128)
    pooled = pooled.reshape(pooled.shape[0], -1)
    outs = pooled @ params['wpool'] + params['bpool']
    outs = _l2norm(outs)
    outs = outs @ params['waud'] + params['baud']
    mean_img = _l2norm(mean_img)
    mean_img = mean_img @ params['wlast'] + params['blast']
    return outs + mean_img


def make_params(key):
    def lin(k, fan_in, fan_out):
        kw, kb = jax.random.split(k)
        bound = 1.0 / (fan_in ** 0.5)
        w = jax.random.uniform(kw, (fan_in, fan_out), jnp.float32, -bound, bound)
        b = jax.random.uniform(kb, (fan_out,), jnp.float32, -bound, bound)
        return w, b

    ks = jax.random.split(key, 8)
    p = {
        'weights_k': jnp.ones((L,), jnp.float32),
        'weights_v': jnp.ones((L,), jnp.float32),
        'weights_quality': jnp.ones((L,), jnp.float32),
    }
    p['wk'], p['bk'] = lin(ks[0], D_IN, D_CMP)
    p['wv'], p['bv'] = lin(ks[1], D_IN, D_CMP)
    p['wa'], p['ba'] = lin(ks[2], D_CMP, N_HEAD)
    p['watt'], p['batt'] = lin(ks[3], D_IN + D_IMG, 2)
    p['wimg'], p['bimg'] = lin(ks[4], D_IMG, D_IMG)
    p['wpool'], p['bpool'] = lin(ks[5], N_HEAD * D_CMP, D_OUT)
    p['waud'], p['baud'] = lin(ks[6], D_OUT, D_IMG)
    p['wlast'], p['blast'] = lin(ks[7], D_IMG, D_IMG)
    return p


if __name__ == "__main__":
    key = jax.random.PRNGKey(0)
    kp, kx, ki = jax.random.split(key, 3)

    B, T, N_IMG = 2, 8, 4
    params = make_params(kp)
    x = jax.random.normal(kx, (B, D_IN, T, L), jnp.float32)                  # PyTorch layout (B, C, T, L)
    image_embeddings = jax.random.normal(ki, (B, N_IMG, D_IMG), jnp.float32)

    out = mhfa_fusion_forward(params, x, image_embeddings)
    out = jax.block_until_ready(out)

    ref = mhfa_fusion_reference(params, x, image_embeddings)
    # bf16 activation transport -> slightly relaxed absolute tolerance vs f32 reference
    np.testing.assert_allclose(np.asarray(out), np.asarray(ref), rtol=5e-2, atol=2e-2)

    print("KERNEL_OK")
</pallas_src>

<mosaic_0001>
module attributes {stable_mosaic.version = 11 : i64} {
  func.func @mhfa_kernel(%arg0: i32, %arg1: memref<1xf32, #tpu.memory_space<smem>>, %arg2: memref<3x2x8x768xbf16, #tpu.memory_space<vmem>>, %arg3: memref<2x8x512xbf16, #tpu.memory_space<vmem>>, %arg4: memref<768x128xf32, #tpu.memory_space<vmem>>, %arg5: memref<1x128xf32, #tpu.memory_space<vmem>>, %arg6: memref<8x768xf32, #tpu.memory_space<vmem>>, %arg7: memref<1x8xf32, #tpu.memory_space<vmem>>, %arg8: memref<1x768xf32, #tpu.memory_space<vmem>>, %arg9: memref<1x512xf32, #tpu.memory_space<vmem>>, %arg10: memref<512x512xf32, #tpu.memory_space<vmem>>, %arg11: memref<1x512xf32, #tpu.memory_space<vmem>>, %arg12: memref<8x128x256xf32, #tpu.memory_space<vmem>>, %arg13: memref<1x256xf32, #tpu.memory_space<vmem>>, %arg14: memref<256x512xf32, #tpu.memory_space<vmem>>, %arg15: memref<1x512xf32, #tpu.memory_space<vmem>>, %arg16: memref<512x512xf32, #tpu.memory_space<vmem>>, %arg17: memref<1x512xf32, #tpu.memory_space<vmem>>, %arg18: memref<2x1x512xf32, #tpu.memory_space<vmem>>) attributes {dimension_semantics = [#tpu.dimension_semantics<parallel>], iteration_bounds = array<i64: 1>, scalar_prefetch = 0 : i64, scratch_operands = 0 : i64, tpu.core_type = #tpu.core_type<tc>, window_params = [{transform_indices = @transform_0, window_bounds = array<i64: 1>}, {transform_indices = @transform_1, window_bounds = array<i64: 3, 2, 8, 768>}, {transform_indices = @transform_2, window_bounds = array<i64: 2, 8, 512>}, {pipeline_mode = #tpu.pipeline_mode<synchronous>, transform_indices = @transform_3, window_bounds = array<i64: 768, 128>}, {pipeline_mode = #tpu.pipeline_mode<synchronous>, transform_indices = @transform_4, window_bounds = array<i64: 1, 128>}, {pipeline_mode = #tpu.pipeline_mode<synchronous>, transform_indices = @transform_5, window_bounds = array<i64: 8, 768>}, {pipeline_mode = #tpu.pipeline_mode<synchronous>, transform_indices = @transform_6, window_bounds = array<i64: 1, 8>}, {pipeline_mode = #tpu.pipeline_mode<synchronous>, transform_indices = @transform_7, window_bounds = array<i64: 1, 768>}, {pipeline_mode = #tpu.pipeline_mode<synchronous>, transform_indices = @transform_8, window_bounds = array<i64: 1, 512>}, {pipeline_mode = #tpu.pipeline_mode<synchronous>, transform_indices = @transform_9, window_bounds = array<i64: 512, 512>}, {pipeline_mode = #tpu.pipeline_mode<synchronous>, transform_indices = @transform_10, window_bounds = array<i64: 1, 512>}, {pipeline_mode = #tpu.pipeline_mode<synchronous>, transform_indices = @transform_11, window_bounds = array<i64: 8, 128, 256>}, {pipeline_mode = #tpu.pipeline_mode<synchronous>, transform_indices = @transform_12, window_bounds = array<i64: 1, 256>}, {pipeline_mode = #tpu.pipeline_mode<synchronous>, transform_indices = @transform_13, window_bounds = array<i64: 256, 512>}, {pipeline_mode = #tpu.pipeline_mode<synchronous>, transform_indices = @transform_14, window_bounds = array<i64: 1, 512>}, {pipeline_mode = #tpu.pipeline_mode<synchronous>, transform_indices = @transform_15, window_bounds = array<i64: 512, 512>}, {pipeline_mode = #tpu.pipeline_mode<synchronous>, transform_indices = @transform_16, window_bounds = array<i64: 1, 512>}, {transform_indices = @transform_17, window_bounds = array<i64: 2, 1, 512>}]} {
    %c0 = arith.constant 0 : index
    %c0_0 = arith.constant 0 : index
    %c0_1 = arith.constant 0 : index
    %c0_2 = arith.constant 0 : index
    %0 = vector.load %arg2[%c0, %c0_0, %c0_1, %c0_2] : memref<3x2x8x768xbf16, #tpu.memory_space<vmem>>, vector<1x2x8x768xbf16>
    %1 = vector.shape_cast %0 : vector<1x2x8x768xbf16> to vector<2x8x768xbf16>
    %2 = arith.extf %1 : vector<2x8x768xbf16> to vector<2x8x768xf32>
    %3 = vector.shape_cast %2 : vector<2x8x768xf32> to vector<16x768xf32>
    %c1 = arith.constant 1 : index
    %c0_3 = arith.constant 0 : index
    %c0_4 = arith.constant 0 : index
    %c0_5 = arith.constant 0 : index
    %4 = vector.load %arg2[%c1, %c0_3, %c0_4, %c0_5] : memref<3x2x8x768xbf16, #tpu.memory_space<vmem>>, vector<1x2x8x768xbf16>
    %5 = vector.shape_cast %4 : vector<1x2x8x768xbf16> to vector<2x8x768xbf16>
    %6 = arith.extf %5 : vector<2x8x768xbf16> to vector<2x8x768xf32>
    %7 = vector.shape_cast %6 : vector<2x8x768xf32> to vector<16x768xf32>
    %c2 = arith.constant 2 : index
    %c0_6 = arith.constant 0 : index
    %c0_7 = arith.constant 0 : index
    %c0_8 = arith.constant 0 : index
    %8 = vector.load %arg2[%c2, %c0_6, %c0_7, %c0_8] : memref<3x2x8x768xbf16, #tpu.memory_space<vmem>>, vector<1x2x8x768xbf16>
    %9 = vector.shape_cast %8 : vector<1x2x8x768xbf16> to vector<2x8x768xbf16>
    %10 = arith.extf %9 : vector<2x8x768xbf16> to vector<2x8x768xf32>
    %11 = vector.shape_cast %10 : vector<2x8x768xf32> to vector<16x768xf32>
    %c0_9 = arith.constant 0 : index
    %c0_10 = arith.constant 0 : index
    %c0_11 = arith.constant 0 : index
    %12 = vector.load %arg3[%c0_9, %c0_10, %c0_11] : memref<2x8x512xbf16, #tpu.memory_space<vmem>>, vector<2x8x512xbf16>
    %13 = arith.extf %12 : vector<2x8x512xbf16> to vector<2x8x512xf32>
    %14 = vector.shape_cast %13 : vector<2x8x512xf32> to vector<16x512xf32>
    %c0_12 = arith.constant 0 : index
    %c0_13 = arith.constant 0 : index
    %15 = vector.load %arg4[%c0_12, %c0_13] : memref<768x128xf32, #tpu.memory_space<vmem>>, vector<768x128xf32>
    %cst = arith.constant dense<0.000000e+00> : vector<16x128xf32>
    %16 = tpu.matmul %7, %15, %cst {dimension_numbers = #tpu.dot_dimension_numbers<[1], [0], [0], [1], [0, 0, 1, 1], [], []>} : vector<16x768xf32>, vector<768x128xf32>, vector<16x128xf32> -> vector<16x128xf32>
    %c0_14 = arith.constant 0 : index
    %c0_15 = arith.constant 0 : index
    %17 = vector.load %arg5[%c0_14, %c0_15] : memref<1x128xf32, #tpu.memory_space<vmem>>, vector<1x128xf32>
    %18 = vector.shape_cast %17 : vector<1x128xf32> to vector<128xf32>
    %19 = vector.shape_cast %18 : vector<128xf32> to vector<1x128xf32>
    %20 = vector.broadcast %19 : vector<1x128xf32> to vector<16x128xf32>
    %21 = arith.addf %16, %20 : vector<16x128xf32>
    %c0_16 = arith.constant 0 : index
    %c0_17 = arith.constant 0 : index
    %22 = vector.load %arg6[%c0_16, %c0_17] : memref<8x768xf32, #tpu.memory_space<vmem>>, vector<8x768xf32>
    %cst_18 = arith.constant dense<0.000000e+00> : vector<16x8xf32>
    %23 = tpu.matmul %3, %22, %cst_18 {dimension_numbers = #tpu.dot_dimension_numbers<[1], [1], [0], [0], [0, 0, 1, 0], [], []>} : vector<16x768xf32>, vector<8x768xf32>, vector<16x8xf32> -> vector<16x8xf32>
    %c0_19 = arith.constant 0 : index
    %c0_20 = arith.constant 0 : index
    %24 = vector.load %arg7[%c0_19, %c0_20] : memref<1x8xf32, #tpu.memory_space<vmem>>, vector<1x8xf32>
    %25 = vector.shape_cast %24 : vector<1x8xf32> to vector<8xf32>
    %26 = vector.shape_cast %25 : vector<8xf32> to vector<1x8xf32>
    %27 = vector.broadcast %26 : vector<1x8xf32> to vector<16x8xf32>
    %28 = arith.addf %23, %27 : vector<16x8xf32>
    %29 = arith.mulf %11, %11 : vector<16x768xf32>
    %cst_21 = arith.constant dense<0.000000e+00> : vector<16xf32>
    %30 = vector.multi_reduction <add>, %29, %cst_21 [1] : vector<16x768xf32> to vector<16xf32>
    %31 = vector.shape_cast %30 : vector<16xf32> to vector<16x1xf32>
    %32 = math.sqrt %31 : vector<16x1xf32>
    %cst_22 = arith.constant 9.99999996E-13 : f32
    %33 = vector.broadcast %cst_22 : f32 to vector<16x1xf32>
    %34 = arith.maximumf %32, %33 : vector<16x1xf32>
    %35 = vector.broadcast %34 : vector<16x1xf32> to vector<16x768xf32>
    %36 = arith.divf %11, %35 : vector<16x768xf32>
    %37 = arith.mulf %14, %14 : vector<16x512xf32>
    %cst_23 = arith.constant dense<0.000000e+00> : vector<16xf32>
    %38 = vector.multi_reduction <add>, %37, %cst_23 [1] : vector<16x512xf32> to vector<16xf32>
    %39 = vector.shape_cast %38 : vector<16xf32> to vector<16x1xf32>
    %40 = math.sqrt %39 : vector<16x1xf32>
    %cst_24 = arith.constant 9.99999996E-13 : f32
    %41 = vector.broadcast %cst_24 : f32 to vector<16x1xf32>
    %42 = arith.maximumf %40, %41 : vector<16x1xf32>
    %43 = vector.broadcast %42 : vector<16x1xf32> to vector<16x512xf32>
    %44 = arith.divf %14, %43 : vector<16x512xf32>
    %c0_25 = arith.constant 0 : index
    %c0_26 = arith.constant 0 : index
    %45 = vector.load %arg8[%c0_25, %c0_26] : memref<1x768xf32, #tpu.memory_space<vmem>>, vector<1x768xf32>
    %46 = vector.shape_cast %45 : vector<1x768xf32> to vector<768xf32>
    %47 = vector.shape_cast %46 : vector<768xf32> to vector<1x768xf32>
    %48 = vector.broadcast %47 : vector<1x768xf32> to vector<16x768xf32>
    %49 = arith.mulf %36, %48 : vector<16x768xf32>
    %cst_27 = arith.constant dense<0.000000e+00> : vector<16xf32>
    %50 = vector.multi_reduction <add>, %49, %cst_27 [1] : vector<16x768xf32> to vector<16xf32>
    %51 = vector.shape_cast %50 : vector<16xf32> to vector<16x1xf32>
    %c0_28 = arith.constant 0 : index
    %c0_29 = arith.constant 0 : index
    %52 = vector.load %arg9[%c0_28, %c0_29] : memref<1x512xf32, #tpu.memory_space<vmem>>, vector<1x512xf32>
    %53 = vector.shape_cast %52 : vector<1x512xf32> to vector<512xf32>
    %54 = vector.shape_cast %53 : vector<512xf32> to vector<1x512xf32>
    %55 = vector.broadcast %54 : vector<1x512xf32> to vector<16x512xf32>
    %56 = arith.mulf %44, %55 : vector<16x512xf32>
    %cst_30 = arith.constant dense<0.000000e+00> : vector<16xf32>
    %57 = vector.multi_reduction <add>, %56, %cst_30 [1] : vector<16x512xf32> to vector<16xf32>
    %58 = vector.shape_cast %57 : vector<16xf32> to vector<16x1xf32>
    %59 = arith.addf %51, %58 : vector<16x1xf32>
    %c0_31 = arith.constant 0 : index
    %60 = memref.load %arg1[%c0_31] : memref<1xf32, #tpu.memory_space<smem>>
    %61 = vector.broadcast %60 : f32 to vector<16x1xf32>
    %62 = arith.addf %59, %61 : vector<16x1xf32>
    %cst_32 = arith.constant 0.000000e+00 : f32
    %63 = vector.broadcast %cst_32 : f32 to vector<16x1xf32>
    %64 = arith.subf %63, %62 : vector<16x1xf32>
    %65 = math.exp %64 : vector<16x1xf32>
    %cst_33 = arith.constant 1.000000e+00 : f32
    %66 = vector.broadcast %cst_33 : f32 to vector<16x1xf32>
    %67 = arith.addf %66, %65 : vector<16x1xf32>
    %cst_34 = arith.constant 1.000000e+00 : f32
    %68 = vector.broadcast %cst_34 : f32 to vector<16x1xf32>
    %69 = arith.divf %68, %67 : vector<16x1xf32>
    %cst_35 = arith.constant 1.000000e+00 : f32
    %70 = vector.broadcast %cst_35 : f32 to vector<16x1xf32>
    %71 = arith.subf %70, %69 : vector<16x1xf32>
    %72 = vector.broadcast %71 : vector<16x1xf32> to vector<16x128xf32>
    %73 = arith.mulf %21, %72 : vector<16x128xf32>
    %c0_36 = arith.constant 0 : index
    %c0_37 = arith.constant 0 : index
    %74 = vector.load %arg10[%c0_36, %c0_37] : memref<512x512xf32, #tpu.memory_space<vmem>>, vector<512x512xf32>
    %cst_38 = arith.constant dense<0.000000e+00> : vector<16x512xf32>
    %75 = tpu.matmul %44, %74, %cst_38 {dimension_numbers = #tpu.dot_dimension_numbers<[1], [0], [0], [1], [0, 0, 1, 1], [], []>} : vector<16x512xf32>, vector<512x512xf32>, vector<16x512xf32> -> vector<16x512xf32>
    %c0_39 = arith.constant 0 : index
    %c0_40 = arith.constant 0 : index
    %76 = vector.load %arg11[%c0_39, %c0_40] : memref<1x512xf32, #tpu.memory_space<vmem>>, vector<1x512xf32>
    %77 = vector.shape_cast %76 : vector<1x512xf32> to vector<512xf32>
    %78 = vector.shape_cast %77 : vector<512xf32> to vector<1x512xf32>
    %79 = vector.broadcast %78 : vector<1x512xf32> to vector<16x512xf32>
    %80 = arith.addf %75, %79 : vector<16x512xf32>
    %81 = vector.broadcast %69 : vector<16x1xf32> to vector<16x512xf32>
    %82 = arith.mulf %80, %81 : vector<16x512xf32>
    %83 = vector.shape_cast %82 : vector<16x512xf32> to vector<2x8x512xf32>
    %cst_41 = arith.constant dense<0.000000e+00> : vector<2x512xf32>
    %84 = vector.multi_reduction <add>, %83, %cst_41 [1] : vector<2x8x512xf32> to vector<2x512xf32>
    %cst_42 = arith.constant 8.000000e+00 : f32
    %85 = vector.broadcast %cst_42 : f32 to vector<2x512xf32>
    %86 = arith.divf %84, %85 : vector<2x512xf32>
    %87 = vector.shape_cast %28 : vector<16x8xf32> to vector<2x8x8xf32>
    %cst_43 = arith.constant dense<0xFF800000> : vector<2x8xf32>
    %88 = vector.multi_reduction <maximumf>, %87, %cst_43 [1] : vector<2x8x8xf32> to vector<2x8xf32>
    %89 = vector.shape_cast %88 : vector<2x8xf32> to vector<2x1x8xf32>
    %90 = vector.broadcast %89 : vector<2x1x8xf32> to vector<2x8x8xf32>
    %91 = arith.subf %87, %90 : vector<2x8x8xf32>
    %92 = math.exp %91 : vector<2x8x8xf32>
    %cst_44 = arith.constant dense<0.000000e+00> : vector<2x8xf32>
    %93 = vector.multi_reduction <add>, %92, %cst_44 [1] : vector<2x8x8xf32> to vector<2x8xf32>
    %94 = vector.shape_cast %93 : vector<2x8xf32> to vector<2x1x8xf32>
    %95 = vector.broadcast %94 : vector<2x1x8xf32> to vector<2x8x8xf32>
    %96 = arith.divf %92, %95 : vector<2x8x8xf32>
    %97 = vector.shape_cast %73 : vector<16x128xf32> to vector<2x8x128xf32>
    %cst_45 = arith.constant dense<0.000000e+00> : vector<2x8x128xf32>
    %98 = tpu.matmul %96, %97, %cst_45 {dimension_numbers = #tpu.dot_dimension_numbers<[1], [1], [2], [2], [0, 0, 0, 2, 1, 2], [0], [0]>} : vector<2x8x8xf32>, vector<2x8x128xf32>, vector<2x8x128xf32> -> vector<2x8x128xf32>
    %cst_46 = arith.constant 0.000000e+00 : f32
    %99 = vector.broadcast %cst_46 : f32 to vector<2x256xf32>
    %c0_47 = arith.constant 0 : index
    %c0_48 = arith.constant 0 : index
    %100 = vector.load %arg13[%c0_47, %c0_48] : memref<1x256xf32, #tpu.memory_space<vmem>>, vector<1x256xf32>
    %101 = vector.shape_cast %100 : vector<1x256xf32> to vector<256xf32>
    %102 = vector.shape_cast %101 : vector<256xf32> to vector<1x256xf32>
    %103 = vector.broadcast %102 : vector<1x256xf32> to vector<2x256xf32>
    %104 = arith.addf %99, %103 : vector<2x256xf32>
    %105 = vector.extract_strided_slice %98 {offsets = [0, 0, 0], sizes = [2, 1, 128], strides = [1, 1, 1]} : vector<2x8x128xf32> to vector<2x1x128xf32>
    %106 = vector.shape_cast %105 : vector<2x1x128xf32> to vector<2x128xf32>
    %c0_49 = arith.constant 0 : index
    %c0_50 = arith.constant 0 : index
    %c0_51 = arith.constant 0 : index
    %107 = vector.load %arg12[%c0_49, %c0_50, %c0_51] : memref<8x128x256xf32, #tpu.memory_space<vmem>>, vector<1x128x256xf32>
    %108 = vector.shape_cast %107 : vector<1x128x256xf32> to vector<128x256xf32>
    %cst_52 = arith.constant dense<0.000000e+00> : vector<2x256xf32>
    %109 = tpu.matmul %106, %108, %cst_52 {dimension_numbers = #tpu.dot_dimension_numbers<[1], [0], [0], [1], [0, 0, 1, 1], [], []>} : vector<2x128xf32>, vector<128x256xf32>, vector<2x256xf32> -> vector<2x256xf32>
    %110 = arith.addf %104, %109 : vector<2x256xf32>
    %111 = vector.extract_strided_slice %98 {offsets = [0, 1, 0], sizes = [2, 1, 128], strides = [1, 1, 1]} : vector<2x8x128xf32> to vector<2x1x128xf32>
    %112 = vector.shape_cast %111 : vector<2x1x128xf32> to vector<2x128xf32>
    %c1_53 = arith.constant 1 : index
    %c0_54 = arith.constant 0 : index
    %c0_55 = arith.constant 0 : index
    %113 = vector.load %arg12[%c1_53, %c0_54, %c0_55] : memref<8x128x256xf32, #tpu.memory_space<vmem>>, vector<1x128x256xf32>
    %114 = vector.shape_cast %113 : vector<1x128x256xf32> to vector<128x256xf32>
    %cst_56 = arith.constant dense<0.000000e+00> : vector<2x256xf32>
    %115 = tpu.matmul %112, %114, %cst_56 {dimension_numbers = #tpu.dot_dimension_numbers<[1], [0], [0], [1], [0, 0, 1, 1], [], []>} : vector<2x128xf32>, vector<128x256xf32>, vector<2x256xf32> -> vector<2x256xf32>
    %116 = arith.addf %110, %115 : vector<2x256xf32>
    %117 = vector.extract_strided_slice %98 {offsets = [0, 2, 0], sizes = [2, 1, 128], strides = [1, 1, 1]} : vector<2x8x128xf32> to vector<2x1x128xf32>
    %118 = vector.shape_cast %117 : vector<2x1x128xf32> to vector<2x128xf32>
    %c2_57 = arith.constant 2 : index
    %c0_58 = arith.constant 0 : index
    %c0_59 = arith.constant 0 : index
    %119 = vector.load %arg12[%c2_57, %c0_58, %c0_59] : memref<8x128x256xf32, #tpu.memory_space<vmem>>, vector<1x128x256xf32>
    %120 = vector.shape_cast %119 : vector<1x128x256xf32> to vector<128x256xf32>
    %cst_60 = arith.constant dense<0.000000e+00> : vector<2x256xf32>
    %121 = tpu.matmul %118, %120, %cst_60 {dimension_numbers = #tpu.dot_dimension_numbers<[1], [0], [0], [1], [0, 0, 1, 1], [], []>} : vector<2x128xf32>, vector<128x256xf32>, vector<2x256xf32> -> vector<2x256xf32>
    %122 = arith.addf %116, %121 : vector<2x256xf32>
    %123 = vector.extract_strided_slice %98 {offsets = [0, 3, 0], sizes = [2, 1, 128], strides = [1, 1, 1]} : vector<2x8x128xf32> to vector<2x1x128xf32>
    %124 = vector.shape_cast %123 : vector<2x1x128xf32> to vector<2x128xf32>
    %c3 = arith.constant 3 : index
    %c0_61 = arith.constant 0 : index
    %c0_62 = arith.constant 0 : index
    %125 = vector.load %arg12[%c3, %c0_61, %c0_62] : memref<8x128x256xf32, #tpu.memory_space<vmem>>, vector<1x128x256xf32>
    %126 = vector.shape_cast %125 : vector<1x128x256xf32> to vector<128x256xf32>
    %cst_63 = arith.constant dense<0.000000e+00> : vector<2x256xf32>
    %127 = tpu.matmul %124, %126, %cst_63 {dimension_numbers = #tpu.dot_dimension_numbers<[1], [0], [0], [1], [0, 0, 1, 1], [], []>} : vector<2x128xf32>, vector<128x256xf32>, vector<2x256xf32> -> vector<2x256xf32>
    %128 = arith.addf %122, %127 : vector<2x256xf32>
    %129 = vector.extract_strided_slice %98 {offsets = [0, 4, 0], sizes = [2, 1, 128], strides = [1, 1, 1]} : vector<2x8x128xf32> to vector<2x1x128xf32>
    %130 = vector.shape_cast %129 : vector<2x1x128xf32> to vector<2x128xf32>
    %c4 = arith.constant 4 : index
    %c0_64 = arith.constant 0 : index
    %c0_65 = arith.constant 0 : index
    %131 = vector.load %arg12[%c4, %c0_64, %c0_65] : memref<8x128x256xf32, #tpu.memory_space<vmem>>, vector<1x128x256xf32>
    %132 = vector.shape_cast %131 : vector<1x128x256xf32> to vector<128x256xf32>
    %cst_66 = arith.constant dense<0.000000e+00> : vector<2x256xf32>
    %133 = tpu.matmul %130, %132, %cst_66 {dimension_numbers = #tpu.dot_dimension_numbers<[1], [0], [0], [1], [0, 0, 1, 1], [], []>} : vector<2x128xf32>, vector<128x256xf32>, vector<2x256xf32> -> vector<2x256xf32>
    %134 = arith.addf %128, %133 : vector<2x256xf32>
    %135 = vector.extract_strided_slice %98 {offsets = [0, 5, 0], sizes = [2, 1, 128], strides = [1, 1, 1]} : vector<2x8x128xf32> to vector<2x1x128xf32>
    %136 = vector.shape_cast %135 : vector<2x1x128xf32> to vector<2x128xf32>
    %c5 = arith.constant 5 : index
    %c0_67 = arith.constant 0 : index
    %c0_68 = arith.constant 0 : index
    %137 = vector.load %arg12[%c5, %c0_67, %c0_68] : memref<8x128x256xf32, #tpu.memory_space<vmem>>, vector<1x128x256xf32>
    %138 = vector.shape_cast %137 : vector<1x128x256xf32> to vector<128x256xf32>
    %cst_69 = arith.constant dense<0.000000e+00> : vector<2x256xf32>
    %139 = tpu.matmul %136, %138, %cst_69 {dimension_numbers = #tpu.dot_dimension_numbers<[1], [0], [0], [1], [0, 0, 1, 1], [], []>} : vector<2x128xf32>, vector<128x256xf32>, vector<2x256xf32> -> vector<2x256xf32>
    %140 = arith.addf %134, %139 : vector<2x256xf32>
    %141 = vector.extract_strided_slice %98 {offsets = [0, 6, 0], sizes = [2, 1, 128], strides = [1, 1, 1]} : vector<2x8x128xf32> to vector<2x1x128xf32>
    %142 = vector.shape_cast %141 : vector<2x1x128xf32> to vector<2x128xf32>
    %c6 = arith.constant 6 : index
    %c0_70 = arith.constant 0 : index
    %c0_71 = arith.constant 0 : index
    %143 = vector.load %arg12[%c6, %c0_70, %c0_71] : memref<8x128x256xf32, #tpu.memory_space<vmem>>, vector<1x128x256xf32>
    %144 = vector.shape_cast %143 : vector<1x128x256xf32> to vector<128x256xf32>
    %cst_72 = arith.constant dense<0.000000e+00> : vector<2x256xf32>
    %145 = tpu.matmul %142, %144, %cst_72 {dimension_numbers = #tpu.dot_dimension_numbers<[1], [0], [0], [1], [0, 0, 1, 1], [], []>} : vector<2x128xf32>, vector<128x256xf32>, vector<2x256xf32> -> vector<2x256xf32>
    %146 = arith.addf %140, %145 : vector<2x256xf32>
    %147 = vector.extract_strided_slice %98 {offsets = [0, 7, 0], sizes = [2, 1, 128], strides = [1, 1, 1]} : vector<2x8x128xf32> to vector<2x1x128xf32>
    %148 = vector.shape_cast %147 : vector<2x1x128xf32> to vector<2x128xf32>
    %c7 = arith.constant 7 : index
    %c0_73 = arith.constant 0 : index
    %c0_74 = arith.constant 0 : index
    %149 = vector.load %arg12[%c7, %c0_73, %c0_74] : memref<8x128x256xf32, #tpu.memory_space<vmem>>, vector<1x128x256xf32>
    %150 = vector.shape_cast %149 : vector<1x128x256xf32> to vector<128x256xf32>
    %cst_75 = arith.constant dense<0.000000e+00> : vector<2x256xf32>
    %151 = tpu.matmul %148, %150, %cst_75 {dimension_numbers = #tpu.dot_dimension_numbers<[1], [0], [0], [1], [0, 0, 1, 1], [], []>} : vector<2x128xf32>, vector<128x256xf32>, vector<2x256xf32> -> vector<2x256xf32>
    %152 = arith.addf %146, %151 : vector<2x256xf32>
    %153 = arith.mulf %152, %152 : vector<2x256xf32>
    %cst_76 = arith.constant dense<0.000000e+00> : vector<2xf32>
    %154 = vector.multi_reduction <add>, %153, %cst_76 [1] : vector<2x256xf32> to vector<2xf32>
    %155 = vector.shape_cast %154 : vector<2xf32> to vector<2x1xf32>
    %156 = math.sqrt %155 : vector<2x1xf32>
    %cst_77 = arith.constant 9.99999996E-13 : f32
    %157 = vector.broadcast %cst_77 : f32 to vector<2x1xf32>
    %158 = arith.maximumf %156, %157 : vector<2x1xf32>
    %159 = vector.broadcast %158 : vector<2x1xf32> to vector<2x256xf32>
    %160 = arith.divf %152, %159 : vector<2x256xf32>
    %c0_78 = arith.constant 0 : index
    %c0_79 = arith.constant 0 : index
    %161 = vector.load %arg14[%c0_78, %c0_79] : memref<256x512xf32, #tpu.memory_space<vmem>>, vector<256x512xf32>
    %cst_80 = arith.constant dense<0.000000e+00> : vector<2x512xf32>
    %162 = tpu.matmul %160, %161, %cst_80 {dimension_numbers = #tpu.dot_dimension_numbers<[1], [0], [0], [1], [0, 0, 1, 1], [], []>} : vector<2x256xf32>, vector<256x512xf32>, vector<2x512xf32> -> vector<2x512xf32>
    %c0_81 = arith.constant 0 : index
    %c0_82 = arith.constant 0 : index
    %163 = vector.load %arg15[%c0_81, %c0_82] : memref<1x512xf32, #tpu.memory_space<vmem>>, vector<1x512xf32>
    %164 = vector.shape_cast %163 : vector<1x512xf32> to vector<512xf32>
    %165 = vector.shape_cast %164 : vector<512xf32> to vector<1x512xf32>
    %166 = vector.broadcast %165 : vector<1x512xf32> to vector<2x512xf32>
    %167 = arith.addf %162, %166 : vector<2x512xf32>
    %168 = arith.mulf %86, %86 : vector<2x512xf32>
    %cst_83 = arith.constant dense<0.000000e+00> : vector<2xf32>
    %169 = vector.multi_reduction <add>, %168, %cst_83 [1] : vector<2x512xf32> to vector<2xf32>
    %170 = vector.shape_cast %169 : vector<2xf32> to vector<2x1xf32>
    %171 = math.sqrt %170 : vector<2x1xf32>
    %cst_84 = arith.constant 9.99999996E-13 : f32
    %172 = vector.broadcast %cst_84 : f32 to vector<2x1xf32>
    %173 = arith.maximumf %171, %172 : vector<2x1xf32>
    %174 = vector.broadcast %173 : vector<2x1xf32> to vector<2x512xf32>
    %175 = arith.divf %86, %174 : vector<2x512xf32>
    %c0_85 = arith.constant 0 : index
    %c0_86 = arith.constant 0 : index
    %176 = vector.load %arg16[%c0_85, %c0_86] : memref<512x512xf32, #tpu.memory_space<vmem>>, vector<512x512xf32>
    %cst_87 = arith.constant dense<0.000000e+00> : vector<2x512xf32>
    %177 = tpu.matmul %175, %176, %cst_87 {dimension_numbers = #tpu.dot_dimension_numbers<[1], [0], [0], [1], [0, 0, 1, 1], [], []>} : vector<2x512xf32>, vector<512x512xf32>, vector<2x512xf32> -> vector<2x512xf32>
    %c0_88 = arith.constant 0 : index
    %c0_89 = arith.constant 0 : index
    %178 = vector.load %arg17[%c0_88, %c0_89] : memref<1x512xf32, #tpu.memory_space<vmem>>, vector<1x512xf32>
    %179 = vector.shape_cast %178 : vector<1x512xf32> to vector<512xf32>
    %180 = vector.shape_cast %179 : vector<512xf32> to vector<1x512xf32>
    %181 = vector.broadcast %180 : vector<1x512xf32> to vector<2x512xf32>
    %182 = arith.addf %177, %181 : vector<2x512xf32>
    %183 = arith.addf %167, %182 : vector<2x512xf32>
    %184 = vector.shape_cast %183 : vector<2x512xf32> to vector<2x1x512xf32>
    %c0_90 = arith.constant 0 : index
    %c0_91 = arith.constant 0 : index
    %c0_92 = arith.constant 0 : index
    %185 = vector.load %arg18[%c0_90, %c0_91, %c0_92] : memref<2x1x512xf32, #tpu.memory_space<vmem>>, vector<2x1x512xf32>
    tpu.vector_store %arg18[%c0_90, %c0_91, %c0_92], %184 {strides = array<i32>} : memref<2x1x512xf32, #tpu.memory_space<vmem>>, vector<2x1x512xf32>,
    return
  }
  func.func @transform_0(%arg0: i32) -> i32 {
    %c0_i32 = arith.constant 0 : i32
    %c0_i32_0 = arith.constant 0 : i32
    return %c0_i32 : i32
  }
  func.func @transform_1(%arg0: i32) -> (i32, i32, i32, i32) {
    %c0_i32 = arith.constant 0 : i32
    %c0_i32_0 = arith.constant 0 : i32
    %c0_i32_1 = arith.constant 0 : i32
    %c0_i32_2 = arith.constant 0 : i32
    return %c0_i32, %arg0, %c0_i32_0, %c0_i32_1 : i32, i32, i32, i32
  }
  func.func @transform_2(%arg0: i32) -> (i32, i32, i32) {
    %c0_i32 = arith.constant 0 : i32
    %c0_i32_0 = arith.constant 0 : i32
    %c0_i32_1 = arith.constant 0 : i32
    return %arg0, %c0_i32, %c0_i32_0 : i32, i32, i32
  }
  func.func @transform_3(%arg0: i32) -> (i32, i32) {
    %c0_i32 = arith.constant 0 : i32
    %c0_i32_0 = arith.constant 0 : i32
    %c0_i32_1 = arith.constant 0 : i32
    return %c0_i32, %c0_i32_0 : i32, i32
  }
  func.func @transform_4(%arg0: i32) -> (i32, i32) {
    %c0_i32 = arith.constant 0 : i32
    %c0_i32_0 = arith.constant 0 : i32
    %c0_i32_1 = arith.constant 0 : i32
    return %c0_i32, %c0_i32_0 : i32, i32
  }
  func.func @transform_5(%arg0: i32) -> (i32, i32) {
    %c0_i32 = arith.constant 0 : i32
    %c0_i32_0 = arith.constant 0 : i32
    %c0_i32_1 = arith.constant 0 : i32
    return %c0_i32, %c0_i32_0 : i32, i32
  }
  func.func @transform_6(%arg0: i32) -> (i32, i32) {
    %c0_i32 = arith.constant 0 : i32
    %c0_i32_0 = arith.constant 0 : i32
    %c0_i32_1 = arith.constant 0 : i32
    return %c0_i32, %c0_i32_0 : i32, i32
  }
  func.func @transform_7(%arg0: i32) -> (i32, i32) {
    %c0_i32 = arith.constant 0 : i32
    %c0_i32_0 = arith.constant 0 : i32
    %c0_i32_1 = arith.constant 0 : i32
    return %c0_i32, %c0_i32_0 : i32, i32
  }
  func.func @transform_8(%arg0: i32) -> (i32, i32) {
    %c0_i32 = arith.constant 0 : i32
    %c0_i32_0 = arith.constant 0 : i32
    %c0_i32_1 = arith.constant 0 : i32
    return %c0_i32, %c0_i32_0 : i32, i32
  }
  func.func @transform_9(%arg0: i32) -> (i32, i32) {
    %c0_i32 = arith.constant 0 : i32
    %c0_i32_0 = arith.constant 0 : i32
    %c0_i32_1 = arith.constant 0 : i32
    return %c0_i32, %c0_i32_0 : i32, i32
  }
  func.func @transform_10(%arg0: i32) -> (i32, i32) {
    %c0_i32 = arith.constant 0 : i32
    %c0_i32_0 = arith.constant 0 : i32
    %c0_i32_1 = arith.constant 0 : i32
    return %c0_i32, %c0_i32_0 : i32, i32
  }
  func.func @transform_11(%arg0: i32) -> (i32, i32, i32) {
    %c0_i32 = arith.constant 0 : i32
    %c0_i32_0 = arith.constant 0 : i32
    %c0_i32_1 = arith.constant 0 : i32
    %c0_i32_2 = arith.constant 0 : i32
    return %c0_i32, %c0_i32_0, %c0_i32_1 : i32, i32, i32
  }
  func.func @transform_12(%arg0: i32) -> (i32, i32) {
    %c0_i32 = arith.constant 0 : i32
    %c0_i32_0 = arith.constant 0 : i32
    %c0_i32_1 = arith.constant 0 : i32
    return %c0_i32, %c0_i32_0 : i32, i32
  }
  func.func @transform_13(%arg0: i32) -> (i32, i32) {
    %c0_i32 = arith.constant 0 : i32
    %c0_i32_0 = arith.constant 0 : i32
    %c0_i32_1 = arith.constant 0 : i32
    return %c0_i32, %c0_i32_0 : i32, i32
  }
  func.func @transform_14(%arg0: i32) -> (i32, i32) {
    %c0_i32 = arith.constant 0 : i32
    %c0_i32_0 = arith.constant 0 : i32
    %c0_i32_1 = arith.constant 0 : i32
    return %c0_i32, %c0_i32_0 : i32, i32
  }
  func.func @transform_15(%arg0: i32) -> (i32, i32) {
    %c0_i32 = arith.constant 0 : i32
    %c0_i32_0 = arith.constant 0 : i32
    %c0_i32_1 = arith.constant 0 : i32
    return %c0_i32, %c0_i32_0 : i32, i32
  }
  func.func @transform_16(%arg0: i32) -> (i32, i32) {
    %c0_i32 = arith.constant 0 : i32
    %c0_i32_0 = arith.constant 0 : i32
    %c0_i32_1 = arith.constant 0 : i32
    return %c0_i32, %c0_i32_0 : i32, i32
  }
  func.func @transform_17(%arg0: i32) -> (i32, i32, i32) {
    %c0_i32 = arith.constant 0 : i32
    %c0_i32_0 = arith.constant 0 : i32
    %c0_i32_1 = arith.constant 0 : i32
    return %arg0, %c0_i32, %c0_i32_0 : i32, i32, i32
  }
}

</mosaic_0001>

<bundles_post_ra>
// kernel: tpu_custom_call.1
= control target key start
LH: loop header
LB: loop body
LE: loop exit
PB: predicated region body
PF: predicated region fallthrough
CT: control target
= control target key end

     0   :  { %s4909_s0 = inlined_call_operand.<no memory space> [shape: f32[1], index: 0, kind: input, shape index: {}]   ;;  %s4910_s1 = inlined_call_operand.hbm [shape: bf16[3,2,8,768], index: 1, kind: input, shape index: {}]   ;;  %s4911_s2 = inlined_call_operand.hbm [shape: bf16[2,8,512], index: 2, kind: input, shape index: {}]   ;;  %s4912_s3 = inlined_call_operand.hbm [shape: f32[768,128], index: 3, kind: input, shape index: {}]   ;;  %s4913_s4 = inlined_call_operand.hbm [shape: f32[1,128], index: 4, kind: input, shape index: {}]   ;;  %s4914_s5 = inlined_call_operand.hbm [shape: f32[8,768], index: 5, kind: input, shape index: {}]   ;;  %s4915_s6 = inlined_call_operand.hbm [shape: f32[1,8], index: 6, kind: input, shape index: {}]   ;;  %s4916_s7 = inlined_call_operand.vmem [shape: f32[1,768], index: 7, kind: input, shape index: {}]   ;;  %s4917_s8 = inlined_call_operand.vmem [shape: f32[1,512], index: 8, kind: input, shape index: {}]   ;;  %s4918_s9 = inlined_call_operand.hbm [shape: f32[512,512], index: 9, kind: input, shape index: {}]   ;;  %s4919_s10 = inlined_call_operand.vmem [shape: f32[1,512], index: 10, kind: input, shape index: {}]   ;;  %s4920_s11 = inlined_call_operand.hbm [shape: f32[8,128,256], index: 11, kind: input, shape index: {}]   ;;  %s4921_s12 = inlined_call_operand.hbm [shape: f32[1,256], index: 12, kind: input, shape index: {}]   ;;  %s4922_s13 = inlined_call_operand.hbm [shape: f32[256,512], index: 13, kind: input, shape index: {}]   ;;  %s4923_s14 = inlined_call_operand.vmem [shape: f32[1,512], index: 14, kind: input, shape index: {}]   ;;  %s4924_s15 = inlined_call_operand.hbm [shape: f32[512,512], index: 15, kind: input, shape index: {}]   ;;  %s4925_s16 = inlined_call_operand.vmem [shape: f32[1,512], index: 16, kind: input, shape index: {}]   ;;  %s4926_s17 = inlined_call_operand.hbm [shape: f32[2,1,512], index: 17, kind: output, shape index: {}]  }
   0x1   :  { %4927 = sst [smem:[#allocation29_spill]] %s4909_s0 }
   0x2   :  { %4928 = sst [smem:[#allocation30_spill]] %s4910_s1 }
   0x3   :  { %23 = vsyncpa [#allocation4], 0 }
   0x4   :  { %24 = vsyncpa [#allocation7], 0 }
   0x5   :  { %25 = vsyncpa [#allocation10], 0 }
   0x6   :  { %26 = vsyncpa [#allocation13], 0 }
   0x7   :  { %27 = vsyncpa [#allocation16], 0 }
   0x8   :  { %28 = vsyncpa [#allocation19], 0 }
   0x9   :  { %29 = vsyncpa [#allocation5], 0  ;;  %s4318_s24 = smov [#allocation6]  }
   0xa   :  { %s49_s25 = sshll.u32 %s4318_s24, 4  ;;  %s50_s25 = int_to_ptr.vmem [resolvable:$true] %s49_s25 }
   0xb   :  { %s4072_s26 = scalar_lea.vmem %s50_s25, 512  ;;  %p4077_p1 = scmp.lt.s32.totalorder %s50_s25, %s50_s25 }
   0xc   :  { %p4073_p0 = scmp.ne.s32.totalorder %s50_s25, %s4072_s26  ;;  %p4078_p2 = scmp.lt.s32.totalorder %s4072_s26, %s4072_s26 }
   0xe   :  { %p4079_p3 = por %p4078_p2, %p4077_p1 }
  0x10   :  { %p4080_p4 = pnand %p4079_p3, %p4073_p0 }
  0x12   :  { %4083 = shalt.err (!%p4080_p4)
}
  0x13   :  { %s4319_s27 = smov 256   ;;  %s4320_s28 = smov 16  }
  0x14   :  { %55 = dma.hbm_to_vmem [thread:$0]  %s4911_s2, 512, %s50_s25, [#allocation7], %s4319_s27, %s4319_s27, %s4320_s28  }
  0x15   :  { %s4321_s30 = smov [#allocation9]   ;;  %s4322_s19 = smov [#allocation12]  }
  0x16   :  { %s74_s18 = sshll.u32 %s4321_s30, 4  ;;  %s94_s1 = sshll.u32 %s4322_s19, 4  ;;  %s75_s18 = int_to_ptr.vmem [resolvable:$true] %s74_s18  ;;  %s95_s1 = int_to_ptr.vmem [resolvable:$true] %s94_s1 }
  0x17   :  { %s4092_s20 = scalar_lea.vmem %s75_s18, 16  ;;  %s4096_s21 = scalar_lea.vmem %s75_s18, 32 }
  0x18   :  { %p4093_p5 = scmp.ne.s32.totalorder %s75_s18, %s4092_s20  ;;  %p4097_p6 = scmp.lt.s32.totalorder %s75_s18, %s75_s18 }
  0x19   :  { %p4098_p7 = scmp.lt.s32.totalorder %s4096_s21, %s4092_s20 }
  0x1b   :  { %p4099_p8 = por %p4098_p7, %p4097_p6 }
  0x1d   :  { %p4100_p9 = pnand %p4099_p8, %p4093_p5 }
  0x1f   :  { %4103 = shalt.err (!%p4100_p9)
}
  0x20   :  { %77 = dma.hbm_to_vmem [thread:$0]  %s4913_s4, 16, %s75_s18, [#allocation10]  }
  0x21   :  { %s4112_s24 = scalar_lea.vmem %s95_s1, 16  ;;  %s4116_s2 = scalar_lea.vmem %s95_s1, 32 }
  0x22   :  { %p4113_p10 = scmp.ne.s32.totalorder %s95_s1, %s4112_s24  ;;  %p4117_p11 = scmp.lt.s32.totalorder %s95_s1, %s95_s1 }
  0x23   :  { %p4118_p12 = scmp.lt.s32.totalorder %s4116_s2, %s4112_s24 }
  0x25   :  { %p4119_p13 = por %p4118_p12, %p4117_p11 }
  0x27   :  { %p4120_p0 = pnand %p4119_p13, %p4113_p10 }
  0x29   :  { %4123 = shalt.err (!%p4120_p0)
}
  0x2a   :  { %97 = dma.hbm_to_vmem [thread:$0]  %s4915_s6, 16, %s95_s1, [#allocation13]  }
  0x2b   :  { %s4323_s29 = smov [#allocation15]  }
  0x2c   :  { %s121_s0 = sshll.u32 %s4323_s29, 4  ;;  %s122_s0 = int_to_ptr.vmem [resolvable:$true] %s121_s0 }
  0x2d   :  { %s4132_s30 = scalar_lea.vmem %s122_s0, 32768  ;;  %p4137_p2 = scmp.lt.s32.totalorder %s122_s0, %s122_s0 }
  0x2e   :  { %p4133_p1 = scmp.ne.s32.totalorder %s122_s0, %s4132_s30  ;;  %p4138_p3 = scmp.lt.s32.totalorder %s4132_s30, %s4132_s30 }
  0x30   :  { %p4139_p4 = por %p4138_p3, %p4137_p2 }
  0x32   :  { %p4140_p5 = pnand %p4139_p4, %p4133_p1 }
  0x34   :  { %4143 = shalt.err (!%p4140_p5)
}
  0x35   :  { %127 = dma.hbm_to_vmem [thread:$0]  %s4920_s11, 32768, %s122_s0, [#allocation16], %s4319_s27, %s4319_s27, %s4320_s28  }
  0x36   :  { %s4324_s19 = smov [#allocation18]   ;;  %s4325_s6 = smov [#allocation3]  }
  0x37   :  { %s143_s20 = sshll.u32 %s4324_s19, 4  ;;  %s37_s1 = sshll.u32 %s4325_s6, 4  ;;  %s144_s20 = int_to_ptr.vmem [resolvable:$true] %s143_s20  ;;  %s38_s1 = int_to_ptr.vmem [resolvable:$true] %s37_s1 }
  0x38   :  { %s4152_s21 = scalar_lea.vmem %s144_s20, 16384  ;;  %p4157_p7 = scmp.lt.s32.totalorder %s144_s20, %s144_s20 }
  0x39   :  { %p4153_p6 = scmp.ne.s32.totalorder %s144_s20, %s4152_s21  ;;  %p4158_p8 = scmp.lt.s32.totalorder %s4152_s21, %s4152_s21 }
  0x3b   :  { %p4159_p9 = por %p4158_p8, %p4157_p7 }
  0x3d   :  { %p4160_p10 = pnand %p4159_p9, %p4153_p6 }
  0x3f   :  { %4163 = shalt.err (!%p4160_p10)
}
  0x40   :  { %s4326_s22 = smov 512   ;;  %s4327_s23 = smov 32  }
  0x41   :  { %149 = dma.hbm_to_vmem [thread:$0]  %s4922_s13, 16384, %s144_s20, [#allocation19], %s4326_s22, %s4326_s22, %s4327_s23  }
  0x42   :  { %s4172_s27 = scalar_lea.vmem %s38_s1, 2304  ;;  %p4177_p12 = scmp.lt.s32.totalorder %s38_s1, %s38_s1 }
  0x43   :  { %p4173_p11 = scmp.ne.s32.totalorder %s38_s1, %s4172_s27  ;;  %p4178_p13 = scmp.lt.s32.totalorder %s4172_s27, %s4172_s27 }
  0x45   :  { %p4179_p0 = por %p4178_p13, %p4177_p12 }
  0x47   :  { %p4180_p1 = pnand %p4179_p0, %p4173_p11 }
  0x49   :  { %4183 = shalt.err (!%p4180_p1)
}
  0x4a   :  { %s4328_s28 = smov 384   ;;  %s4329_s2 = smov 24  }
  0x4b   :  { %s4929_s29 = sld [smem:[#allocation30_spill]]  ;;  %s4330_s0 = smov [#allocation8]  }
  0x4c   :  { %s61_s30 = sshll.u32 %s4330_s0, 4  ;;  %s62_s30 = int_to_ptr.vmem [resolvable:$true] %s61_s30 }
  0x4d   :  { %s4192_s4 = scalar_lea.vmem %s62_s30, 12288  ;;  %p4197_p3 = scmp.lt.s32.totalorder %s62_s30, %s62_s30 }
  0x4e   :  { %p4193_p2 = scmp.ne.s32.totalorder %s62_s30, %s4192_s4  ;;  %p4198_p4 = scmp.lt.s32.totalorder %s4192_s4, %s4192_s4 }
  0x50   :  { %p4199_p5 = por %p4198_p4, %p4197_p3 }
  0x51   :  { %43 = dma.hbm_to_vmem [thread:$0]  %s4929_s29, 2304, %s38_s1, [#allocation4], %s4328_s28, %s4328_s28, %s4329_s2  }
  0x52   :  { %p4200_p6 = pnand %p4199_p5, %p4193_p2 }
  0x54   :  { %4203 = shalt.err (!%p4200_p6)
}
  0x55   :  { %s4331_s13 = smov 128   ;;  %s4332_s18 = smov 8  }
  0x56   :  { %67 = dma.hbm_to_vmem [thread:$0]  %s4912_s3, 12288, %s62_s30, [#allocation7], %s4331_s13, %s4331_s13, %s4332_s18  }
  0x57   :  { %s4333_s6 = smov [#allocation11]   ;;  %s4334_s1 = smov [#allocation14]  }
  0x58   :  { %s84_s21 = sshll.u32 %s4333_s6, 4  ;;  %s107_s24 = sshll.u32 %s4334_s1, 4  ;;  %s85_s21 = int_to_ptr.vmem [resolvable:$true] %s84_s21  ;;  %s108_s24 = int_to_ptr.vmem [resolvable:$true] %s107_s24 }
  0x59   :  { %s4212_s11 = scalar_lea.vmem %s85_s21, 768  ;;  %p4217_p8 = scmp.lt.s32.totalorder %s85_s21, %s85_s21 }
  0x5a   :  { %p4213_p7 = scmp.ne.s32.totalorder %s85_s21, %s4212_s11  ;;  %p4218_p9 = scmp.lt.s32.totalorder %s4212_s11, %s4212_s11 }
  0x5c   :  { %p4219_p10 = por %p4218_p9, %p4217_p8 }
  0x5e   :  { %p4220_p11 = pnand %p4219_p10, %p4213_p7 }
  0x60   :  { %4223 = shalt.err (!%p4220_p11)
}
  0x61   :  { %87 = dma.hbm_to_vmem [thread:$0]  %s4914_s5, 768, %s85_s21, [#allocation10]  }
  0x62   :  { %s4232_s2 = scalar_lea.vmem %s108_s24, 32768  ;;  %p4237_p13 = scmp.lt.s32.totalorder %s108_s24, %s108_s24 }
  0x63   :  { %p4233_p12 = scmp.ne.s32.totalorder %s108_s24, %s4232_s2  ;;  %p4238_p0 = scmp.lt.s32.totalorder %s4232_s2, %s4232_s2 }
  0x65   :  { %p4239_p1 = por %p4238_p0, %p4237_p13 }
  0x67   :  { %p4240_p2 = pnand %p4239_p1, %p4233_p12 }
  0x69   :  { %4243 = shalt.err (!%p4240_p2)
}
  0x6a   :  { %113 = dma.hbm_to_vmem [thread:$0]  %s4918_s9, 32768, %s108_s24, [#allocation13], %s4326_s22, %s4326_s22, %s4327_s23  }
  0x6b   :  { %s4335_s26 = smov [#allocation17]   ;;  %s4336_s0 = smov [#allocation20]  }
  0x6c   :  { %s134_s29 = sshll.u32 %s4335_s26, 4  ;;  %s157_s5 = sshll.u32 %s4336_s0, 4  ;;  %s135_s29 = int_to_ptr.vmem [resolvable:$true] %s134_s29  ;;  %s158_s5 = int_to_ptr.vmem [resolvable:$true] %s157_s5 }
  0x6d   :  { %s4252_s30 = scalar_lea.vmem %s135_s29, 32  ;;  %p4257_p4 = scmp.lt.s32.totalorder %s135_s29, %s135_s29 }
  0x6e   :  { %p4253_p3 = scmp.ne.s32.totalorder %s135_s29, %s4252_s30  ;;  %p4258_p5 = scmp.lt.s32.totalorder %s4252_s30, %s4252_s30 }
  0x70   :  { %p4259_p6 = por %p4258_p5, %p4257_p4 }
  0x72   :  { %p4260_p7 = pnand %p4259_p6, %p4253_p3 }
  0x74   :  { %4263 = shalt.err (!%p4260_p7)
}
  0x75   :  { %137 = dma.hbm_to_vmem [thread:$0]  %s4921_s12, 32, %s135_s29, [#allocation16]  }
  0x76   :  { %s4272_s18 = scalar_lea.vmem %s158_s5, 32768  ;;  %p4277_p9 = scmp.lt.s32.totalorder %s158_s5, %s158_s5 }
  0x77   :  { %p4273_p8 = scmp.ne.s32.totalorder %s158_s5, %s4272_s18  ;;  %p4278_p10 = scmp.lt.s32.totalorder %s4272_s18, %s4272_s18 }
  0x79   :  { %p4279_p11 = por %p4278_p10, %p4277_p9 }
  0x7b   :  { %p4280_p12 = pnand %p4279_p11, %p4273_p8 }
  0x7d   :  { %4283 = shalt.err (!%p4280_p12)
}
  0x7e   :  { %163 = dma.hbm_to_vmem [thread:$0]  %s4924_s15, 32768, %s158_s5, [#allocation19], %s4326_s22, %s4326_s22, %s4327_s23  }
  0x7f   :  { %4304 = dma.done.wait [#allocation4], 2304  }
  0x80   :  { %4305 = vsyncadd [#allocation4], 4294964992 }
  0x81   :  { %4306 = dma.done.wait [#allocation7], 12800  }
  0x82   :  { %4307 = vsyncadd [#allocation7], 4294954496 }
  0x83   :  { %4308 = dma.done.wait [#allocation10], 784  }
  0x84   :  { %4309 = vsyncadd [#allocation10], 4294966512 }
  0x85   :  { %4310 = dma.done.wait [#allocation13], 32784  }
  0x86   :  { %4311 = vsyncadd [#allocation13], 4294934512 }
  0x87   :  { %4312 = dma.done.wait [#allocation16], 32800  }
  0x88   :  { %4313 = vsyncadd [#allocation16], 4294934496 }
  0x89   :  { %4314 = dma.done.wait [#allocation19], 49152  }
  0x8a   :  { %4315 = vsyncadd [#allocation19], 4294918144  ;;  %v298_v0 = vld [vmem:[#allocation8 + $0xf8] sm:$0xff]  ;;  %v297_v4 = vld [vmem:[#allocation8 + $0xf0] sm:$0xff]  ;;  %vm1704_vm8 = vcmask 64512   ;;  %vm4338_vm9 = vmmov 0  }
  0x8b   :  { %v330_v1 = vld [vmem:[#allocation8 + $0x1f8] sm:$0xff]  ;;  %3869 = vmatprep.subr.mxu0 %v298_v0  ;;  %v329_v5 = vld [vmem:[#allocation8 + $0x1f0] sm:$0xff]  ;;  %v296_v8 = vld [vmem:[#allocation8 + $0xe8] sm:$0xff]  ;;  %s4930_s20 = sld [smem:[#allocation29_spill]]  ;;  %vm2002_vm10 = vcmask 1041409   ;;  %vm2849_vm11 = vcmask 1041408  }
  0x8c   :  { %v282_v2 = vld [vmem:[#allocation8 + $0x78] sm:$0xff]  ;;  %3907 = vmatprep.subr.mxu1 %v330_v1  ;;  %v281_v6 = vld [vmem:[#allocation8 + $0x70] sm:$0xff]  ;;  %v328_v9 = vld [vmem:[#allocation8 + $0x1e8] sm:$0xff] }
  0x8d   :  { %v314_v3 = vld [vmem:[#allocation8 + $0x178] sm:$0xff]  ;;  %3870 = vmatpush3.msra.mxu0 %v282_v2  ;;  %v313_v7 = vld [vmem:[#allocation8 + $0x170] sm:$0xff]  ;;  %v280_v10 = vld [vmem:[#allocation8 + $0x68] sm:$0xff] }
  0x8e   :  { %3908 = vmatpush3.msra.mxu1 %v314_v3  ;;  %3871 = vmatprep.subr.mxu0 %v297_v4  ;;  %v312_v11 = vld [vmem:[#allocation8 + $0x168] sm:$0xff]  ;;  %v295_v12 = vld [vmem:[#allocation8 + $0xe0] sm:$0xff]  ;;  %v294_v16 = vld [vmem:[#allocation8 + $0xd8] sm:$0xff] }
  0x8f   :  { %3909 = vmatprep.subr.mxu1 %v329_v5  ;;  %3872 = vmatpush3.msra.mxu0 %v281_v6  ;;  %v327_v13 = vld [vmem:[#allocation8 + $0x1e0] sm:$0xff]  ;;  %v326_v17 = vld [vmem:[#allocation8 + $0x1d8] sm:$0xff]  ;;  %v256_v21 = vld [vmem:[#allocation6 + $0x8] sm:$0xff] }
  0x90   :  { %3910 = vmatpush3.msra.mxu1 %v313_v7  ;;  %3873 = vmatprep.subr.mxu0 %v296_v8  ;;  %v279_v14 = vld [vmem:[#allocation8 + $0x60] sm:$0xff]  ;;  %v278_v18 = vld [vmem:[#allocation8 + $0x58] sm:$0xff]  ;;  %v293_v22 = vld [vmem:[#allocation8 + $0xd0] sm:$0xff]  ;;  %v4485_v26 = vunpack.c.l.bf16 %v256_v21  ;;  %v4487_v27 = vunpack.c.h.bf16 %v256_v21 }
  0x91   :  { %3911 = vmatprep.subr.mxu1 %v328_v9  ;;  %v311_v15 = vld [vmem:[#allocation8 + $0x160] sm:$0xff]  ;;  %3874 = vmatpush3.msra.mxu0 %v280_v10  ;;  %v310_v19 = vld [vmem:[#allocation8 + $0x158] sm:$0xff]  ;;  %v325_v23 = vld [vmem:[#allocation8 + $0x1d0] sm:$0xff] }
  0x92   :  { %3912 = vmatpush3.msra.mxu1 %v312_v11  ;;  %3875 = vmatprep.subr.mxu0 %v295_v12  ;;  %v255_v20 = vld [vmem:[#allocation6] sm:$0xff]  ;;  %v277_v28 = vld [vmem:[#allocation8 + $0x50] sm:$0xff]  ;;  %v292_v30 = vld [vmem:[#allocation8 + $0xc8] sm:$0xff]  ;;  %v891_v33 = vmul.f32 %v4485_v26, %v4485_v26  ;;  %v892_v37 = vmul.f32 %v4487_v27, %v4487_v27 }
  0x93   :  { %3913 = vmatprep.subr.mxu1 %v327_v13  ;;  %3876 = vmatpush3.msra.mxu0 %v279_v14  ;;  %v4481_v24 = vunpack.c.l.bf16 %v255_v20  ;;  %v4483_v25 = vunpack.c.h.bf16 %v255_v20  ;;  %v309_v29 = vld [vmem:[#allocation8 + $0x150] sm:$0xff]  ;;  %v324_v34 = vld [vmem:[#allocation8 + $0x1c8] sm:$0xff]  ;;  %v238_v39 = vld [vmem:[#allocation3 + $0x68] sm:$0xff] }
  0x94   :  { %3914 = vmatpush3.msra.mxu1 %v311_v15  ;;  %3877 = vmatprep.subr.mxu0 %v294_v16  ;;  %v276_v35 = vld [vmem:[#allocation8 + $0x48] sm:$0xff]  ;;  %v237_v36 = vld [vmem:[#allocation3 + $0x60] sm:$0xff]  ;;  %v239_v40 = vld [vmem:[#allocation3 + $0x70] sm:$0xff]  ;;  %v4501_v46 = vunpack.c.l.bf16 %v238_v39  ;;  %v4503_v47 = vunpack.c.h.bf16 %v238_v39 }
  0x95   :  { %3915 = vmatprep.subr.mxu1 %v326_v17  ;;  %3878 = vmatpush3.msra.mxu0 %v278_v18  ;;  %v889_v31 = vmul.f32 %v4481_v24, %v4481_v24  ;;  %v890_v32 = vmul.f32 %v4483_v25, %v4483_v25  ;;  %v308_v38 = vld [vmem:[#allocation8 + $0x148] sm:$0xff]  ;;  %v4497_v41 = vunpack.c.l.bf16 %v237_v36  ;;  %v4499_v42 = vunpack.c.h.bf16 %v237_v36  ;;  %v291_v44 = vld [vmem:[#allocation8 + $0xc0] sm:$0xff]  ;;  %v290_v54 = vld [vmem:[#allocation8 + $0xb8] sm:$0xff] }
  0x96   :  { %3916 = vmatpush3.msra.mxu1 %v310_v19  ;;  %3879 = vmatprep.subr.mxu0 %v293_v22  ;;  %v323_v45 = vld [vmem:[#allocation8 + $0x1c0] sm:$0xff]  ;;  %v4505_v48 = vunpack.c.l.bf16 %v239_v40  ;;  %v4507_v49 = vunpack.c.h.bf16 %v239_v40  ;;  %v835_v56 = vmul.f32 %v4501_v46, %v4501_v46  ;;  %v322_v57 = vld [vmem:[#allocation8 + $0x1b8] sm:$0xff]  ;;  %v240_v58 = vld [vmem:[#allocation3 + $0x78] sm:$0xff]  ;;  %v836_v60 = vmul.f32 %v4503_v47, %v4503_v47 }
  0x97   :  { %3917 = vmatprep.subr.mxu1 %v325_v23  ;;  %v897_v43 = vadd.f32 %v890_v32, %v889_v31  ;;  %3880 = vmatpush3.msra.mxu0 %v277_v28  ;;  %v833_v50 = vmul.f32 %v4497_v41, %v4497_v41  ;;  %v834_v51 = vmul.f32 %v4499_v42, %v4499_v42  ;;  %v275_v52 = vld [vmem:[#allocation8 + $0x40] sm:$0xff]  ;;  %v241_v59 = vld [vmem:[#allocation3 + $0x80] sm:$0xff]  ;;  %v274_v63 = vld [vmem:[#allocation8 + $0x38] sm:$0xff]  ;;  %v4519_v1 = vunpack.c.l.bf16 %v240_v58 }
  0x98   :  { %3918 = vmatpush3.msra.mxu1 %v309_v29  ;;  %3881 = vmatprep.subr.mxu0 %v292_v30  ;;  %v307_v53 = vld [vmem:[#allocation8 + $0x140] sm:$0xff]  ;;  %v837_v61 = vmul.f32 %v4505_v48, %v4505_v48  ;;  %v242_v0 = vld [vmem:[#allocation3 + $0x88] sm:$0xff]  ;;  %v289_v4 = vld [vmem:[#allocation8 + $0xb0] sm:$0xff]  ;;  %v4521_v6 = vunpack.c.h.bf16 %v240_v58  ;;  %v4523_v7 = vunpack.c.l.bf16 %v241_v59  ;;  %v4525_v8 = vunpack.c.h.bf16 %v241_v59 }
  0x99   :  { %3919 = vmatprep.subr.mxu1 %v324_v34  ;;  %v898_v55 = vadd.f32 %v897_v43, %v891_v33  ;;  %3882 = vmatpush3.msra.mxu0 %v276_v35  ;;  %v845_v62 = vadd.f32 %v834_v51, %v833_v50  ;;  %v306_v3 = vld [vmem:[#allocation8 + $0x138] sm:$0xff]  ;;  %v321_v5 = vld [vmem:[#allocation8 + $0x1b0] sm:$0xff]  ;;  %v838_v9 = vmul.f32 %v4507_v49, %v4507_v49  ;;  %v4531_v15 = vunpack.c.l.bf16 %v242_v0  ;;  %v288_v19 = vld [vmem:[#allocation8 + $0xa8] sm:$0xff] }
  0x9a   :  { %3920 = vmatpush3.msra.mxu1 %v308_v38  ;;  %3883 = vmatprep.subr.mxu0 %v291_v44  ;;  %v839_v11 = vmul.f32 %v4519_v1, %v4519_v1  ;;  %v273_v12 = vld [vmem:[#allocation8 + $0x30] sm:$0xff]  ;;  %v258_v14 = vld [vmem:[#allocation6 + $0x18] sm:$0xff]  ;;  %v840_v16 = vmul.f32 %v4521_v6, %v4521_v6  ;;  %v841_v17 = vmul.f32 %v4523_v7, %v4523_v7  ;;  %v4539_v22 = vunpack.c.h.bf16 %v242_v0  ;;  %v320_v28 = vld [vmem:[#allocation8 + $0x1a8] sm:$0xff] }
  0x9b   :  { %3921 = vmatprep.subr.mxu1 %v323_v45  ;;  %v899_v2 = vadd.f32 %v898_v55, %v892_v37  ;;  %3884 = vmatpush3.msra.mxu0 %v275_v52  ;;  %v846_v10 = vadd.f32 %v845_v62, %v835_v56  ;;  %v257_v13 = vld [vmem:[#allocation6 + $0x10] sm:$0xff]  ;;  %v842_v23 = vmul.f32 %v4525_v8, %v4525_v8  ;;  %v272_v29 = vld [vmem:[#allocation8 + $0x28] sm:$0xff]  ;;  %v4545_v33 = vunpack.c.l.bf16 %v258_v14  ;;  %v287_v36 = vld [vmem:[#allocation8 + $0xa0] sm:$0xff] }
  0x9c   :  { %3922 = vmatpush3.msra.mxu1 %v307_v53  ;;  %3885 = vmatprep.subr.mxu0 %v290_v54  ;;  %v305_v18 = vld [vmem:[#allocation8 + $0x130] sm:$0xff]  ;;  %v4537_v20 = vunpack.c.l.bf16 %v257_v13  ;;  %v4543_v30 = vunpack.c.h.bf16 %v257_v13  ;;  %v852_v31 = vadd.f32 %v840_v16, %v839_v11  ;;  %v304_v32 = vld [vmem:[#allocation8 + $0x128] sm:$0xff]  ;;  %v4547_v34 = vunpack.c.h.bf16 %v258_v14  ;;  %v319_v39 = vld [vmem:[#allocation8 + $0x1a0] sm:$0xff] }
  0x9d   :  { %3923 = vmatprep.subr.mxu1 %v322_v57  ;;  %900 = vadd.xlane.f32.xlu1 %v899_v2  ;;  %v847_v21 = vadd.f32 %v846_v10, %v836_v60  ;;  %v271_v40 = vld [vmem:[#allocation8 + $0x20] sm:$0xff]  ;;  %v843_v43 = vmul.f32 %v4531_v15, %v4531_v15  ;;  %v895_v45 = vmul.f32 %v4545_v33, %v4545_v33  ;;  %v286_v54 = vld [vmem:[#allocation8 + $0x98] sm:$0xff]  ;;  %v317_v62 = vld [vmem:[#allocation8 + $0x190] sm:$0xff] }
  0x9e   :  { %3886 = vmatpush3.msra.mxu0 %v274_v63  ;;  %3924 = vmatpush3.msra.mxu1 %v306_v3  ;;  %v893_v35 = vmul.f32 %v4537_v20, %v4537_v20  ;;  %v894_v38 = vmul.f32 %v4543_v30, %v4543_v30  ;;  %v853_v44 = vadd.f32 %v852_v31, %v841_v17  ;;  %v303_v50 = vld [vmem:[#allocation8 + $0x120] sm:$0xff]  ;;  %v318_v55 = vld [vmem:[#allocation8 + $0x198] sm:$0xff]  ;;  %v269_v0 = vld [vmem:[#allocation8 + $0x10] sm:$0xff] }
  0x9f   :  { %3887 = vmatprep.subr.mxu0 %v289_v4  ;;  %3925 = vmatprep.subr.mxu1 %v321_v5  ;;  %v848_v37 = vadd.f32 %v847_v21, %v837_v61  ;;  %v896_v52 = vmul.f32 %v4547_v34, %v4547_v34  ;;  %v844_v56 = vmul.f32 %v4539_v22, %v4539_v22  ;;  %v270_v58 = vld [vmem:[#allocation8 + $0x18] sm:$0xff]  ;;  %v285_v61 = vld [vmem:[#allocation8 + $0x90] sm:$0xff]  ;;  %v218_v4 = vld [vmem:[#allocation3 + $0x30] sm:$0xff] }
  0xa0   :  { %3888 = vmatpush3.msra.mxu0 %v273_v12  ;;  %3926 = vmatpush3.msra.mxu1 %v305_v18  ;;  %v902_v53 = vadd.f32 %v894_v38, %v893_v35  ;;  %v854_v57 = vadd.f32 %v853_v44, %v842_v23  ;;  %v302_v59 = vld [vmem:[#allocation8 + $0x118] sm:$0xff]  ;;  %v301_v3 = vld [vmem:[#allocation8 + $0x110] sm:$0xff]  ;;  %v316_v10 = vld [vmem:[#allocation8 + $0x188] sm:$0xff]  ;;  %v225_v17 = vunpack.c.h.bf16 %v218_v4  ;;  %v224_v21 = vunpack.c.l.bf16 %v218_v4 }
  0xa1   :  { %3889 = vmatprep.subr.mxu0 %v288_v19  ;;  %3927 = vmatprep.subr.mxu1 %v320_v28  ;;  %v849_v51 = vadd.f32 %v848_v37, %v838_v9  ;;  %v284_v9 = vld [vmem:[#allocation8 + $0x88] sm:$0xff]  ;;  %v283_v14 = vld [vmem:[#allocation8 + $0x80] sm:$0xff]  ;;  %v345_v44 = vld [vmem:[#allocation8 + $0x270] sm:$0xff] }
  0xa2   :  { %3890 = vmatpush3.msra.mxu0 %v272_v29  ;;  %3928 = vmatpush3.msra.mxu1 %v304_v32  ;;  %v903_v60 = vadd.f32 %v902_v53, %v895_v45  ;;  %v855_v63 = vadd.f32 %v854_v57, %v843_v43  ;;  %v219_v11 = vld [vmem:[#allocation3 + $0x38] sm:$0xff]  ;;  %v315_v16 = vld [vmem:[#allocation8 + $0x180] sm:$0xff]  ;;  %v221_v29 = vld [vmem:[#allocation3 + $0x48] sm:$0xff] }
  0xa3   :  { %3891 = vmatprep.subr.mxu0 %v287_v36  ;;  %3929 = vmatprep.subr.mxu1 %v319_v39  ;;  %v268_v12 = vld [vmem:[#allocation8 + $0x8] sm:$0xff]  ;;  %v267_v18 = vld [vmem:[#allocation8] sm:$0xff]  ;;  %v227_v19 = vunpack.c.h.bf16 %v219_v11  ;;  %v226_v28 = vunpack.c.l.bf16 %v219_v11  ;;  %v362_v32 = vld [vmem:[#allocation8 + $0x2f8] sm:$0xff]  ;;  %v231_v38 = vunpack.c.h.bf16 %v221_v29  ;;  %v230_v45 = vunpack.c.l.bf16 %v221_v29 }
  0xa4   :  { %3892 = vmatpush3.msra.mxu0 %v271_v40  ;;  %850 = vadd.xlane.f32.xlu0 %v849_v51  ;;  %v904_v2 = vadd.f32 %v903_v60, %v896_v52  ;;  %v856_v5 = vadd.f32 %v855_v63, %v844_v56  ;;  %v300_v13 = vld [vmem:[#allocation8 + $0x108] sm:$0xff]  ;;  %v299_v23 = vld [vmem:[#allocation8 + $0x100] sm:$0xff]  ;;  %v346_v36 = vld [vmem:[#allocation8 + $0x278] sm:$0xff] }
  0xa5   :  { %3930 = vmatpush3.msra.mxu1 %v303_v50  ;;  %3893 = vmatprep.subr.mxu0 %v286_v54  ;;  %v222_v31 = vld [vmem:[#allocation3 + $0x50] sm:$0xff]  ;;  %v596_v35 = vld [vmem:[#allocation11 + $0x8] sm:$0xff] }
  0xa6   :  { %3931 = vmatprep.subr.mxu1 %v318_v55  ;;  %3894 = vmatpush3.msra.mxu0 %v270_v58  ;;  %v595_v37 = vld [vmem:[#allocation11] sm:$0xff]  ;;  %v199_v39 = vld [vmem:[#allocation3] sm:$0xff]  ;;  %v233_v43 = vunpack.c.h.bf16 %v222_v31  ;;  %v232_v50 = vunpack.c.l.bf16 %v222_v31  ;;  %v598_v54 = vld [vmem:[#allocation11 + $0x18] sm:$0xff] }
  0xa7   :  { %3932 = vmatpush3.msra.mxu1 %v302_v59  ;;  %3895 = vmatprep.subr.mxu0 %v285_v61  ;;  %v361_v40 = vld [vmem:[#allocation8 + $0x2f0] sm:$0xff]  ;;  %v206_v51 = vunpack.c.h.bf16 %v199_v39  ;;  %v360_v52 = vld [vmem:[#allocation8 + $0x2e8] sm:$0xff]  ;;  %v359_v57 = vld [vmem:[#allocation8 + $0x2e0] sm:$0xff]  ;;  %v205_v58 = vunpack.c.l.bf16 %v199_v39 }
  0xa8   :  { %3933 = vmatprep.subr.mxu1 %v317_v62  ;;  %905 = vadd.xlane.f32.xlu1 %v904_v2  ;;  %v344_v53 = vld [vmem:[#allocation8 + $0x268] sm:$0xff]  ;;  %v4561_v56 = vld [vmem:[#allocation3 + $0x40] sm:$0xff]  ;;  %v343_v60 = vld [vmem:[#allocation8 + $0x260] sm:$0xff] }
  0xa9   :  { %3896 = vmatpush3.msra.mxu0 %v269_v0  ;;  %857 = vadd.xlane.f32.xlu0 %v856_v5  ;;  %v202_v55 = vld [vmem:[#allocation3 + $0x18] sm:$0xff]  ;;  %v229_v59 = vunpack.c.h.bf16 %v4561_v56  ;;  %v358_v61 = vld [vmem:[#allocation8 + $0x2d8] sm:$0xff]  ;;  %v353_v29 = vld [vmem:[#allocation8 + $0x2b0] sm:$0xff] }
  0xaa   :  { %3934 = vmatpush3.msra.mxu1 %v301_v3  ;;  %3897 = vmatprep.subr.mxu0 %v284_v9  ;;  %v597_v62 = vld [vmem:[#allocation11 + $0x10] sm:$0xff]  ;;  %v212_v63 = vunpack.c.h.bf16 %v202_v55  ;;  %v211_v4 = vunpack.c.l.bf16 %v202_v55  ;;  %v600_v5 = vld [vmem:[#allocation11 + $0x28] sm:$0xff]  ;;  %v1110_v55 = vld [vmem:[#allocation14 + $0x1c8] sm:$0xff] }
  0xab   :  { %3935 = vmatprep.subr.mxu1 %v316_v10  ;;  %3898 = vmatpush3.msra.mxu0 %v268_v12  ;;  %v200_v0 = vld [vmem:[#allocation3 + $0x8] sm:$0xff]  ;;  %v357_v3 = vld [vmem:[#allocation8 + $0x2d0] sm:$0xff]  ;;  %v356_v11 = vld [vmem:[#allocation8 + $0x2c8] sm:$0xff] }
  0xac   :  { %3936 = vmatpush3.msra.mxu1 %v300_v13  ;;  %3899 = vmatprep.subr.mxu0 %v283_v14  ;;  %v342_v2 = vld [vmem:[#allocation8 + $0x258] sm:$0xff]  ;;  %v341_v9 = vld [vmem:[#allocation8 + $0x250] sm:$0xff]  ;;  %v208_v10 = vunpack.c.h.bf16 %v200_v0  ;;  %v340_v12 = vld [vmem:[#allocation8 + $0x248] sm:$0xff] }
  0xad   :  { %3937 = vmatprep.subr.mxu1 %v315_v16  ;;  %3900 = vmatpush3.msra.mxu0 %v267_v18  ;;  %v203_v13 = vld [vmem:[#allocation3 + $0x20] sm:$0xff]  ;;  %v355_v14 = vld [vmem:[#allocation8 + $0x2c0] sm:$0xff]  ;;  %v207_v16 = vunpack.c.l.bf16 %v200_v0  ;;  %v354_v18 = vld [vmem:[#allocation8 + $0x2b8] sm:$0xff] }
  0xae   :  { %434 = vmatprep.mubr.f32.mxu0 %v225_v17  ;;  %3938 = vmatpush3.msra.mxu1 %v299_v23  ;;  %v339_v17 = vld [vmem:[#allocation8 + $0x240] sm:$0xff]  ;;  %v213_v31 = vunpack.c.l.bf16 %v203_v13  ;;  %v336_v39 = vld [vmem:[#allocation8 + $0x228] sm:$0xff]  ;;  %v1105_v0 = vld [vmem:[#allocation14 + $0x1a0] sm:$0xff] }
  0xaf   :  { %509 = vmatprep.mubr.f32.mxu1 %v227_v19  ;;  %435 = vmatmul.mubr.f32.vlgmr.msra.gmra.mxu0 %v224_v21  ;;  %v599_v19 = vld [vmem:[#allocation11 + $0x20] sm:$0xff]  ;;  %v214_v21 = vunpack.c.h.bf16 %v203_v13 }
  0xb0   :  { %510 = vmatmul.mubr.f32.vlgmr.msra.gmra.mxu1 %v226_v28  ;;  %3945 = vmatprep.subr.mxu0 %v362_v32  ;;  %v201_v23 = vld [vmem:[#allocation3 + $0x10] sm:$0xff]  ;;  %v338_v28 = vld [vmem:[#allocation8 + $0x238] sm:$0xff] }
  0xb1   :  { %638 = vmatprep.subr.mxu1 %v596_v35  ;;  %3946 = vmatpush3.msra.mxu0 %v346_v36  ;;  %v1114_v32 = vld [vmem:[#allocation14 + $0x1e8] sm:$0xff]  ;;  %v337_v35 = vld [vmem:[#allocation8 + $0x230] sm:$0xff]  ;;  %v210_v36 = vunpack.c.h.bf16 %v201_v23 }
  0xb2   :  { %639 = vmatpush1.xpose.msra.mxu1 %v595_v37  ;;  %3947 = vmatprep.subr.mxu0 %v361_v40  ;;  %v352_v37 = vld [vmem:[#allocation8 + $0x2a8] sm:$0xff]  ;;  %v351_v40 = vld [vmem:[#allocation8 + $0x2a0] sm:$0xff] }
  0xb3   :  { %439 = vmatprep.mubr.f32.mxu0 %v231_v38  ;;  %514 = vmatprep.mubr.f32.mxu1 %v233_v43  ;;  %v204_v38 = vld [vmem:[#allocation3 + $0x28] sm:$0xff]  ;;  %v209_v43 = vunpack.c.l.bf16 %v201_v23 }
  0xb4   :  { %3948 = vmatpush3.msra.mxu0 %v345_v44  ;;  %515 = vmatmul.mubr.f32.gmra.mxu1 %v232_v50  ;;  %v335_v44 = vld [vmem:[#allocation8 + $0x220] sm:$0xff]  ;;  %v350_v50 = vld [vmem:[#allocation8 + $0x298] sm:$0xff] }
  0xb5   :  { %440 = vmatmul.mubr.f32.gmra.mxu0 %v230_v45  ;;  %3949 = vmatprep.subr.mxu0 %v360_v52  ;;  %v216_v45 = vunpack.c.h.bf16 %v204_v38  ;;  %v1113_v52 = vld [vmem:[#allocation14 + $0x1e0] sm:$0xff] }
  0xb6   :  { %672 = vmatprep.mubr.f32.mxu1 %v206_v51  ;;  %3950 = vmatpush3.msra.mxu0 %v344_v53  ;;  %v334_v51 = vld [vmem:[#allocation8 + $0x218] sm:$0xff]  ;;  %v349_v53 = vld [vmem:[#allocation8 + $0x290] sm:$0xff] }
  0xb7   :  { %713 = vmatprep.subr.mxu1 %v598_v54  ;;  %3951 = vmatprep.subr.mxu0 %v359_v57  ;;  %v215_v54 = vunpack.c.l.bf16 %v204_v38  ;;  %v333_v57 = vld [vmem:[#allocation8 + $0x210] sm:$0xff] }
  0xb8   :  { %584 = vmatprep.mubr.f32.mxu0 %v229_v59  ;;  %3952 = vmatpush3.msra.mxu0 %v343_v60  ;;  %v1109_v59 = vld [vmem:[#allocation14 + $0x1c0] sm:$0xff]  ;;  %v332_v60 = vld [vmem:[#allocation8 + $0x208] sm:$0xff] }
  0xb9   :  { %673 = vmatmul.mubr.f32.vlgmr.msra.gmra.mxu1 %v205_v58  ;;  %3953 = vmatprep.subr.mxu0 %v358_v61  ;;  %v348_v58 = vld [vmem:[#allocation8 + $0x288] sm:$0xff]  ;;  %v1229_v23 = vld [vmem:[#allocation14 + $0x580] sm:$0xff] }
  0xba   :  { %714 = vmatpush1.xpose.msra.mxu1 %v597_v62  ;;  %3954 = vmatpush3.msra.mxu0 %v342_v2  ;;  %v223_v61 = vld [vmem:[#allocation3 + $0x58] sm:$0xff]  ;;  %v1106_v62 = vld [vmem:[#allocation14 + $0x1a8] sm:$0xff]  ;;  %v1221_v38 = vld [vmem:[#allocation14 + $0x540] sm:$0xff] }
  0xbb   :  { %677 = vmatprep.mubr.f32.mxu1 %v212_v63  ;;  %3955 = vmatprep.subr.mxu0 %v357_v3  ;;  %v347_v63 = vld [vmem:[#allocation8 + $0x280] sm:$0xff]  ;;  %v228_v3 = vunpack.c.l.bf16 %v4561_v56  ;;  %v234_v13 = vunpack.c.l.bf16 %v223_v61 }
  0xbc   :  { %788 = vmatprep.subr.mxu1 %v600_v5  ;;  %3956 = vmatpush3.msra.mxu0 %v341_v9  ;;  %v331_v2 = vld [vmem:[#allocation8 + $0x200] sm:$0xff]  ;;  %v235_v5 = vunpack.c.h.bf16 %v223_v61  ;;  %v1205_v61 = vld [vmem:[#allocation14 + $0x4c0] sm:$0xff] }
  0xbd   :  { %678 = vmatmul.mubr.f32.gmra.mxu1 %v211_v4  ;;  %3957 = vmatprep.subr.mxu0 %v356_v11  ;;  %v1102_v4 = vld [vmem:[#allocation14 + $0x188] sm:$0xff] }
  0xbe   :  { %747 = vmatprep.mubr.f32.mxu1 %v208_v10  ;;  %3958 = vmatpush3.msra.mxu0 %v340_v12  ;;  %v1242_v9 = vld [vmem:[#allocation14 + $0x5e8] sm:$0xff]  ;;  %v1241_v10 = vld [vmem:[#allocation14 + $0x5e0] sm:$0xff] }
  0xbf   :  { %3959 = vmatprep.subr.mxu0 %v355_v14  ;;  %v1238_v11 = vld [vmem:[#allocation14 + $0x5c8] sm:$0xff]  ;;  %v1101_v12 = vld [vmem:[#allocation14 + $0x180] sm:$0xff] }
  0xc0   :  { %3960 = vmatpush3.msra.mxu0 %v339_v17  ;;  %v1237_v14 = vld [vmem:[#allocation14 + $0x5c0] sm:$0xff]  ;;  %v1234_v56 = vld [vmem:[#allocation14 + $0x5a8] sm:$0xff] }
  0xc1   :  { %748 = vmatmul.mubr.f32.vlgmr.msra.gmra.mxu1 %v207_v16  ;;  %3961 = vmatprep.subr.mxu0 %v354_v18  ;;  %v1098_v16 = vld [vmem:[#allocation14 + $0x168] sm:$0xff]  ;;  %v1233_v17 = vld [vmem:[#allocation14 + $0x5a0] sm:$0xff] }
  0xc2   :  { %789 = vmatpush1.xpose.msra.mxu1 %v599_v19  ;;  %3962 = vmatpush3.msra.mxu0 %v338_v28  ;;  %v1097_v18 = vld [vmem:[#allocation14 + $0x160] sm:$0xff]  ;;  %v1230_v19 = vld [vmem:[#allocation14 + $0x588] sm:$0xff] }
  0xc3   :  { %752 = vmatprep.mubr.f32.mxu1 %v214_v21  ;;  %3963 = vmatprep.subr.mxu0 %v353_v29  ;;  %v1094_v21 = vld [vmem:[#allocation14 + $0x148] sm:$0xff]  ;;  %v1093_v28 = vld [vmem:[#allocation14 + $0x140] sm:$0xff] }
  0xc4   :  { %1331 = vmatprep.subr.mxu1 %v1114_v32  ;;  %3964 = vmatpush3.msra.mxu0 %v337_v35  ;;  %v1226_v29 = vld [vmem:[#allocation14 + $0x568] sm:$0xff]  ;;  %v1225_v32 = vld [vmem:[#allocation14 + $0x560] sm:$0xff] }
  0xc5   :  { %753 = vmatmul.mubr.f32.gmra.mxu1 %v213_v31  ;;  %3965 = vmatprep.subr.mxu0 %v352_v37  ;;  %v1090_v31 = vld [vmem:[#allocation14 + $0x128] sm:$0xff]  ;;  %v1089_v35 = vld [vmem:[#allocation14 + $0x120] sm:$0xff] }
  0xc6   :  { %822 = vmatprep.mubr.f32.mxu1 %v210_v36  ;;  %3966 = vmatpush3.msra.mxu0 %v336_v39  ;;  %v1222_v36 = vld [vmem:[#allocation14 + $0x548] sm:$0xff]  ;;  %v1085_v39 = vld [vmem:[#allocation14 + $0x100] sm:$0xff] }
  0xc7   :  { %3967 = vmatprep.subr.mxu0 %v351_v40  ;;  %v1086_v37 = vld [vmem:[#allocation14 + $0x108] sm:$0xff] }
  0xc8   :  { %3968 = vmatpush3.msra.mxu0 %v335_v44  ;;  %v1218_v40 = vld [vmem:[#allocation14 + $0x528] sm:$0xff]  ;;  %v1217_v44 = vld [vmem:[#allocation14 + $0x520] sm:$0xff] }
  0xc9   :  { %823 = vmatmul.mubr.f32.vlgmr.msra.gmra.mxu1 %v209_v43  ;;  %3969 = vmatprep.subr.mxu0 %v350_v50  ;;  %v1082_v43 = vld [vmem:[#allocation14 + $0xe8] sm:$0xff] }
  0xca   :  { %827 = vmatprep.mubr.f32.mxu1 %v216_v45  ;;  %3970 = vmatpush3.msra.mxu0 %v334_v51  ;;  %v1081_v45 = vld [vmem:[#allocation14 + $0xe0] sm:$0xff]  ;;  %v1214_v50 = vld [vmem:[#allocation14 + $0x508] sm:$0xff] }
  0xcb   :  { %1332 = vmatpush1.msra.mxu1 %v1113_v52  ;;  %3971 = vmatprep.subr.mxu0 %v349_v53  ;;  %v1078_v51 = vld [vmem:[#allocation14 + $0xc8] sm:$0xff]  ;;  %v1213_v52 = vld [vmem:[#allocation14 + $0x500] sm:$0xff] }
  0xcc   :  { %1333 = vmatprep.subr.mxu1 %v1110_v55  ;;  %3972 = vmatpush3.msra.mxu0 %v333_v57  ;;  %v1077_v53 = vld [vmem:[#allocation14 + $0xc0] sm:$0xff]  ;;  %v1074_v55 = vld [vmem:[#allocation14 + $0xa8] sm:$0xff] }
  0xcd   :  { %828 = vmatmul.mubr.f32.gmra.mxu1 %v215_v54  ;;  %3973 = vmatprep.subr.mxu0 %v348_v58  ;;  %v1210_v54 = vld [vmem:[#allocation14 + $0x4e8] sm:$0xff]  ;;  %v1209_v57 = vld [vmem:[#allocation14 + $0x4e0] sm:$0xff] }
  0xce   :  { %1334 = vmatpush1.msra.mxu1 %v1109_v59  ;;  %3974 = vmatpush3.msra.mxu0 %v332_v60  ;;  %v1073_v58 = vld [vmem:[#allocation14 + $0xa0] sm:$0xff]  ;;  %v1206_v59 = vld [vmem:[#allocation14 + $0x4c8] sm:$0xff] }
  0xcf   :  { %1335 = vmatprep.subr.mxu1 %v1106_v62  ;;  %3975 = vmatprep.subr.mxu0 %v347_v63  ;;  %v1070_v60 = vld [vmem:[#allocation14 + $0x88] sm:$0xff]  ;;  %v1069_v62 = vld [vmem:[#allocation14 + $0x80] sm:$0xff] }
  0xd0   :  { %1336 = vmatpush1.msra.mxu1 %v1105_v0  ;;  %3976 = vmatpush3.msra.mxu0 %v331_v2  ;;  %v1202_v63 = vld [vmem:[#allocation14 + $0x4a8] sm:$0xff]  ;;  %v1201_v2 = vld [vmem:[#allocation14 + $0x4a0] sm:$0xff] }
  0xd1   :  { %1337 = vmatprep.subr.mxu1 %v1102_v4  ;;  %585 = vmatmul.mubr.f32.vlgmr.msra.gmra.mxu0 %v228_v3  ;;  %v1066_v0 = vld [vmem:[#allocation14 + $0x68] sm:$0xff]  ;;  %v1065_v3 = vld [vmem:[#allocation14 + $0x60] sm:$0xff] }
  0xd2   :  { %1408 = vmatprep.subr.mxu0 %v1242_v9  ;;  %589 = vmatprep.mubr.f32.mxu0 %v235_v5  ;;  %v1198_v4 = vld [vmem:[#allocation14 + $0x488] sm:$0xff]  ;;  %v1197_v9 = vld [vmem:[#allocation14 + $0x480] sm:$0xff] }
  0xd3   :  { %1409 = vmatpush1.msra.mxu0 %v1241_v10  ;;  %1338 = vmatpush1.msra.mxu1 %v1101_v12  ;;  %v1062_v5 = vld [vmem:[#allocation14 + $0x48] sm:$0xff]  ;;  %v1061_v10 = vld [vmem:[#allocation14 + $0x40] sm:$0xff] }
  0xd4   :  { %1410 = vmatprep.subr.mxu0 %v1238_v11  ;;  %1339 = vmatprep.subr.mxu1 %v1098_v16  ;;  %v1194_v11 = vld [vmem:[#allocation14 + $0x468] sm:$0xff] }
  0xd5   :  { %1411 = vmatpush1.msra.mxu0 %v1237_v14  ;;  %1340 = vmatpush1.msra.mxu1 %v1097_v18  ;;  %v1058_v12 = vld [vmem:[#allocation14 + $0x28] sm:$0xff]  ;;  %v1057_v14 = vld [vmem:[#allocation14 + $0x20] sm:$0xff] }
  0xd6   :  { %590 = vmatmul.mubr.f32.gmra.mxu0 %v234_v13  ;;  %1412 = vmatprep.subr.mxu0 %v1234_v56  ;;  %v1193_v13 = vld [vmem:[#allocation14 + $0x460] sm:$0xff]  ;;  %v1190_v16 = vld [vmem:[#allocation14 + $0x448] sm:$0xff] }
  0xd7   :  { %1413 = vmatpush1.msra.mxu0 %v1233_v17  ;;  %1341 = vmatprep.subr.mxu1 %v1094_v21  ;;  %v1054_v56 = vld [vmem:[#allocation14 + $0x8] sm:$0xff]  ;;  %v1189_v17 = vld [vmem:[#allocation14 + $0x440] sm:$0xff] }
  0xd8   :  { %1414 = vmatprep.subr.mxu0 %v1230_v19  ;;  %1342 = vmatpush1.msra.mxu1 %v1093_v28  ;;  %v1053_v18 = vld [vmem:[#allocation14] sm:$0xff]  ;;  %v1186_v19 = vld [vmem:[#allocation14 + $0x428] sm:$0xff] }
  0xd9   :  { %1415 = vmatpush1.msra.mxu0 %v1229_v23  ;;  %1343 = vmatprep.subr.mxu1 %v1090_v31  ;;  %v1178_v21 = vld [vmem:[#allocation14 + $0x3e8] sm:$0xff]  ;;  %v1185_v23 = vld [vmem:[#allocation14 + $0x420] sm:$0xff] }
  0xda   :  { %1416 = vmatprep.subr.mxu0 %v1226_v29  ;;  %1344 = vmatpush1.msra.mxu1 %v1089_v35  ;;  %v1177_v28 = vld [vmem:[#allocation14 + $0x3e0] sm:$0xff]  ;;  %v1182_v29 = vld [vmem:[#allocation14 + $0x408] sm:$0xff] }
  0xdb   :  { %1417 = vmatpush1.msra.mxu0 %v1225_v32  ;;  %1345 = vmatprep.subr.mxu1 %v1086_v37  ;;  %v1174_v31 = vld [vmem:[#allocation14 + $0x3c8] sm:$0xff]  ;;  %v1181_v32 = vld [vmem:[#allocation14 + $0x400] sm:$0xff] }
  0xdc   :  { %1418 = vmatprep.subr.mxu0 %v1222_v36  ;;  %1346 = vmatpush1.msra.mxu1 %v1085_v39  ;;  %v1173_v35 = vld [vmem:[#allocation14 + $0x3c0] sm:$0xff]  ;;  %v1306_v36 = vld [vmem:[#allocation14 + $0x7e8] sm:$0xff] }
  0xdd   :  { %1419 = vmatpush1.msra.mxu0 %v1221_v38  ;;  %1347 = vmatprep.subr.mxu1 %v1082_v43  ;;  %v1170_v37 = vld [vmem:[#allocation14 + $0x3a8] sm:$0xff]  ;;  %v1305_v38 = vld [vmem:[#allocation14 + $0x7e0] sm:$0xff] }
  0xde   :  { %1420 = vmatprep.subr.mxu0 %v1218_v40  ;;  %1348 = vmatpush1.msra.mxu1 %v1081_v45  ;;  %v1169_v39 = vld [vmem:[#allocation14 + $0x3a0] sm:$0xff]  ;;  %v1302_v40 = vld [vmem:[#allocation14 + $0x7c8] sm:$0xff] }
  0xdf   :  { %1421 = vmatpush1.msra.mxu0 %v1217_v44  ;;  %1349 = vmatprep.subr.mxu1 %v1078_v51  ;;  %v1166_v43 = vld [vmem:[#allocation14 + $0x388] sm:$0xff]  ;;  %v1301_v44 = vld [vmem:[#allocation14 + $0x7c0] sm:$0xff] }
  0xe0   :  { %1422 = vmatprep.subr.mxu0 %v1214_v50  ;;  %1350 = vmatpush1.msra.mxu1 %v1077_v53  ;;  %v1165_v45 = vld [vmem:[#allocation14 + $0x380] sm:$0xff]  ;;  %v1298_v50 = vld [vmem:[#allocation14 + $0x7a8] sm:$0xff] }
  0xe1   :  { %1423 = vmatpush1.msra.mxu0 %v1213_v52  ;;  %1351 = vmatprep.subr.mxu1 %v1074_v55  ;;  %v1162_v51 = vld [vmem:[#allocation14 + $0x368] sm:$0xff]  ;;  %v1297_v52 = vld [vmem:[#allocation14 + $0x7a0] sm:$0xff] }
  0xe2   :  { %1424 = vmatprep.subr.mxu0 %v1210_v54  ;;  %1352 = vmatpush1.msra.mxu1 %v1073_v58  ;;  %v1161_v53 = vld [vmem:[#allocation14 + $0x360] sm:$0xff]  ;;  %v1294_v54 = vld [vmem:[#allocation14 + $0x788] sm:$0xff] }
  0xe3   :  { %1425 = vmatpush1.msra.mxu0 %v1209_v57  ;;  %1353 = vmatprep.subr.mxu1 %v1070_v60  ;;  %v1158_v55 = vld [vmem:[#allocation14 + $0x348] sm:$0xff]  ;;  %v1293_v57 = vld [vmem:[#allocation14 + $0x780] sm:$0xff] }
  0xe4   :  { %1426 = vmatprep.subr.mxu0 %v1206_v59  ;;  %1354 = vmatpush1.msra.mxu1 %v1069_v62  ;;  %v1157_v58 = vld [vmem:[#allocation14 + $0x340] sm:$0xff]  ;;  %v1290_v59 = vld [vmem:[#allocation14 + $0x768] sm:$0xff] }
  0xe5   :  { %1427 = vmatpush1.msra.mxu0 %v1205_v61  ;;  %1355 = vmatprep.subr.mxu1 %v1066_v0  ;;  %v1154_v60 = vld [vmem:[#allocation14 + $0x328] sm:$0xff]  ;;  %v1289_v61 = vld [vmem:[#allocation14 + $0x760] sm:$0xff] }
  0xe6   :  { %1428 = vmatprep.subr.mxu0 %v1202_v63  ;;  %1356 = vmatpush1.msra.mxu1 %v1065_v3  ;;  %v1153_v62 = vld [vmem:[#allocation14 + $0x320] sm:$0xff]  ;;  %v1286_v63 = vld [vmem:[#allocation14 + $0x748] sm:$0xff] }
  0xe7   :  { %1429 = vmatpush1.msra.mxu0 %v1201_v2  ;;  %1357 = vmatprep.subr.mxu1 %v1062_v5  ;;  %v1150_v0 = vld [vmem:[#allocation14 + $0x308] sm:$0xff]  ;;  %v1285_v2 = vld [vmem:[#allocation14 + $0x740] sm:$0xff] }
  0xe8   :  { %1430 = vmatprep.subr.mxu0 %v1198_v4  ;;  %1358 = vmatpush1.msra.mxu1 %v1061_v10  ;;  %v1149_v3 = vld [vmem:[#allocation14 + $0x300] sm:$0xff]  ;;  %v1282_v4 = vld [vmem:[#allocation14 + $0x728] sm:$0xff] }
  0xe9   :  { %1431 = vmatpush1.msra.mxu0 %v1197_v9  ;;  %1359 = vmatprep.subr.mxu1 %v1058_v12  ;;  %v1146_v5 = vld [vmem:[#allocation14 + $0x2e8] sm:$0xff]  ;;  %v1281_v9 = vld [vmem:[#allocation14 + $0x720] sm:$0xff] }
  0xea   :  { %1432 = vmatprep.subr.mxu0 %v1194_v11  ;;  %1360 = vmatpush1.msra.mxu1 %v1057_v14  ;;  %v1145_v10 = vld [vmem:[#allocation14 + $0x2e0] sm:$0xff]  ;;  %v1278_v11 = vld [vmem:[#allocation14 + $0x708] sm:$0xff] }
  0xeb   :  { %1433 = vmatpush1.msra.mxu0 %v1193_v13  ;;  %1361 = vmatprep.subr.mxu1 %v1054_v56  ;;  %v1142_v12 = vld [vmem:[#allocation14 + $0x2c8] sm:$0xff]  ;;  %v1277_v13 = vld [vmem:[#allocation14 + $0x700] sm:$0xff] }
  0xec   :  { %1434 = vmatprep.subr.mxu0 %v1190_v16  ;;  %1362 = vmatpush1.msra.mxu1 %v1053_v18  ;;  %v1141_v14 = vld [vmem:[#allocation14 + $0x2c0] sm:$0xff]  ;;  %v1274_v16 = vld [vmem:[#allocation14 + $0x6e8] sm:$0xff] }
  0xed   :  { %1435 = vmatpush1.msra.mxu0 %v1189_v17  ;;  %1363 = vmatprep.subr.mxu1 %v1178_v21  ;;  %v1138_v56 = vld [vmem:[#allocation14 + $0x2a8] sm:$0xff]  ;;  %v1273_v17 = vld [vmem:[#allocation14 + $0x6e0] sm:$0xff] }
  0xee   :  { %1436 = vmatprep.subr.mxu0 %v1186_v19  ;;  %1364 = vmatpush2.msra.mxu1 %v1177_v28  ;;  %v1137_v18 = vld [vmem:[#allocation14 + $0x2a0] sm:$0xff]  ;;  %v1270_v19 = vld [vmem:[#allocation14 + $0x6c8] sm:$0xff] }
  0xef   :  { %1437 = vmatpush1.msra.mxu0 %v1185_v23  ;;  %1365 = vmatprep.subr.mxu1 %v1174_v31  ;;  %v1134_v21 = vld [vmem:[#allocation14 + $0x288] sm:$0xff]  ;;  %v1269_v23 = vld [vmem:[#allocation14 + $0x6c0] sm:$0xff] }
  0xf0   :  { %1438 = vmatprep.subr.mxu0 %v1182_v29  ;;  %1366 = vmatpush2.msra.mxu1 %v1173_v35  ;;  %v1133_v28 = vld [vmem:[#allocation14 + $0x280] sm:$0xff]  ;;  %v1266_v29 = vld [vmem:[#allocation14 + $0x6a8] sm:$0xff] }
  0xf1   :  { %1439 = vmatpush1.msra.mxu0 %v1181_v32  ;;  %1367 = vmatprep.subr.mxu1 %v1170_v37  ;;  %v1130_v31 = vld [vmem:[#allocation14 + $0x268] sm:$0xff]  ;;  %v1265_v32 = vld [vmem:[#allocation14 + $0x6a0] sm:$0xff] }
  0xf2   :  { %1440 = vmatprep.subr.mxu0 %v1306_v36  ;;  %1368 = vmatpush2.msra.mxu1 %v1169_v39  ;;  %v1129_v35 = vld [vmem:[#allocation14 + $0x260] sm:$0xff]  ;;  %v1262_v36 = vld [vmem:[#allocation14 + $0x688] sm:$0xff] }
  0xf3   :  { %1441 = vmatpush2.msra.mxu0 %v1305_v38  ;;  %1369 = vmatprep.subr.mxu1 %v1166_v43  ;;  %v1126_v37 = vld [vmem:[#allocation14 + $0x248] sm:$0xff]  ;;  %v1261_v38 = vld [vmem:[#allocation14 + $0x680] sm:$0xff] }
  0xf4   :  { %1442 = vmatprep.subr.mxu0 %v1302_v40  ;;  %1370 = vmatpush2.msra.mxu1 %v1165_v45  ;;  %v1125_v39 = vld [vmem:[#allocation14 + $0x240] sm:$0xff]  ;;  %v1258_v40 = vld [vmem:[#allocation14 + $0x668] sm:$0xff] }
  0xf5   :  { %1443 = vmatpush2.msra.mxu0 %v1301_v44  ;;  %1371 = vmatprep.subr.mxu1 %v1162_v51  ;;  %v1122_v43 = vld [vmem:[#allocation14 + $0x228] sm:$0xff]  ;;  %v1257_v44 = vld [vmem:[#allocation14 + $0x660] sm:$0xff] }
  0xf6   :  { %1444 = vmatprep.subr.mxu0 %v1298_v50  ;;  %1372 = vmatpush2.msra.mxu1 %v1161_v53  ;;  %v1121_v45 = vld [vmem:[#allocation14 + $0x220] sm:$0xff]  ;;  %v1254_v50 = vld [vmem:[#allocation14 + $0x648] sm:$0xff] }
  0xf7   :  { %1445 = vmatpush2.msra.mxu0 %v1297_v52  ;;  %1373 = vmatprep.subr.mxu1 %v1158_v55  ;;  %v1118_v51 = vld [vmem:[#allocation14 + $0x208] sm:$0xff]  ;;  %v1253_v52 = vld [vmem:[#allocation14 + $0x640] sm:$0xff]  ;;  %v1116_v55 = vld [vmem:[#allocation14 + $0x1f8] sm:$0xff] }
  0xf8   :  { %1446 = vmatprep.subr.mxu0 %v1294_v54  ;;  %1374 = vmatpush2.msra.mxu1 %v1157_v58  ;;  %v1117_v53 = vld [vmem:[#allocation14 + $0x200] sm:$0xff]  ;;  %v1250_v54 = vld [vmem:[#allocation14 + $0x628] sm:$0xff] }
  0xf9   :  { %1447 = vmatpush2.msra.mxu0 %v1293_v57  ;;  %1375 = vmatprep.subr.mxu1 %v1154_v60  ;;  %v1249_v57 = vld [vmem:[#allocation14 + $0x620] sm:$0xff]  ;;  %v1246_v58 = vld [vmem:[#allocation14 + $0x608] sm:$0xff]  ;;  %v1244_v60 = vld [vmem:[#allocation14 + $0x5f8] sm:$0xff] }
  0xfa   :  { %1448 = vmatprep.subr.mxu0 %v1290_v59  ;;  %1376 = vmatpush2.msra.mxu1 %v1153_v62  ;;  %v1245_v59 = vld [vmem:[#allocation14 + $0x600] sm:$0xff] }
  0xfb   :  { %1449 = vmatpush2.msra.mxu0 %v1289_v61  ;;  %1377 = vmatprep.subr.mxu1 %v1150_v0 }
  0xfc   :  { %1450 = vmatprep.subr.mxu0 %v1286_v63  ;;  %1378 = vmatpush2.msra.mxu1 %v1149_v3 }
  0xfd   :  { %1451 = vmatpush2.msra.mxu0 %v1285_v2  ;;  %1379 = vmatprep.subr.mxu1 %v1146_v5 }
  0xfe   :  { %1452 = vmatprep.subr.mxu0 %v1282_v4  ;;  %1380 = vmatpush2.msra.mxu1 %v1145_v10 }
  0xff   :  { %1453 = vmatpush2.msra.mxu0 %v1281_v9  ;;  %1381 = vmatprep.subr.mxu1 %v1142_v12 }
 0x100   :  { %1454 = vmatprep.subr.mxu0 %v1278_v11  ;;  %1382 = vmatpush2.msra.mxu1 %v1141_v14  ;;  %v935_v14 = vlaneseq }
 0x101   :  { %1455 = vmatpush2.msra.mxu0 %v1277_v13  ;;  %1383 = vmatprep.subr.mxu1 %v1138_v56 }
 0x102   :  { %1456 = vmatprep.subr.mxu0 %v1274_v16  ;;  %1384 = vmatpush2.msra.mxu1 %v1137_v18 }
 0x103   :  { %1457 = vmatpush2.msra.mxu0 %v1273_v17  ;;  %1385 = vmatprep.subr.mxu1 %v1134_v21 }
 0x104   :  { %1458 = vmatprep.subr.mxu0 %v1270_v19  ;;  %1386 = vmatpush2.msra.mxu1 %v1133_v28 }
 0x105   :  { %1459 = vmatpush2.msra.mxu0 %v1269_v23  ;;  %1387 = vmatprep.subr.mxu1 %v1130_v31  ;;  %v4566_v31 = vshrl.u32 %v935_v14, 7 }
 0x106   :  { %1460 = vmatprep.subr.mxu0 %v1266_v29  ;;  %1388 = vmatpush2.msra.mxu1 %v1129_v35 }
 0x107   :  { %1461 = vmatpush2.msra.mxu0 %v1265_v32  ;;  %1389 = vmatprep.subr.mxu1 %v1126_v37 }
 0x108   :  { %1462 = vmatprep.subr.mxu0 %v1262_v36  ;;  %1390 = vmatpush2.msra.mxu1 %v1125_v39  ;;  %v991_v39 = vld [vmem:[%s4917_s8] sm:$0xf] }
 0x109   :  { %1463 = vmatpush2.msra.mxu0 %v1261_v38  ;;  %1391 = vmatprep.subr.mxu1 %v1122_v43  ;;  %v4572_v43 = vsub.s32 0, %v4566_v31 }
 0x10a   :  { %1464 = vmatprep.subr.mxu0 %v1258_v40  ;;  %1392 = vmatpush2.msra.mxu1 %v1121_v45  ;;  %v4578_v45 = vsub.s32 2, %v4566_v31 }
 0x10b   :  { %1465 = vmatpush2.msra.mxu0 %v1257_v44  ;;  %1393 = vmatprep.subr.mxu1 %v1118_v51  ;;  %v4575_v44 = vsub.s32 1, %v4566_v31 }
 0x10c   :  { %1466 = vmatprep.subr.mxu0 %v1254_v50  ;;  %1394 = vmatpush2.msra.mxu1 %v1117_v53  ;;  %v4581_v50 = vrot.slane %v991_v39, %v4572_v43 }
 0x10d   :  { %1467 = vmatpush2.msra.mxu0 %v1253_v52  ;;  %1485 = vmatprep.subr.mxu1 %v1116_v55  ;;  %v4584_v51 = vrot.slane %v991_v39, %v4575_v44  ;;  %v4587_v52 = vrot.slane %v991_v39, %v4578_v45 }
 0x10e   :  { %1468 = vmatprep.subr.mxu0 %v1250_v54  ;;  %v4590_v54 = vsub.s32 3, %v4566_v31 }
 0x10f   :  { %1469 = vmatpush2.msra.mxu0 %v1249_v57 }
 0x110   :  { %1470 = vmatprep.subr.mxu0 %v1246_v58 }
 0x111   :  { %1471 = vmatpush2.msra.mxu0 %v1245_v59 }
 0x112   :  { %1562 = vmatprep.subr.mxu0 %v1244_v60  ;;  %v1115_v60 = vld [vmem:[#allocation14 + $0x1f0] sm:$0xff] }
 0x126   :  { %v901_v61 = vpop.xlane.xlu1 %900 }
 0x127   :  { %4022 = vrsqrt.f32 %v901_v61  ;;  %vm909_vm0 = vcmp.eq.f32.partialorder %v901_v61, inf  ;;  %v912_v3 = vand.u32 2147483648, %v901_v61  ;;  %vm911_vm1 = vcmp.eq.f32.partialorder %v901_v61, 0.0 }
 0x12d   :  { %v851_v62 = vpop.xlane.xlu0 %850 }
 0x12e   :  { %4024 = vrsqrt.f32 %v851_v62  ;;  %vm861_vm2 = vcmp.eq.f32.partialorder %v851_v62, inf  ;;  %v864_v12 = vand.u32 2147483648, %v851_v62  ;;  %vm863_vm3 = vcmp.eq.f32.partialorder %v851_v62, 0.0 }
 0x131   :  { %v906_v63 = vpop.xlane.xlu1 %905 }
 0x132   :  { %v858_v0 = vpop.xlane.xlu0 %857  ;;  %4026 = vrsqrt.f32 %v906_v63  ;;  %vm916_vm4 = vcmp.eq.f32.partialorder %v906_v63, inf  ;;  %vm918_vm5 = vcmp.eq.f32.partialorder %v906_v63, 0.0  ;;  %v919_v18 = vand.u32 2147483648, %v906_v63 }
 0x133   :  { %4028 = vrsqrt.f32 %v858_v0  ;;  %vm868_vm6 = vcmp.eq.f32.partialorder %v858_v0, inf  ;;  %v871_v23 = vand.u32 2147483648, %v858_v0  ;;  %vm870_vm7 = vcmp.eq.f32.partialorder %v858_v0, 0.0 }
 0x134   :  { %v4023_v2 = vpop.eup %4022 }
 0x135   :  { %v908_v4 = vmul.f32 %v4023_v2, %v901_v61  ;;  %v953_v2 = vsub.s32 4, %v4566_v31 }
 0x137   :  { %v910_v5 = vsel %vm909_vm0, %v901_v61, %v908_v4  ;;  %v1243_v61 = vld [vmem:[#allocation14 + $0x5f0] sm:$0xff]  ;;  %vm3839_vm0 = vcmp.lt.s32.totalorder %v935_v14, 512 }
 0x138   :  { %v913_v9 = vsel %vm911_vm1, %v912_v3, %v910_v5  ;;  %v1111_v3 = vld [vmem:[#allocation14 + $0x1d0] sm:$0xff]  ;;  %v1108_v5 = vld [vmem:[#allocation14 + $0x1b8] sm:$0xff] }
 0x139   :  { %v921_v10 = vmax.f32 %v913_v9, 1e-12  ;;  %v1239_v4 = vld [vmem:[#allocation14 + $0x5d0] sm:$0xff]  ;;  %v1236_v9 = vld [vmem:[#allocation14 + $0x5b8] sm:$0xff] }
 0x13b   :  { %v4025_v11 = vpop.eup %4024  ;;  %4030 = vrcp.f32 %v921_v10 }
 0x13c   :  { %v860_v13 = vmul.f32 %v4025_v11, %v851_v62 }
 0x13e   :  { %v862_v16 = vsel %vm861_vm2, %v851_v62, %v860_v13  ;;  %v4605_v62 = vrot.slane %v991_v39, %v4590_v54  ;;  %v1107_v13 = vld [vmem:[#allocation14 + $0x1b0] sm:$0xff] }
 0x13f   :  { %v4027_v56 = vpop.eup %4026  ;;  %v865_v17 = vsel %vm863_vm3, %v864_v12, %v862_v16  ;;  %v957_v12 = vsub.s32 5, %v4566_v31  ;;  %v1235_v16 = vld [vmem:[#allocation14 + $0x5b0] sm:$0xff] }
 0x140   :  { %v4029_v19 = vpop.eup %4028  ;;  %v873_v21 = vmax.f32 %v865_v17, 1e-12  ;;  %v915_v28 = vmul.f32 %v4027_v56, %v906_v63 }
 0x141   :  { %v867_v29 = vmul.f32 %v4029_v19, %v858_v0 }
 0x142   :  { %4032 = vrcp.f32 %v873_v21  ;;  %v917_v32 = vsel %vm916_vm4, %v906_v63, %v915_v28  ;;  %v933_v63 = vld [vmem:[%s4916_s7] sm:$0x3f] }
 0x143   :  { %v869_v35 = vsel %vm868_vm6, %v858_v0, %v867_v29  ;;  %v920_v36 = vsel %vm918_vm5, %v919_v18, %v917_v32  ;;  %v4622_v11 = vrot.slane %v933_v63, %v4572_v43  ;;  %v4626_v56 = vrot.slane %v933_v63, %v4575_v44  ;;  %v1104_v21 = vld [vmem:[#allocation14 + $0x198] sm:$0xff] }
 0x144   :  { %v872_v37 = vsel %vm870_vm7, %v871_v23, %v869_v35  ;;  %v922_v38 = vmax.f32 %v920_v36, 1e-12  ;;  %v4629_v17 = vrot.slane %v933_v63, %v4578_v45  ;;  %v4632_v18 = vrot.slane %v933_v63, %v4590_v54  ;;  %v1232_v23 = vld [vmem:[#allocation14 + $0x598] sm:$0xff]  ;;  %v1103_v35 = vld [vmem:[#allocation14 + $0x190] sm:$0xff] }
 0x145   :  { %v874_v40 = vmax.f32 %v872_v37, 1e-12  ;;  %v4636_v32 = vrot.slane %v933_v63, %v953_v2  ;;  %v1231_v36 = vld [vmem:[#allocation14 + $0x590] sm:$0xff]  ;;  %v1224_v2 = vld [vmem:[#allocation14 + $0x558] sm:$0xff] }
 0x146   :  { %4034 = vrcp.f32 %v922_v38 }
 0x147   :  { %4036 = vrcp.f32 %v874_v40  ;;  %v1100_v40 = vld [vmem:[#allocation14 + $0x178] sm:$0xff] }
 0x148   :  { %v4031_v53 = vpop.eup %4030 }
 0x149   :  { %v4593_v55 = vmul.f32 %v4031_v53, %v4483_v25  ;;  %v4596_v57 = vmul.f32 %v4031_v53, %v4487_v27  ;;  %v4599_v58 = vmul.f32 %v4031_v53, %v4481_v24  ;;  %v4602_v59 = vmul.f32 %v4031_v53, %v4485_v26  ;;  %v1112_v25 = vld [vmem:[#allocation14 + $0x1d8] sm:$0xff] }
 0x14a   :  { %v1240_v27 = vld [vmem:[#allocation14 + $0x5d8] sm:$0xff] }
 0x14b   :  { %1395 = vmatprep.mubr.f32.mxu1 %v4593_v55  ;;  %1472 = vmatprep.mubr.f32.mxu0 %v4596_v57  ;;  %v1013_v24 = vmul.f32 %v4581_v50, %v4599_v58  ;;  %v1014_v26 = vmul.f32 %v4584_v51, %v4593_v55  ;;  %v1015_v0 = vmul.f32 %v4587_v52, %v4602_v59  ;;  %v1228_v53 = vld [vmem:[#allocation14 + $0x578] sm:$0xff] }
 0x14c   :  { %1396 = vmatmul.mubr.f32.vlgmr.msra.gmra.mxu1 %v4599_v58  ;;  %1473 = vmatmul.mubr.f32.vlgmr.msra.gmra.mxu0 %v4602_v59  ;;  %v1016_v28 = vmul.f32 %v4605_v62, %v4596_v57 }
 0x14d   :  { %1486 = vmatpush1.msra.mxu1 %v1115_v60  ;;  %1563 = vmatpush1.msra.mxu0 %v1243_v61  ;;  %v1021_v10 = vadd.f32 %v1014_v26, %v1013_v24  ;;  %v1227_v24 = vld [vmem:[#allocation14 + $0x570] sm:$0xff] }
 0x14e   :  { %1487 = vmatprep.subr.mxu1 %v1112_v25  ;;  %1564 = vmatprep.subr.mxu0 %v1240_v27  ;;  %v4643_v25 = vrot.slane %v933_v63, %v957_v12  ;;  %v1099_v27 = vld [vmem:[#allocation14 + $0x170] sm:$0xff] }
 0x14f   :  { %v4033_v19 = vpop.eup %4032  ;;  %1488 = vmatpush1.msra.mxu1 %v1111_v3  ;;  %1565 = vmatpush1.msra.mxu0 %v1239_v4  ;;  %v1022_v29 = vadd.f32 %v1021_v10, %v1015_v0  ;;  %v1096_v0 = vld [vmem:[#allocation14 + $0x158] sm:$0xff]  ;;  %v1095_v4 = vld [vmem:[#allocation14 + $0x150] sm:$0xff] }
 0x150   :  { %1489 = vmatprep.subr.mxu1 %v1108_v5  ;;  %1566 = vmatprep.subr.mxu0 %v1236_v9  ;;  %v876_v37 = vmul.f32 %v4033_v19, %v4497_v41  ;;  %v877_v38 = vmul.f32 %v4033_v19, %v4499_v42  ;;  %v878_v39 = vmul.f32 %v4033_v19, %v4501_v46  ;;  %v1223_v10 = vld [vmem:[#allocation14 + $0x550] sm:$0xff] }
 0x151   :  { %1490 = vmatpush1.msra.mxu1 %v1107_v13  ;;  %1567 = vmatpush1.msra.mxu0 %v1235_v16  ;;  %v879_v60 = vmul.f32 %v4033_v19, %v4503_v47  ;;  %v880_v61 = vmul.f32 %v4033_v19, %v4505_v48  ;;  %v881_v41 = vmul.f32 %v4033_v19, %v4507_v49  ;;  %v1220_v19 = vld [vmem:[#allocation14 + $0x538] sm:$0xff] }
 0x152   :  { %1491 = vmatprep.subr.mxu1 %v1104_v21  ;;  %1568 = vmatprep.subr.mxu0 %v1232_v23  ;;  %v965_v42 = vmul.f32 %v4622_v11, %v876_v37  ;;  %v966_v46 = vmul.f32 %v4626_v56, %v877_v38  ;;  %v4648_v47 = vadd.f32 %v1022_v29, %v1016_v28  ;;  %v1216_v38 = vld [vmem:[#allocation14 + $0x518] sm:$0xff] }
 0x153   :  { %v4035_v26 = vpop.eup %4034  ;;  %1492 = vmatpush1.msra.mxu1 %v1103_v35  ;;  %1569 = vmatpush1.msra.mxu0 %v1231_v36  ;;  %v967_v48 = vmul.f32 %v4629_v17, %v878_v39  ;;  %v968_v63 = vmul.f32 %v4632_v18, %v879_v60  ;;  %v969_v9 = vmul.f32 %v4636_v32, %v880_v61  ;;  %v1219_v35 = vld [vmem:[#allocation14 + $0x530] sm:$0xff]  ;;  %v1088_v36 = vld [vmem:[#allocation14 + $0x118] sm:$0xff] }
 0x154   :  { %v4037_v3 = vpop.eup %4036  ;;  %1493 = vmatprep.subr.mxu1 %v1100_v40  ;;  %1570 = vmatprep.subr.mxu0 %v1228_v53  ;;  %v4653_v49 = vmul.f32 %v4035_v26, %v4543_v30  ;;  %v4656_v5 = vmul.f32 %v4035_v26, %v4537_v20  ;;  %v4660_v12 = vmul.f32 %v4035_v26, %v4547_v34  ;;  %v1092_v30 = vld [vmem:[#allocation14 + $0x138] sm:$0xff]  ;;  %v1091_v34 = vld [vmem:[#allocation14 + $0x130] sm:$0xff] }
 0x155   :  { %1494 = vmatpush1.msra.mxu1 %v1099_v27  ;;  %1571 = vmatpush1.msra.mxu0 %v1227_v24  ;;  %v4663_v13 = vmul.f32 %v4035_v26, %v4545_v33  ;;  %v977_v16 = vadd.f32 %v966_v46, %v965_v42  ;;  %v970_v21 = vmul.f32 %v4643_v25, %v881_v41  ;;  %v1215_v53 = vld [vmem:[#allocation14 + $0x510] sm:$0xff]  ;;  %v1084_v27 = vld [vmem:[#allocation14 + $0xf8] sm:$0xff] }
 0x156   :  { %1495 = vmatprep.subr.mxu1 %v1096_v0  ;;  %1572 = vmatprep.subr.mxu0 %v1224_v2  ;;  %v1017_v20 = vmul.f32 %v4581_v50, %v4656_v5  ;;  %v1018_v23 = vmul.f32 %v4584_v51, %v4653_v49  ;;  %v883_v29 = vmul.f32 %v4037_v3, %v4519_v1  ;;  %v1087_v1 = vld [vmem:[#allocation14 + $0x110] sm:$0xff]  ;;  %v1208_v0 = vld [vmem:[#allocation14 + $0x4d8] sm:$0xff] }
 0x157   :  { %1401 = vmatprep.mubr.f32.mxu1 %v4653_v49  ;;  %1496 = vmatpush1.msra.mxu1 %v1095_v4  ;;  %v978_v28 = vadd.f32 %v977_v16, %v967_v48  ;;  %v1019_v33 = vmul.f32 %v4587_v52, %v4663_v13  ;;  %v884_v50 = vmul.f32 %v4037_v3, %v4521_v6  ;;  %v1211_v46 = vld [vmem:[#allocation14 + $0x4f0] sm:$0xff]  ;;  %v1072_v16 = vld [vmem:[#allocation14 + $0x98] sm:$0xff] }
 0x158   :  { %1573 = vmatpush1.msra.mxu0 %v1223_v10  ;;  %1402 = vmatmul.mubr.f32.gmra.mxu1 %v4656_v5  ;;  %v1026_v37 = vadd.f32 %v1018_v23, %v1017_v20  ;;  %v885_v51 = vmul.f32 %v4037_v3, %v4523_v7  ;;  %v1020_v40 = vmul.f32 %v4605_v62, %v4660_v12  ;;  %v1207_v2 = vld [vmem:[#allocation14 + $0x4d0] sm:$0xff]  ;;  %v1068_v23 = vld [vmem:[#allocation14 + $0x78] sm:$0xff] }
 0x159   :  { %1497 = vmatprep.subr.mxu1 %v1092_v30  ;;  %1574 = vmatprep.subr.mxu0 %v1220_v19  ;;  %v979_v39 = vadd.f32 %v978_v28, %v968_v63  ;;  %v886_v52 = vmul.f32 %v4037_v3, %v4525_v8  ;;  %v887_v61 = vmul.f32 %v4037_v3, %v4531_v15  ;;  %v1212_v8 = vld [vmem:[#allocation14 + $0x4f8] sm:$0xff]  ;;  %v1083_v15 = vld [vmem:[#allocation14 + $0xf0] sm:$0xff] }
 0x15a   :  { %1478 = vmatprep.mubr.f32.mxu0 %v4660_v12  ;;  %1498 = vmatpush1.msra.mxu1 %v1091_v34  ;;  %v1027_v60 = vadd.f32 %v1026_v37, %v1019_v33  ;;  %v971_v6 = vmul.f32 %v4622_v11, %v883_v29  ;;  %v972_v24 = vmul.f32 %v4626_v56, %v884_v50  ;;  %v1080_v56 = vld [vmem:[#allocation14 + $0xd8] sm:$0xff]  ;;  %v1203_v10 = vld [vmem:[#allocation14 + $0x4b0] sm:$0xff] }
 0x15b   :  { %1575 = vmatpush1.msra.mxu0 %v1219_v35  ;;  %1499 = vmatprep.subr.mxu1 %v1088_v36  ;;  %v980_v7 = vadd.f32 %v979_v39, %v969_v9  ;;  %v973_v62 = vmul.f32 %v4629_v17, %v885_v51  ;;  %v888_v41 = vmul.f32 %v4037_v3, %v4539_v22  ;;  %v1079_v17 = vld [vmem:[#allocation14 + $0xd0] sm:$0xff]  ;;  %v1076_v3 = vld [vmem:[#allocation14 + $0xb8] sm:$0xff] }
 0x15c   :  { %1479 = vmatmul.mubr.f32.gmra.mxu0 %v4663_v13  ;;  %1576 = vmatprep.subr.mxu0 %v1216_v38  ;;  %v974_v11 = vmul.f32 %v4632_v18, %v886_v52  ;;  %v984_v26 = vadd.f32 %v972_v24, %v971_v6  ;;  %v1028_v48 = vadd.f32 %v1027_v60, %v1020_v40  ;;  %v1075_v9 = vld [vmem:[#allocation14 + $0xb0] sm:$0xff]  ;;  %v1200_v19 = vld [vmem:[#allocation14 + $0x498] sm:$0xff] }
 0x15d   :  { %1500 = vmatpush1.msra.mxu1 %v1087_v1  ;;  %1577 = vmatpush1.msra.mxu0 %v1215_v53  ;;  %v981_v42 = vadd.f32 %v980_v7, %v970_v21  ;;  %v975_v22 = vmul.f32 %v4636_v32, %v887_v61  ;;  %v976_v18 = vmul.f32 %v4643_v25, %v888_v41  ;;  %v1071_v32 = vld [vmem:[#allocation14 + $0x90] sm:$0xff]  ;;  %v1196_v25 = vld [vmem:[#allocation14 + $0x478] sm:$0xff] }
 0x15e   :  { %1024 = vadd.xlane.f32.xlu1 %v4648_v47  ;;  %1501 = vmatprep.subr.mxu1 %v1084_v27  ;;  %v985_v63 = vadd.f32 %v984_v26, %v973_v62  ;;  %v1204_v47 = vld [vmem:[#allocation14 + $0x4b8] sm:$0xff]  ;;  %v1199_v21 = vld [vmem:[#allocation14 + $0x490] sm:$0xff] }
 0x15f   :  { %982 = vadd.xlane.f32.xlu0 %v981_v42  ;;  %1578 = vmatprep.subr.mxu0 %v1212_v8  ;;  %v1067_v34 = vld [vmem:[#allocation14 + $0x70] sm:$0xff]  ;;  %v1064_v33 = vld [vmem:[#allocation14 + $0x58] sm:$0xff] }
 0x160   :  { %1502 = vmatpush1.msra.mxu1 %v1083_v15  ;;  %1579 = vmatpush1.msra.mxu0 %v1211_v46  ;;  %v986_v4 = vadd.f32 %v985_v63, %v974_v11  ;;  %v1195_v28 = vld [vmem:[#allocation14 + $0x470] sm:$0xff]  ;;  %v1192_v29 = vld [vmem:[#allocation14 + $0x458] sm:$0xff] }
 0x161   :  { %1503 = vmatprep.subr.mxu1 %v1080_v56  ;;  %1580 = vmatprep.subr.mxu0 %v1208_v0  ;;  %v1063_v35 = vld [vmem:[#allocation14 + $0x50] sm:$0xff]  ;;  %v1060_v37 = vld [vmem:[#allocation14 + $0x38] sm:$0xff] }
 0x162   :  { %1504 = vmatpush1.msra.mxu1 %v1079_v17  ;;  %1581 = vmatpush1.msra.mxu0 %v1207_v2  ;;  %v987_v30 = vadd.f32 %v986_v4, %v975_v22  ;;  %v1191_v36 = vld [vmem:[#allocation14 + $0x450] sm:$0xff]  ;;  %v1188_v50 = vld [vmem:[#allocation14 + $0x438] sm:$0xff] }
 0x163   :  { %1029 = vadd.xlane.f32.xlu1 %v1028_v48  ;;  %1505 = vmatprep.subr.mxu1 %v1076_v3  ;;  %v1059_v51 = vld [vmem:[#allocation14 + $0x30] sm:$0xff]  ;;  %v1056_v39 = vld [vmem:[#allocation14 + $0x18] sm:$0xff] }
 0x164   :  { %1582 = vmatprep.subr.mxu0 %v1204_v47  ;;  %1506 = vmatpush1.msra.mxu1 %v1075_v9  ;;  %v988_v20 = vadd.f32 %v987_v30, %v976_v18  ;;  %v1187_v38 = vld [vmem:[#allocation14 + $0x430] sm:$0xff]  ;;  %v1184_v40 = vld [vmem:[#allocation14 + $0x418] sm:$0xff] }
 0x165   :  { %1583 = vmatpush1.msra.mxu0 %v1203_v10  ;;  %1507 = vmatprep.subr.mxu1 %v1072_v16  ;;  %v1055_v52 = vld [vmem:[#allocation14 + $0x10] sm:$0xff]  ;;  %v1180_v53 = vld [vmem:[#allocation14 + $0x3f8] sm:$0xff] }
 0x166   :  { %1584 = vmatprep.subr.mxu0 %v1200_v19  ;;  %1508 = vmatpush1.msra.mxu1 %v1071_v32  ;;  %v1183_v1 = vld [vmem:[#allocation14 + $0x410] sm:$0xff]  ;;  %v1308_v60 = vld [vmem:[#allocation14 + $0x7f8] sm:$0xff] }
 0x167   :  { %989 = vadd.xlane.f32.xlu0 %v988_v20  ;;  %1585 = vmatpush1.msra.mxu0 %v1199_v21  ;;  %v1179_v61 = vld [vmem:[#allocation14 + $0x3f0] sm:$0xff]  ;;  %v1176_v7 = vld [vmem:[#allocation14 + $0x3d8] sm:$0xff] }
 0x168   :  { %1509 = vmatprep.subr.mxu1 %v1068_v23  ;;  %1586 = vmatprep.subr.mxu0 %v1196_v25  ;;  %v1307_v6 = vld [vmem:[#allocation14 + $0x7f0] sm:$0xff]  ;;  %v1304_v27 = vld [vmem:[#allocation14 + $0x7d8] sm:$0xff] }
 0x169   :  { %1510 = vmatpush1.msra.mxu1 %v1067_v34  ;;  %1587 = vmatpush1.msra.mxu0 %v1195_v28  ;;  %v1175_v62 = vld [vmem:[#allocation14 + $0x3d0] sm:$0xff]  ;;  %v1172_v41 = vld [vmem:[#allocation14 + $0x3b8] sm:$0xff] }
 0x16a   :  { %1511 = vmatprep.subr.mxu1 %v1064_v33  ;;  %1588 = vmatprep.subr.mxu0 %v1192_v29  ;;  %v1303_v8 = vld [vmem:[#allocation14 + $0x7d0] sm:$0xff]  ;;  %v1300_v42 = vld [vmem:[#allocation14 + $0x7b8] sm:$0xff] }
 0x16b   :  { %1512 = vmatpush1.msra.mxu1 %v1063_v35  ;;  %1589 = vmatpush1.msra.mxu0 %v1191_v36  ;;  %v1171_v46 = vld [vmem:[#allocation14 + $0x3b0] sm:$0xff]  ;;  %v1168_v56 = vld [vmem:[#allocation14 + $0x398] sm:$0xff] }
 0x16c   :  { %1513 = vmatprep.subr.mxu1 %v1060_v37  ;;  %1590 = vmatprep.subr.mxu0 %v1188_v50  ;;  %v1299_v11 = vld [vmem:[#allocation14 + $0x7b0] sm:$0xff]  ;;  %v1296_v0 = vld [vmem:[#allocation14 + $0x798] sm:$0xff] }
 0x16d   :  { %1514 = vmatpush1.msra.mxu1 %v1059_v51  ;;  %1591 = vmatpush1.msra.mxu0 %v1187_v38  ;;  %v1167_v17 = vld [vmem:[#allocation14 + $0x390] sm:$0xff]  ;;  %v1164_v22 = vld [vmem:[#allocation14 + $0x378] sm:$0xff] }
 0x16e   :  { %1515 = vmatprep.subr.mxu1 %v1056_v39  ;;  %1592 = vmatprep.subr.mxu0 %v1184_v40  ;;  %v1295_v2 = vld [vmem:[#allocation14 + $0x790] sm:$0xff]  ;;  %v1292_v63 = vld [vmem:[#allocation14 + $0x778] sm:$0xff] }
 0x16f   :  { %1516 = vmatpush1.msra.mxu1 %v1055_v52  ;;  %1593 = vmatpush1.msra.mxu0 %v1183_v1  ;;  %v1163_v3 = vld [vmem:[#allocation14 + $0x370] sm:$0xff]  ;;  %v1160_v9 = vld [vmem:[#allocation14 + $0x358] sm:$0xff] }
 0x170   :  { %v3939_v24 = vpop.f32.mrf.mxu1  ;;  %1517 = vmatprep.subr.mxu1 %v1180_v53  ;;  %1594 = vmatprep.subr.mxu0 %v1308_v60  ;;  %v1291_v4 = vld [vmem:[#allocation14 + $0x770] sm:$0xff]  ;;  %v1288_v10 = vld [vmem:[#allocation14 + $0x758] sm:$0xff] }
 0x171   :  { %1518 = vmatpush2.msra.mxu1 %v1179_v61  ;;  %1595 = vmatpush2.msra.mxu0 %v1307_v6  ;;  %v1159_v30 = vld [vmem:[#allocation14 + $0x350] sm:$0xff]  ;;  %v1156_v32 = vld [vmem:[#allocation14 + $0x338] sm:$0xff] }
 0x172   :  { %v3940_v15 = vpop.f32.mrf.mxu1  ;;  %1519 = vmatprep.subr.mxu1 %v1176_v7  ;;  %1596 = vmatprep.subr.mxu0 %v1304_v27  ;;  %v1287_v19 = vld [vmem:[#allocation14 + $0x750] sm:$0xff]  ;;  %v1284_v21 = vld [vmem:[#allocation14 + $0x738] sm:$0xff] }
 0x173   :  { %v4691_v26 = vadd.f32 %v3940_v15, %v3939_v24  ;;  %1520 = vmatpush2.msra.mxu1 %v1175_v62  ;;  %1597 = vmatpush2.msra.mxu0 %v1303_v8  ;;  %v1155_v23 = vld [vmem:[#allocation14 + $0x330] sm:$0xff]  ;;  %v1152_v34 = vld [vmem:[#allocation14 + $0x318] sm:$0xff] }
 0x174   :  { %1521 = vmatprep.subr.mxu1 %v1172_v41  ;;  %1598 = vmatprep.subr.mxu0 %v1300_v42  ;;  %v3942_v48 = vpop.f32.mrf.mxu1  ;;  %v1283_v25 = vld [vmem:[#allocation14 + $0x730] sm:$0xff]  ;;  %v1280_v28 = vld [vmem:[#allocation14 + $0x718] sm:$0xff] }
 0x175   :  { %1522 = vmatpush2.msra.mxu1 %v1171_v46  ;;  %1599 = vmatpush2.msra.mxu0 %v1299_v11  ;;  %v1279_v29 = vld [vmem:[#allocation14 + $0x710] sm:$0xff]  ;;  %v1148_v35 = vld [vmem:[#allocation14 + $0x2f8] sm:$0xff] }
 0x176   :  { %1523 = vmatprep.subr.mxu1 %v1168_v56  ;;  %1600 = vmatprep.subr.mxu0 %v1296_v0  ;;  %v3943_v18 = vpop.f32.mrf.mxu1  ;;  %v1147_v37 = vld [vmem:[#allocation14 + $0x2f0] sm:$0xff]  ;;  %v1144_v51 = vld [vmem:[#allocation14 + $0x2d8] sm:$0xff] }
 0x177   :  { %1524 = vmatpush2.msra.mxu1 %v1167_v17  ;;  %1601 = vmatpush2.msra.mxu0 %v1295_v2  ;;  %v4693_v47 = vadd.f32 %v3943_v18, %v3942_v48  ;;  %v1275_v50 = vld [vmem:[#allocation14 + $0x6f0] sm:$0xff]  ;;  %v1272_v38 = vld [vmem:[#allocation14 + $0x6d8] sm:$0xff] }
 0x178   :  { %1525 = vmatprep.subr.mxu1 %v1164_v22  ;;  %1602 = vmatprep.subr.mxu0 %v1292_v63  ;;  %v1143_v40 = vld [vmem:[#allocation14 + $0x2d0] sm:$0xff]  ;;  %v3866_v1 = vld [vmem:[#allocation12] ss:$0 sm:$0xff] }
 0x179   :  { %v674_v16 = vpop.f32.mrf.mxu1  ;;  %1526 = vmatpush2.msra.mxu1 %v1163_v3  ;;  %1549 = vmatprep.mubr.f32.mxu1 %v4593_v55  ;;  %v1151_v55 = vld [vmem:[#allocation14 + $0x310] sm:$0xff]  ;;  %v1140_v53 = vld [vmem:[#allocation14 + $0x2b8] sm:$0xff] }
 0x17a   :  { %1603 = vmatpush2.msra.mxu0 %v1291_v4  ;;  %1626 = vmatprep.mubr.f32.mxu0 %v4596_v57  ;;  %v1276_v57 = vld [vmem:[#allocation14 + $0x6f8] sm:$0xff]  ;;  %v1271_v52 = vld [vmem:[#allocation14 + $0x6d0] sm:$0xff]  ;;  %v675_v8 = vadd.f32 %v3866_v1, %v674_v16 }
 0x17b   :  { %v676_v20 = vpop.f32.mrf.mxu1  ;;  %1527 = vmatprep.subr.mxu1 %v1160_v9  ;;  %1604 = vmatprep.subr.mxu0 %v1288_v10  ;;  %v1268_v60 = vld [vmem:[#allocation14 + $0x6b8] sm:$0xff]  ;;  %v1139_v6 = vld [vmem:[#allocation14 + $0x2b0] sm:$0xff] }
 0x17c   :  { %1528 = vmatpush2.msra.mxu1 %v1159_v30  ;;  %1605 = vmatpush2.msra.mxu0 %v1287_v19  ;;  %v1267_v7 = vld [vmem:[#allocation14 + $0x6b0] sm:$0xff]  ;;  %v1136_v27 = vld [vmem:[#allocation14 + $0x298] sm:$0xff] }
 0x17d   :  { %v679_v33 = vpop.f32.mrf.mxu1  ;;  %1529 = vmatprep.subr.mxu1 %v1156_v32  ;;  %1606 = vmatprep.subr.mxu0 %v1284_v21  ;;  %v1264_v24 = vld [vmem:[#allocation14 + $0x698] sm:$0xff]  ;;  %v1135_v41 = vld [vmem:[#allocation14 + $0x290] sm:$0xff] }
 0x17e   :  { %1530 = vmatpush2.msra.mxu1 %v1155_v23  ;;  %1607 = vmatpush2.msra.mxu0 %v1283_v25  ;;  %v1263_v42 = vld [vmem:[#allocation14 + $0x690] sm:$0xff]  ;;  %v1132_v15 = vld [vmem:[#allocation14 + $0x278] sm:$0xff]  ;;  %v680_v63 = vadd.f32 %v3866_v1, %v679_v33 }
 0x17f   :  { %v681_v36 = vpop.f32.mrf.mxu1  ;;  %1531 = vmatprep.subr.mxu1 %v1152_v34  ;;  %1608 = vmatprep.subr.mxu0 %v1280_v28  ;;  %v1260_v46 = vld [vmem:[#allocation14 + $0x678] sm:$0xff]  ;;  %v1131_v0 = vld [vmem:[#allocation14 + $0x270] sm:$0xff] }
 0x180   :  { %1532 = vmatpush2.msra.mxu1 %v1151_v55  ;;  %1609 = vmatpush2.msra.mxu0 %v1279_v29  ;;  %v1259_v17 = vld [vmem:[#allocation14 + $0x670] sm:$0xff]  ;;  %v1128_v2 = vld [vmem:[#allocation14 + $0x258] sm:$0xff] }
 0x181   :  { %v749_v39 = vpop.f32.mrf.mxu1  ;;  %1533 = vmatprep.subr.mxu1 %v1148_v35  ;;  %1610 = vmatprep.subr.mxu0 %v1276_v57  ;;  %v1256_v48 = vld [vmem:[#allocation14 + $0x658] sm:$0xff]  ;;  %v1127_v3 = vld [vmem:[#allocation14 + $0x250] sm:$0xff] }
 0x182   :  { %1534 = vmatpush2.msra.mxu1 %v1147_v37  ;;  %1611 = vmatpush2.msra.mxu0 %v1275_v50  ;;  %v750_v56 = vadd.f32 %v749_v39, %v675_v8  ;;  %v1255_v18 = vld [vmem:[#allocation14 + $0x650] sm:$0xff]  ;;  %v1124_v9 = vld [vmem:[#allocation14 + $0x238] sm:$0xff] }
 0x183   :  { %v751_v61 = vpop.f32.mrf.mxu1  ;;  %1535 = vmatprep.subr.mxu1 %v1144_v51  ;;  %1612 = vmatprep.subr.mxu0 %v1272_v38  ;;  %v1252_v10 = vld [vmem:[#allocation14 + $0x638] sm:$0xff]  ;;  %v1123_v19 = vld [vmem:[#allocation14 + $0x230] sm:$0xff]  ;;  %v4337_v38 = vmov 0.0  }
 0x184   :  { %1536 = vmatpush2.msra.mxu1 %v1143_v40  ;;  %1613 = vmatpush2.msra.mxu0 %v1271_v52  ;;  %v1251_v32 = vld [vmem:[#allocation14 + $0x630] sm:$0xff]  ;;  %v1120_v20 = vld [vmem:[#allocation14 + $0x218] sm:$0xff] }
 0x185   :  { %v754_v62 = vpop.f32.mrf.mxu1  ;;  %1537 = vmatprep.subr.mxu1 %v1140_v53  ;;  %1614 = vmatprep.subr.mxu0 %v1268_v60  ;;  %v1248_v23 = vld [vmem:[#allocation14 + $0x618] sm:$0xff]  ;;  %v1119_v28 = vld [vmem:[#allocation14 + $0x210] sm:$0xff] }
 0x186   :  { %1538 = vmatpush2.msra.mxu1 %v1139_v6  ;;  %1615 = vmatpush2.msra.mxu0 %v1267_v7  ;;  %v755_v30 = vadd.f32 %v754_v62, %v680_v63  ;;  %v1247_v33 = vld [vmem:[#allocation14 + $0x610] sm:$0xff] }
 0x187   :  { %v756_v11 = vpop.f32.mrf.mxu1  ;;  %1539 = vmatprep.subr.mxu1 %v1136_v27  ;;  %1616 = vmatprep.subr.mxu0 %v1264_v24 }
 0x188   :  { %1540 = vmatpush2.msra.mxu1 %v1135_v41  ;;  %1617 = vmatpush2.msra.mxu0 %v1263_v42 }
 0x189   :  { %v824_v22 = vpop.f32.mrf.mxu1  ;;  %1541 = vmatprep.subr.mxu1 %v1132_v15  ;;  %1618 = vmatprep.subr.mxu0 %v1260_v46 }
 0x18a   :  { %v825_v4 = vadd.f32 %v824_v22, %v750_v56  ;;  %1542 = vmatpush2.msra.mxu1 %v1131_v0  ;;  %1619 = vmatpush2.msra.mxu0 %v1259_v17 }
 0x18b   :  { %v826_v16 = vpop.f32.mrf.mxu1  ;;  %1543 = vmatprep.subr.mxu1 %v1128_v2  ;;  %1620 = vmatprep.subr.mxu0 %v1256_v48 }
 0x18c   :  { %v1705_v21 = vsel %vm1704_vm8, %v825_v4, -inf  ;;  %1544 = vmatpush2.msra.mxu1 %v1127_v3  ;;  %1621 = vmatpush2.msra.mxu0 %v1255_v18  ;;  %v1034_v3 = vstv %s4930_s20 }
 0x18d   :  { %v1706_v25 = vrot.slane %v1705_v21, 4  ;;  %v829_v34 = vpop.f32.mrf.mxu1  ;;  %1545 = vmatprep.subr.mxu1 %v1124_v9  ;;  %1622 = vmatprep.subr.mxu0 %v1252_v10 }
 0x18e   :  { %v830_v55 = vadd.f32 %v829_v34, %v755_v30  ;;  %1546 = vmatpush2.msra.mxu1 %v1123_v19  ;;  %1623 = vmatpush2.msra.mxu0 %v1251_v32  ;;  %v1998_v30 = vld [vmem:[#allocation15 + $0xf8] sm:$0xff]  ;;  %v1997_v19 = vld [vmem:[#allocation15 + $0xf0] sm:$0xff]  ;;  %v1996_v32 = vld [vmem:[#allocation15 + $0xe8] sm:$0xff] }
 0x18f   :  { %v1707_v29 = vmax.f32 %v1705_v21, %v1706_v25  ;;  %v831_v35 = vpop.f32.mrf.mxu1  ;;  %1547 = vmatprep.subr.mxu1 %v1120_v20  ;;  %1624 = vmatprep.subr.mxu0 %v1248_v23  ;;  %v1995_v21 = vld [vmem:[#allocation15 + $0xe0] sm:$0xff]  ;;  %v3901_v20 = vpop.f32.mrf.mxu0  ;;  %v1994_v23 = vld [vmem:[#allocation15 + $0xd8] sm:$0xff]  ;;  %v1993_v25 = vld [vmem:[#allocation15 + $0xd0] sm:$0xff] }
 0x190   :  { %v1712_v57 = vsel %vm1704_vm8, %v830_v55, -inf  ;;  %1548 = vmatpush2.msra.mxu1 %v1119_v28  ;;  %1625 = vmatpush2.msra.mxu0 %v1247_v33  ;;  %v1992_v34 = vld [vmem:[#allocation15 + $0xc8] sm:$0xff]  ;;  %v1991_v28 = vld [vmem:[#allocation15 + $0xc0] sm:$0xff] }
 0x191   :  { %v1708_v36 = vrot.slane %v1707_v29, 2  ;;  %v1713_v37 = vrot.slane %v1712_v57, 4  ;;  %1550 = vmatmul.mubr.f32.vlgmr.msra.gmra.mxu1 %v4599_v58  ;;  %1627 = vmatmul.mubr.f32.vlgmr.msra.gmra.mxu0 %v4602_v59  ;;  %v3902_v33 = vpop.f32.mrf.mxu0 }
 0x192   :  { %1555 = vmatprep.mubr.f32.mxu1 %v4653_v49  ;;  %1632 = vmatprep.mubr.f32.mxu0 %v4660_v12 }
 0x193   :  { %v1709_v50 = vmax.f32 %v1707_v29, %v1708_v36  ;;  %v1714_v51 = vmax.f32 %v1712_v57, %v1713_v37  ;;  %3987 = vmatprep.subr.mxu1 %v4337_v38  ;;  %2005 = vmatprep.subr.mxu0 %v1998_v30  ;;  %v3903_v37 = vadd.f32 %v3902_v33, %v3901_v20 }
 0x194   :  { %2006 = vmatpush1.msra.mxu0 %v1997_v19 }
 0x195   :  { %v1710_v39 = vrot.slane %v1709_v50, 1  ;;  %v1715_v40 = vrot.slane %v1714_v51, 2  ;;  %1556 = vmatmul.mubr.f32.gmra.mxu1 %v4656_v5  ;;  %1633 = vmatmul.mubr.f32.gmra.mxu0 %v4663_v13 }
 0x196   :  { %2069 = vmatprep.mubr.f32.mxu0 %v4337_v38  ;;  %3989 = vmatprep.mubr.msk.f32.mxu1 %vm4338_vm9, %v4337_v38 }
 0x197   :  { %v1711_v52 = vmax.f32 %v1709_v50, %v1710_v39  ;;  %v1716_v1 = vmax.f32 %v1714_v51, %v1715_v40  ;;  %2007 = vmatprep.subr.mxu0 %v1996_v32  ;;  %v3865_v50 = vld [vmem:[#allocation9] ss:$0 sm:$0xff] }
 0x198   :  { %2008 = vmatpush1.msra.mxu0 %v1995_v21 }
 0x199   :  { %v1719_v58 = vsub.f32 %v825_v4, %v1711_v52  ;;  %v1717_v59 = vrot.slane %v1716_v1, 1  ;;  %2009 = vmatprep.subr.mxu0 %v1994_v23  ;;  %v437_v52 = vadd.f32 %v3903_v37, %v3865_v50  ;;  %v2109_v37 = vld [vmem:[#allocation15 + $0x1f0] sm:$0xff] }
 0x19a   :  { %2010 = vmatpush1.msra.mxu0 %v1993_v25 }
 0x19b   :  { %v1721_v53 = vmul.f32 1.442695, %v1719_v58  ;;  %v1718_v49 = vmax.f32 %v1716_v1, %v1717_v59  ;;  %2011 = vmatprep.subr.mxu0 %v1992_v34  ;;  %v512_v59 = vadd.f32 %v4691_v26, %v437_v52 }
 0x19c   :  { %2012 = vmatpush1.msra.mxu0 %v1991_v28 }
 0x19d   :  { %4038 = vpow2.f32 %v1721_v53  ;;  %v1720_v12 = vsub.f32 %v830_v55, %v1718_v49  ;;  %v3904_v55 = vpop.f32.mrf.mxu0 }
 0x19f   :  { %v1723_v60 = vmul.f32 1.442695, %v1720_v12  ;;  %v3905_v57 = vpop.f32.mrf.mxu0 }
 0x1a1   :  { %4040 = vpow2.f32 %v1723_v60  ;;  %v3977_v36 = vpop.f32.mrf.mxu0 }
 0x1a3   :  { %v3978_v51 = vpop.f32.mrf.mxu0 }
 0x1a4   :  { %v3979_v1 = vadd.f32 %v3978_v51, %v3977_v36  ;;  %v2108_v51 = vld [vmem:[#allocation15 + $0x1e8] sm:$0xff] }
 0x1a6   :  { %v587_v49 = vadd.f32 %v3979_v1, %v512_v59  ;;  %v2106_v59 = vld [vmem:[#allocation15 + $0x1d8] sm:$0xff] }
 0x1aa   :  { %v4039_v61 = vpop.eup %4038 }
 0x1ab   :  { %v1725_v6 = vsel %vm1704_vm8, %v4039_v61, 0.0 }
 0x1ac   :  { %v1726_v7 = vrot.slane %v1725_v6, 4 }
 0x1ae   :  { %v4041_v27 = vpop.eup %4040  ;;  %v1727_v5 = vadd.f32 %v1726_v7, %v1725_v6 }
 0x1af   :  { %v1732_v13 = vsel %vm1704_vm8, %v4041_v27, 0.0 }
 0x1b0   :  { %v1733_v24 = vrot.slane %v1732_v13, 4  ;;  %v1728_v62 = vrot.slane %v1727_v5, 2 }
 0x1b2   :  { %v1734_v8 = vadd.f32 %v1733_v24, %v1732_v13  ;;  %v1729_v41 = vadd.f32 %v1728_v62, %v1727_v5  ;;  %v3980_v5 = vpop.f32.mrf.mxu0 }
 0x1b4   :  { %v1730_v42 = vrot.slane %v1729_v41, 1  ;;  %v1735_v15 = vrot.slane %v1734_v8, 2  ;;  %v3981_v62 = vpop.f32.mrf.mxu0 }
 0x1b6   :  { %v1731_v46 = vadd.f32 %v1730_v42, %v1729_v41  ;;  %v1736_v11 = vadd.f32 %v1735_v15, %v1734_v8  ;;  %v4722_v41 = vld [vmem:[%s4919_s10] sm:$0xf] }
 0x1b8   :  { %4042 = vrcp.f32 %v1731_v46  ;;  %v1737_v56 = vrot.slane %v1736_v11, 1  ;;  %v1314_v46 = vrot.slane %v4722_v41, %v4572_v43 }
 0x1ba   :  { %v1738_v0 = vadd.f32 %v1737_v56, %v1736_v11  ;;  %v1318_v11 = vrot.slane %v4722_v41, %v4575_v44 }
 0x1bc   :  { %4044 = vrcp.f32 %v1738_v0 }
 0x1c5   :  { %v4043_v17 = vpop.eup %4042 }
 0x1c6   :  { %v1740_v2 = vmul.f32 %v4043_v17, %v4039_v61  ;;  %v3906_v17 = vadd.f32 %v3905_v57, %v3904_v55 }
 0x1c8   :  { %1743 = vxpose.xlu0.b32.start.end [1/1] (short) (narrow) %v1740_v2, 8 }
 0x1c9   :  { %v4045_v48 = vpop.eup %4044 }
 0x1ca   :  { %v1742_v22 = vmul.f32 %v4045_v48, %v4041_v27 }
 0x1cc   :  { %1848 = vxpose.xlu1.b32.start.end [1/1] (short) (narrow) %v1742_v22, 8 }
 0x1e7   :  { %v1025_v63 = vpop.xlane.xlu1 %1024 }
 0x1e8   :  { %v983_v18 = vpop.xlane.xlu0 %982 }
 0x1e9   :  { %v1031_v4 = vadd.f32 %v1025_v63, %v983_v18  ;;  %v442_v18 = vadd.f32 %v3906_v17, %v3865_v50 }
 0x1eb   :  { %v1035_v9 = vadd.f32 %v1034_v3, %v1031_v4  ;;  %v517_v32 = vadd.f32 %v4693_v47, %v442_v18 }
 0x1ec   :  { %v1030_v39 = vpop.xlane.xlu1 %1029 }
 0x1ed   :  { %v1037_v10 = vsub.f32 0.0, %v1035_v9 }
 0x1ef   :  { %v1039_v16 = vmul.f32 1.442695, %v1037_v10  ;;  %v3982_v10 = vadd.f32 %v3981_v62, %v3980_v5  ;;  %v2102_v5 = vld [vmem:[#allocation15 + $0x1b8] sm:$0xff] }
 0x1f0   :  { %v990_v40 = vpop.xlane.xlu0 %989 }
 0x1f1   :  { %4046 = vpow2.f32 %v1039_v16  ;;  %v1032_v58 = vadd.f32 %v1030_v39, %v990_v40  ;;  %v592_v23 = vadd.f32 %v3982_v10, %v517_v32  ;;  %v2107_v40 = vld [vmem:[#allocation15 + $0x1e0] sm:$0xff] }
 0x1f3   :  { %v1036_v12 = vadd.f32 %v1034_v3, %v1032_v58 }
 0x1f5   :  { %v1038_v6 = vsub.f32 0.0, %v1036_v12  ;;  %v2104_v12 = vld [vmem:[#allocation15 + $0x1c8] sm:$0xff] }
 0x1f7   :  { %v1041_v7 = vmul.f32 1.442695, %v1038_v6 }
 0x1fe   :  { %v4047_v29 = vpop.eup %4046 }
 0x1ff   :  { %v1043_v35 = vadd.f32 1.0, %v4047_v29  ;;  %v2110_v29 = vld [vmem:[#allocation15 + $0x1f8] sm:$0xff] }
 0x201   :  { %4048 = vrcp.f32 %v1043_v35 }
 0x202   :  { %4050 = vpow2.f32 %v1041_v7 }
 0x20c   :  { %v1397_v13 = vpop.f32.mrf.mxu1  ;;  %v1474_v26 = vpop.f32.mrf.mxu0 }
 0x20d   :  { %v1398_v2 = vadd.f32 %v1397_v13, %v1314_v46  ;;  %v1322_v13 = vrot.slane %v4722_v41, %v4578_v45 }
 0x20e   :  { %v4715_v53 = vpop.eup %4048  ;;  %v1399_v8 = vpop.f32.mrf.mxu1 }
 0x20f   :  { %v1049_v60 = vsub.f32 1.0, %v4715_v53  ;;  %v4051_v27 = vpop.eup %4050  ;;  %v1476_v15 = vpop.f32.mrf.mxu0  ;;  %v1400_v48 = vadd.f32 %v1399_v8, %v1318_v11  ;;  %v1475_v9 = vadd.f32 %v1474_v26, %v1398_v2 }
 0x210   :  { %v1044_v24 = vadd.f32 1.0, %v4051_v27 }
 0x211   :  { %v1051_v61 = vmul.f32 %v1049_v60, %v587_v49  ;;  %v1477_v16 = vadd.f32 %v1476_v15, %v1400_v48  ;;  %v1639_v20 = vmul.f32 %v4715_v53, %v1475_v9  ;;  %v2105_v49 = vld [vmem:[#allocation15 + $0x1d0] sm:$0xff]  ;;  %v2103_v60 = vld [vmem:[#allocation15 + $0x1c0] sm:$0xff] }
 0x212   :  { %4052 = vrcp.f32 %v1044_v24  ;;  %v1326_v24 = vrot.slane %v4722_v41, %v4590_v54 }
 0x213   :  { %3988 = vmatpush3.msra.mxu1 %v1051_v61  ;;  %v1640_v25 = vmul.f32 %v4715_v53, %v1477_v16  ;;  %v1647_v35 = vrot.slane %v1639_v20, 4 }
 0x214   :  { %3992 = vmatprep.subr.mxu1 %v4337_v38 }
 0x215   :  { %v1653_v57 = vrot.slane %v1640_v25, 4  ;;  %v1648_v39 = vadd.f32 %v1647_v35, %v1639_v20 }
 0x217   :  { %v1654_v52 = vadd.f32 %v1653_v57, %v1640_v25  ;;  %v1649_v61 = vrot.slane %v1648_v39, 2 }
 0x218   :  { %v1403_v42 = vpop.f32.mrf.mxu1 }
 0x219   :  { %v1404_v22 = vadd.f32 %v1403_v42, %v1314_v46  ;;  %v1655_v6 = vrot.slane %v1654_v52, 2  ;;  %v1650_v62 = vadd.f32 %v1649_v61, %v1648_v39 }
 0x21a   :  { %v1405_v56 = vpop.f32.mrf.mxu1 }
 0x21b   :  { %v1406_v63 = vadd.f32 %v1405_v56, %v1318_v11  ;;  %v1656_v8 = vadd.f32 %v1655_v6, %v1654_v52  ;;  %v1651_v48 = vrot.slane %v1650_v62, 1 }
 0x21c   :  { %v1480_v0 = vpop.f32.mrf.mxu0 }
 0x21d   :  { %v1481_v30 = vadd.f32 %v1480_v0, %v1404_v22  ;;  %v1657_v22 = vrot.slane %v1656_v8, 1 }
 0x21e   :  { %v1482_v3 = vpop.f32.mrf.mxu0 }
 0x21f   :  { %v4728_v4 = vpop.eup %4052  ;;  %v1483_v19 = vadd.f32 %v1482_v3, %v1406_v63  ;;  %v1658_v25 = vadd.f32 %v1657_v22, %v1656_v8 }
 0x220   :  { %v1050_v21 = vsub.f32 1.0, %v4728_v4  ;;  %v1643_v34 = vmul.f32 %v4728_v4, %v1481_v30 }
 0x221   :  { %v1644_v28 = vmul.f32 %v4728_v4, %v1483_v19 }
 0x222   :  { %v1052_v55 = vmul.f32 %v1050_v21, %v592_v23  ;;  %v1671_v36 = vrot.slane %v1643_v34, 4  ;;  %v1652_v23 = vadd.f32 %v1651_v48, %v1650_v62 }
 0x223   :  { %v1677_v47 = vrot.slane %v1644_v28, 4 }
 0x224   :  { %v1672_v1 = vadd.f32 %v1671_v36, %v1643_v34 }
 0x225   :  { %v1678_v58 = vadd.f32 %v1677_v47, %v1644_v28 }
 0x226   :  { %v1673_v7 = vrot.slane %v1672_v1, 2 }
 0x227   :  { %v1679_v27 = vrot.slane %v1678_v58, 2 }
 0x228   :  { %v1674_v26 = vadd.f32 %v1673_v7, %v1672_v1 }
 0x229   :  { %v1680_v42 = vadd.f32 %v1679_v27, %v1678_v58 }
 0x22a   :  { %v1675_v63 = vrot.slane %v1674_v26, 1 }
 0x22b   :  { %v1681_v3 = vrot.slane %v1680_v42, 1 }
 0x22c   :  { %v1676_v34 = vadd.f32 %v1675_v63, %v1674_v26 }
 0x22d   :  { %v1682_v28 = vadd.f32 %v1681_v3, %v1680_v42 }
 0x22e   :  { %v4753_v39 = vmul.f32 0.125, %v1676_v34  ;;  %v1990_v34 = vld [vmem:[#allocation15 + $0xb8] sm:$0xff] }
 0x22f   :  { %2013 = vmatprep.subr.mxu0 %v1990_v34 }
 0x230   :  { %v3162_v7 = vmul.f32 %v4753_v39, %v4753_v39 }
 0x244   :  { %v1759_v33 = vpop.trf.xlu0 }
 0x245   :  { %3990 = vmatmul.mubr.msk.f32.vlgmr.msra.gmra.mxu1 %vm1704_vm8, %v1759_v33 }
 0x246   :  { %3993 = vmatpush3.msra.mxu1 %v1052_v55  ;;  %3994 = vmatprep.mubr.msk.f32.mxu1 %vm4338_vm9, %v4337_v38 }
 0x247   :  { %2114 = vmatprep.subr.mxu1 %v2110_v29 }
 0x248   :  { %v1864_v50 = vpop.trf.xlu1 }
 0x249   :  { %3995 = vmatmul.mubr.msk.f32.vlgmr.msra.gmra.mxu1 %vm1704_vm8, %v1864_v50 }
 0x24a   :  { %2115 = vmatpush1.msra.mxu1 %v2109_v37  ;;  %2178 = vmatprep.mubr.f32.mxu1 %v4337_v38 }
 0x24b   :  { %2116 = vmatprep.subr.mxu1 %v2108_v51  ;;  %v4749_v51 = vmul.f32 0.125, %v1652_v23 }
 0x24c   :  { %2117 = vmatpush1.msra.mxu1 %v2107_v40  ;;  %v4755_v40 = vmul.f32 0.125, %v1682_v28  ;;  %v2100_v28 = vld [vmem:[#allocation15 + $0x1a8] sm:$0xff] }
 0x24d   :  { %2118 = vmatprep.subr.mxu1 %v2106_v59 }
 0x24e   :  { %2119 = vmatpush1.msra.mxu1 %v2105_v49  ;;  %v3163_v27 = vmul.f32 %v4755_v40, %v4755_v40 }
 0x24f   :  { %2120 = vmatprep.subr.mxu1 %v2104_v12 }
 0x250   :  { %2121 = vmatpush1.msra.mxu1 %v2103_v60 }
 0x251   :  { %2122 = vmatprep.subr.mxu1 %v2102_v5  ;;  %v1551_v15 = vpop.f32.mrf.mxu1  ;;  %v1628_v46 = vpop.f32.mrf.mxu0 }
 0x252   :  { %v1552_v11 = vadd.f32 %v1551_v15, %v1322_v13 }
 0x253   :  { %v1553_v56 = vpop.f32.mrf.mxu1  ;;  %v1630_v0 = vpop.f32.mrf.mxu0 }
 0x254   :  { %v1629_v17 = vadd.f32 %v1628_v46, %v1552_v11  ;;  %v1554_v2 = vadd.f32 %v1553_v56, %v1326_v24 }
 0x255   :  { %v1557_v18 = vpop.f32.mrf.mxu1  ;;  %v1634_v9 = vpop.f32.mrf.mxu0 }
 0x256   :  { %v1641_v41 = vmul.f32 %v4715_v53, %v1629_v17  ;;  %v1631_v10 = vadd.f32 %v1630_v0, %v1554_v2  ;;  %v1558_v16 = vadd.f32 %v1557_v18, %v1322_v13 }
 0x257   :  { %v1559_v30 = vpop.f32.mrf.mxu1  ;;  %v1636_v33 = vpop.f32.mrf.mxu0 }
 0x258   :  { %v1659_v19 = vrot.slane %v1641_v41, 4  ;;  %v1642_v32 = vmul.f32 %v4715_v53, %v1631_v10  ;;  %v1635_v21 = vadd.f32 %v1634_v9, %v1558_v16  ;;  %v1560_v20 = vadd.f32 %v1559_v30, %v1326_v24 }
 0x259   :  { %v4751_v53 = vmul.f32 0.125, %v1658_v25  ;;  %v2101_v25 = vld [vmem:[#allocation15 + $0x1b0] sm:$0xff] }
 0x25a   :  { %v1660_v55 = vadd.f32 %v1659_v19, %v1641_v41  ;;  %v1665_v29 = vrot.slane %v1642_v32, 4  ;;  %v1645_v35 = vmul.f32 %v4728_v4, %v1635_v21  ;;  %v1637_v57 = vadd.f32 %v1636_v33, %v1560_v20  ;;  %2123 = vmatpush1.msra.mxu1 %v2101_v25  ;;  %v1989_v33 = vld [vmem:[#allocation15 + $0xb0] sm:$0xff] }
 0x25b   :  { %v3159_v6 = vmul.f32 %v4751_v53, %v4751_v53  ;;  %2124 = vmatprep.subr.mxu1 %v2100_v28  ;;  %2014 = vmatpush1.msra.mxu0 %v1989_v33 }
 0x25c   :  { %v1661_v36 = vrot.slane %v1660_v55, 2  ;;  %v1666_v47 = vadd.f32 %v1665_v29, %v1642_v32  ;;  %v1683_v37 = vrot.slane %v1645_v35, 4  ;;  %v1646_v50 = vmul.f32 %v4728_v4, %v1637_v57  ;;  %v1988_v29 = vld [vmem:[#allocation15 + $0xa8] sm:$0xff]  ;;  %v1987_v57 = vld [vmem:[#allocation15 + $0xa0] sm:$0xff] }
 0x25d   :  { %v3158_v4 = vmul.f32 %v4749_v51, %v4749_v51  ;;  %v3175_v0 = vsel %vm2002_vm10, %v3163_v27, %v3159_v6  ;;  %2015 = vmatprep.subr.mxu0 %v1988_v29  ;;  %v1980_v6 = vld [vmem:[#allocation15 + $0x68] sm:$0xff]  ;;  %v1979_v27 = vld [vmem:[#allocation15 + $0x60] sm:$0xff] }
 0x25e   :  { %v1662_v52 = vadd.f32 %v1661_v36, %v1660_v55  ;;  %v1667_v1 = vrot.slane %v1666_v47, 2  ;;  %v1684_v58 = vadd.f32 %v1683_v37, %v1645_v35  ;;  %v1689_v59 = vrot.slane %v1646_v50, 4  ;;  %v2099_v55 = vld [vmem:[#allocation15 + $0x1a0] sm:$0xff]  ;;  %v2098_v35 = vld [vmem:[#allocation15 + $0x198] sm:$0xff]  ;;  %v2097_v36 = vld [vmem:[#allocation15 + $0x190] sm:$0xff]  ;;  %2016 = vmatpush1.msra.mxu0 %v1987_v57 }
 0x25f   :  { %v3174_v15 = vsel %vm2002_vm10, %v3162_v7, %v3158_v4  ;;  %v3183_v63 = vsel %vm2849_vm11, %v3175_v0, 0.0  ;;  %2125 = vmatpush1.msra.mxu1 %v2099_v55  ;;  %v2096_v37 = vld [vmem:[#allocation15 + $0x188] sm:$0xff]  ;;  %v2091_v4 = vld [vmem:[#allocation15 + $0x160] sm:$0xff]  ;;  %v2090_v7 = vld [vmem:[#allocation15 + $0x158] sm:$0xff] }
 0x260   :  { %v1663_v49 = vrot.slane %v1662_v52, 1  ;;  %v1668_v12 = vadd.f32 %v1667_v1, %v1666_v47  ;;  %v1685_v60 = vrot.slane %v1684_v58, 2  ;;  %v1690_v61 = vadd.f32 %v1689_v59, %v1646_v50  ;;  %2126 = vmatprep.subr.mxu1 %v2098_v35  ;;  %v1986_v47 = vld [vmem:[#allocation15 + $0x98] sm:$0xff]  ;;  %v1985_v50 = vld [vmem:[#allocation15 + $0x90] sm:$0xff]  ;;  %v1984_v1 = vld [vmem:[#allocation15 + $0x88] sm:$0xff] }
 0x261   :  { %v3182_v22 = vsel %vm2849_vm11, %v3174_v15, 0.0  ;;  %2127 = vmatpush1.msra.mxu1 %v2097_v36  ;;  %2017 = vmatprep.subr.mxu0 %v1986_v47  ;;  %v1983_v59 = vld [vmem:[#allocation15 + $0x80] sm:$0xff]  ;;  %v2084_v0 = vld [vmem:[#allocation15 + $0x128] sm:$0xff]  ;;  %v2328_v35 = vld [vmem:[#allocation15 + $0x3f0] sm:$0xff] }
 0x262   :  { %v1664_v5 = vadd.f32 %v1663_v49, %v1662_v52  ;;  %v1669_v13 = vrot.slane %v1668_v12, 1  ;;  %v1686_v24 = vadd.f32 %v1685_v60, %v1684_v58  ;;  %v1691_v62 = vrot.slane %v1690_v61, 2  ;;  %2128 = vmatprep.subr.mxu1 %v2096_v37  ;;  %v2095_v52 = vld [vmem:[#allocation15 + $0x180] sm:$0xff]  ;;  %2018 = vmatpush1.msra.mxu0 %v1985_v50  ;;  %v2094_v58 = vld [vmem:[#allocation15 + $0x178] sm:$0xff]  ;;  %v2093_v49 = vld [vmem:[#allocation15 + $0x170] sm:$0xff] }
 0x263   :  { %v3184_v30 = vadd.f32 %v3183_v63, %v3182_v22  ;;  %2129 = vmatpush1.msra.mxu1 %v2095_v52  ;;  %2019 = vmatprep.subr.mxu0 %v1984_v1  ;;  %v2092_v60 = vld [vmem:[#allocation15 + $0x168] sm:$0xff]  ;;  %v1975_v15 = vld [vmem:[#allocation15 + $0x40] sm:$0xff] }
 0x264   :  { %v1670_v8 = vadd.f32 %v1669_v13, %v1668_v12  ;;  %v1687_v26 = vrot.slane %v1686_v24, 1  ;;  %v1692_v42 = vadd.f32 %v1691_v62, %v1690_v61  ;;  %v4766_v46 = vmul.f32 0.125, %v1664_v5  ;;  %2130 = vmatprep.subr.mxu1 %v2094_v58  ;;  %2020 = vmatpush1.msra.mxu0 %v1983_v59  ;;  %v1982_v12 = vld [vmem:[#allocation15 + $0x78] sm:$0xff]  ;;  %v1981_v61 = vld [vmem:[#allocation15 + $0x70] sm:$0xff]  ;;  %v2083_v22 = vld [vmem:[#allocation15 + $0x120] sm:$0xff] }
 0x265   :  { %2131 = vmatpush1.msra.mxu1 %v2093_v49  ;;  %2021 = vmatprep.subr.mxu0 %v1982_v12  ;;  %v2089_v5 = vld [vmem:[#allocation15 + $0x150] sm:$0xff]  ;;  %v1978_v13 = vld [vmem:[#allocation15 + $0x58] sm:$0xff]  ;;  %v1972_v63 = vld [vmem:[#allocation15 + $0x28] sm:$0xff] }
 0x266   :  { %v1688_v11 = vadd.f32 %v1687_v26, %v1686_v24  ;;  %v1693_v56 = vrot.slane %v1692_v42, 1  ;;  %v4769_v17 = vmul.f32 0.125, %v1670_v8  ;;  %v3160_v18 = vmul.f32 %v4766_v46, %v4766_v46  ;;  %2132 = vmatprep.subr.mxu1 %v2092_v60  ;;  %2022 = vmatpush1.msra.mxu0 %v1981_v61  ;;  %v2088_v24 = vld [vmem:[#allocation15 + $0x148] sm:$0xff]  ;;  %v1977_v62 = vld [vmem:[#allocation15 + $0x50] sm:$0xff]  ;;  %v2087_v8 = vld [vmem:[#allocation15 + $0x140] sm:$0xff] }
 0x267   :  { %2133 = vmatpush1.msra.mxu1 %v2091_v4  ;;  %2023 = vmatprep.subr.mxu0 %v1980_v6  ;;  %v1976_v26 = vld [vmem:[#allocation15 + $0x48] sm:$0xff]  ;;  %v2218_v59 = vld [vmem:[#allocation15 + $0x2f0] sm:$0xff]  ;;  %v2326_v49 = vld [vmem:[#allocation15 + $0x3e0] sm:$0xff] }
 0x268   :  { %v4771_v2 = vmul.f32 0.125, %v1688_v11  ;;  %v1694_v48 = vadd.f32 %v1693_v56, %v1692_v42  ;;  %v3161_v41 = vmul.f32 %v4769_v17, %v4769_v17  ;;  %2134 = vmatprep.subr.mxu1 %v2090_v7  ;;  %2024 = vmatpush1.msra.mxu0 %v1979_v27  ;;  %v2086_v42 = vld [vmem:[#allocation15 + $0x138] sm:$0xff]  ;;  %v2085_v11 = vld [vmem:[#allocation15 + $0x130] sm:$0xff]  ;;  %v2327_v47 = vld [vmem:[#allocation15 + $0x3e8] sm:$0xff] }
 0x269   :  { %2135 = vmatpush1.msra.mxu1 %v2089_v5  ;;  %2025 = vmatprep.subr.mxu0 %v1978_v13  ;;  %v1974_v56 = vld [vmem:[#allocation15 + $0x38] sm:$0xff]  ;;  %v2217_v6 = vld [vmem:[#allocation15 + $0x2e8] sm:$0xff] }
 0x26a   :  { %v4775_v3 = vmul.f32 0.125, %v1694_v48  ;;  %v3164_v9 = vmul.f32 %v4771_v2, %v4771_v2  ;;  %2136 = vmatprep.subr.mxu1 %v2088_v24  ;;  %2026 = vmatpush1.msra.mxu0 %v1977_v62  ;;  %v1973_v48 = vld [vmem:[#allocation15 + $0x30] sm:$0xff]  ;;  %v2325_v7 = vld [vmem:[#allocation15 + $0x3d8] sm:$0xff]  ;;  %v2216_v62 = vld [vmem:[#allocation15 + $0x2e0] sm:$0xff] }
 0x26b   :  { %2137 = vmatpush1.msra.mxu1 %v2087_v8  ;;  %2027 = vmatprep.subr.mxu0 %v1976_v26  ;;  %v2324_v8 = vld [vmem:[#allocation15 + $0x3d0] sm:$0xff] }
 0x26c   :  { %v3165_v10 = vmul.f32 %v4775_v3, %v4775_v3  ;;  %v3176_v16 = vsel %vm2002_vm10, %v3164_v9, %v3160_v18  ;;  %2138 = vmatprep.subr.mxu1 %v2086_v42  ;;  %2028 = vmatpush1.msra.mxu0 %v1975_v15  ;;  %v2082_v18 = vld [vmem:[#allocation15 + $0x118] sm:$0xff]  ;;  %v1971_v9 = vld [vmem:[#allocation15 + $0x20] sm:$0xff] }
 0x26d   :  { %v3185_v19 = vsel %vm2849_vm11, %v3176_v16, 0.0  ;;  %2139 = vmatpush1.msra.mxu1 %v2085_v11  ;;  %2029 = vmatprep.subr.mxu0 %v1974_v56  ;;  %v2080_v16 = vld [vmem:[#allocation15 + $0x108] sm:$0xff]  ;;  %v2215_v11 = vld [vmem:[#allocation15 + $0x2d8] sm:$0xff] }
 0x26e   :  { %v3177_v32 = vsel %vm2002_vm10, %v3165_v10, %v3161_v41  ;;  %v3186_v21 = vadd.f32 %v3185_v19, %v3184_v30  ;;  %2140 = vmatprep.subr.mxu1 %v2084_v0  ;;  %2030 = vmatpush1.msra.mxu0 %v1973_v48  ;;  %v2081_v41 = vld [vmem:[#allocation15 + $0x110] sm:$0xff]  ;;  %v1970_v10 = vld [vmem:[#allocation15 + $0x18] sm:$0xff]  ;;  %v2079_v19 = vld [vmem:[#allocation15 + $0x100] sm:$0xff] }
 0x26f   :  { %v3187_v20 = vsel %vm2849_vm11, %v3177_v32, 0.0  ;;  %2141 = vmatpush1.msra.mxu1 %v2083_v22  ;;  %2031 = vmatprep.subr.mxu0 %v1972_v63  ;;  %v1969_v30 = vld [vmem:[#allocation15 + $0x10] sm:$0xff]  ;;  %v1968_v32 = vld [vmem:[#allocation15 + $0x8] sm:$0xff] }
 0x270   :  { %v3188_v23 = vadd.f32 %v3187_v20, %v3186_v21  ;;  %2142 = vmatprep.subr.mxu1 %v2082_v18  ;;  %2032 = vmatpush1.msra.mxu0 %v1971_v9  ;;  %v2329_v21 = vld [vmem:[#allocation15 + $0x3f8] sm:$0xff]  ;;  %v1967_v20 = vld [vmem:[#allocation15] sm:$0xff]  ;;  %v2323_v56 = vld [vmem:[#allocation15 + $0x3c8] sm:$0xff] }
 0x271   :  { %2143 = vmatpush1.msra.mxu1 %v2081_v41  ;;  %2033 = vmatprep.subr.mxu0 %v1970_v10  ;;  %v2214_v63 = vld [vmem:[#allocation15 + $0x2d0] sm:$0xff]  ;;  %v2322_v18 = vld [vmem:[#allocation15 + $0x3c0] sm:$0xff]  ;;  %v2213_v9 = vld [vmem:[#allocation15 + $0x2c8] sm:$0xff] }
 0x272   :  { %3189 = vadd.xlane.f32.xlu1 %v3188_v23  ;;  %2144 = vmatprep.subr.mxu1 %v2080_v16  ;;  %v2219_v23 = vld [vmem:[#allocation15 + $0x2f8] sm:$0xff]  ;;  %v2212_v16 = vld [vmem:[#allocation15 + $0x2c0] sm:$0xff] }
 0x273   :  { %2034 = vmatpush1.msra.mxu0 %v1969_v30  ;;  %2145 = vmatpush1.msra.mxu1 %v2079_v19  ;;  %v2321_v41 = vld [vmem:[#allocation15 + $0x3b8] sm:$0xff]  ;;  %v2320_v30 = vld [vmem:[#allocation15 + $0x3b0] sm:$0xff] }
 0x274   :  { %2035 = vmatprep.subr.mxu0 %v1968_v32  ;;  %2334 = vmatprep.subr.mxu1 %v2329_v21  ;;  %v2211_v19 = vld [vmem:[#allocation15 + $0x2b8] sm:$0xff]  ;;  %v2319_v32 = vld [vmem:[#allocation15 + $0x3a8] sm:$0xff]  ;;  %v2210_v21 = vld [vmem:[#allocation15 + $0x2b0] sm:$0xff] }
 0x275   :  { %2036 = vmatpush1.msra.mxu0 %v1967_v20  ;;  %v2318_v20 = vld [vmem:[#allocation15 + $0x3a0] sm:$0xff] }
 0x276   :  { %2224 = vmatprep.subr.mxu0 %v2219_v23  ;;  %v2209_v23 = vld [vmem:[#allocation15 + $0x2a8] sm:$0xff] }
 0x2fb   :  { %v3190_v25 = vpop.xlane.xlu1 %3189 }
 0x2fc   :  { %4054 = vrsqrt.f32 %v3190_v25  ;;  %vm3193_vm12 = vcmp.eq.f32.partialorder %v3190_v25, inf  ;;  %v3196_v55 = vand.u32 2147483648, %v3190_v25  ;;  %vm3195_vm13 = vcmp.eq.f32.partialorder %v3190_v25, 0.0 }
 0x305   :  { %v4789_v34 = vpop.f32.mrf.mxu1 }
 0x306   :  { %v2111_v33 = vrot.slane %v4789_v34, 1  ;;  %v2550_v50 = vrot.slane %v4789_v34, 5  ;;  %v2440_v52 = vrot.slane %v4789_v34, 4  ;;  %v2770_v27 = vrot.slane %v4789_v34, 7 }
 0x307   :  { %v3991_v28 = vpop.f32.mrf.mxu1  ;;  %v2660_v5 = vrot.slane %v4789_v34, 6 }
 0x308   :  { %v2208_v28 = vld [vmem:[#allocation15 + $0x2a0] sm:$0xff] }
 0x309   :  { %v4792_v29 = vpop.f32.mrf.mxu1  ;;  %v4055_v57 = vpop.eup %4054 }
 0x30a   :  { %v2112_v36 = vsel %vm2002_vm10, %v4792_v29, %v2111_v33  ;;  %v2001_v37 = vrot.slane %v4792_v29, 7  ;;  %v3192_v1 = vmul.f32 %v4055_v57, %v3190_v25  ;;  %v2551_v12 = vrot.slane %v4792_v29, 4  ;;  %v2316_v33 = vld [vmem:[#allocation15 + $0x390] sm:$0xff] }
 0x30b   :  { %v3996_v58 = vpop.f32.mrf.mxu1  ;;  %2179 = vmatmul.mubr.f32.vlgmr.msra.gmra.mxu1 %v2112_v36  ;;  %v2441_v60 = vrot.slane %v4792_v29, 3  ;;  %v2771_v61 = vrot.slane %v4792_v29, 6  ;;  %v2661_v13 = vrot.slane %v4792_v29, 5  ;;  %v2206_v57 = vld [vmem:[#allocation15 + $0x290] sm:$0xff]  ;;  %v2314_v36 = vld [vmem:[#allocation15 + $0x380] sm:$0xff] }
 0x30c   :  { %2335 = vmatpush1.msra.mxu1 %v2328_v35  ;;  %v2003_v4 = vsel %vm2002_vm10, %v2001_v37, %v4789_v34  ;;  %2398 = vmatprep.mubr.f32.mxu1 %v4337_v38  ;;  %v3194_v24 = vsel %vm3193_vm12, %v3190_v25, %v3192_v1  ;;  %v4810_v26 = vsel %vm2002_vm10, %v2551_v12, %v2550_v50  ;;  %v2317_v25 = vld [vmem:[#allocation15 + $0x398] sm:$0xff]  ;;  %v2315_v35 = vld [vmem:[#allocation15 + $0x388] sm:$0xff]  ;;  %v2204_v50 = vld [vmem:[#allocation15 + $0x280] sm:$0xff] }
 0x30d   :  { %2336 = vmatprep.subr.mxu1 %v2327_v47  ;;  %2070 = vmatmul.mubr.f32.vlgmr.msra.gmra.mxu0 %v2003_v4  ;;  %v4813_v42 = vsel %vm2002_vm10, %v2441_v60, %v2440_v52  ;;  %v3197_v15 = vsel %vm3195_vm13, %v3196_v55, %v3194_v24  ;;  %v4816_v0 = vsel %vm2002_vm10, %v2771_v61, %v2770_v27  ;;  %v2207_v55 = vld [vmem:[#allocation15 + $0x298] sm:$0xff]  ;;  %v2205_v47 = vld [vmem:[#allocation15 + $0x288] sm:$0xff]  ;;  %v2312_v52 = vld [vmem:[#allocation15 + $0x370] sm:$0xff] }
 0x30e   :  { %2225 = vmatpush1.msra.mxu0 %v2218_v59  ;;  %2337 = vmatpush1.msra.mxu1 %v2326_v49  ;;  %v4819_v48 = vsel %vm2002_vm10, %v2661_v13, %v2660_v5  ;;  %v3198_v22 = vmax.f32 %v3197_v15, 1e-12  ;;  %v2313_v37 = vld [vmem:[#allocation15 + $0x378] sm:$0xff]  ;;  %v2311_v58 = vld [vmem:[#allocation15 + $0x368] sm:$0xff]  ;;  %v2202_v59 = vld [vmem:[#allocation15 + $0x270] sm:$0xff] }
 0x30f   :  { %2226 = vmatprep.subr.mxu0 %v2217_v6  ;;  %2338 = vmatprep.subr.mxu1 %v2325_v7  ;;  %v2203_v1 = vld [vmem:[#allocation15 + $0x278] sm:$0xff]  ;;  %v2310_v49 = vld [vmem:[#allocation15 + $0x360] sm:$0xff]  ;;  %v2201_v12 = vld [vmem:[#allocation15 + $0x268] sm:$0xff] }
 0x310   :  { %2227 = vmatpush1.msra.mxu0 %v2216_v62  ;;  %2339 = vmatpush1.msra.mxu1 %v2324_v8  ;;  %v3200_v10 = vrot.slane %v3198_v22, 1  ;;  %4056 = vrcp.f32 %v3198_v22  ;;  %v2309_v60 = vld [vmem:[#allocation15 + $0x358] sm:$0xff]  ;;  %v2200_v61 = vld [vmem:[#allocation15 + $0x260] sm:$0xff]  ;;  %v2308_v4 = vld [vmem:[#allocation15 + $0x350] sm:$0xff] }
 0x311   :  { %2228 = vmatprep.subr.mxu0 %v2215_v11  ;;  %2340 = vmatprep.subr.mxu1 %v2323_v56  ;;  %v2199_v6 = vld [vmem:[#allocation15 + $0x258] sm:$0xff]  ;;  %v2307_v7 = vld [vmem:[#allocation15 + $0x348] sm:$0xff]  ;;  %v2198_v5 = vld [vmem:[#allocation15 + $0x250] sm:$0xff] }
 0x312   :  { %2229 = vmatpush1.msra.mxu0 %v2214_v63  ;;  %2341 = vmatpush1.msra.mxu1 %v2322_v18  ;;  %4058 = vrcp.f32 %v3200_v10  ;;  %v2306_v13 = vld [vmem:[#allocation15 + $0x340] sm:$0xff]  ;;  %v2197_v62 = vld [vmem:[#allocation15 + $0x248] sm:$0xff]  ;;  %v2305_v8 = vld [vmem:[#allocation15 + $0x338] sm:$0xff] }
 0x313   :  { %2230 = vmatprep.subr.mxu0 %v2213_v9  ;;  %2342 = vmatprep.subr.mxu1 %v2321_v41  ;;  %v2196_v15 = vld [vmem:[#allocation15 + $0x240] sm:$0xff]  ;;  %v2304_v11 = vld [vmem:[#allocation15 + $0x330] sm:$0xff]  ;;  %v2195_v22 = vld [vmem:[#allocation15 + $0x238] sm:$0xff] }
 0x314   :  { %2231 = vmatpush1.msra.mxu0 %v2212_v16  ;;  %2343 = vmatpush1.msra.mxu1 %v2320_v30  ;;  %v2303_v63 = vld [vmem:[#allocation15 + $0x328] sm:$0xff]  ;;  %v2194_v9 = vld [vmem:[#allocation15 + $0x230] sm:$0xff]  ;;  %v2302_v41 = vld [vmem:[#allocation15 + $0x320] sm:$0xff] }
 0x315   :  { %2232 = vmatprep.subr.mxu0 %v2211_v19  ;;  %2344 = vmatprep.subr.mxu1 %v2319_v32  ;;  %v2193_v30 = vld [vmem:[#allocation15 + $0x228] sm:$0xff]  ;;  %v2301_v19 = vld [vmem:[#allocation15 + $0x318] sm:$0xff] }
 0x316   :  { %2233 = vmatpush1.msra.mxu0 %v2210_v21  ;;  %2345 = vmatpush1.msra.mxu1 %v2318_v20  ;;  %v2192_v21 = vld [vmem:[#allocation15 + $0x220] sm:$0xff] }
 0x317   :  { %2234 = vmatprep.subr.mxu0 %v2209_v23  ;;  %2346 = vmatprep.subr.mxu1 %v2317_v25  ;;  %v2191_v23 = vld [vmem:[#allocation15 + $0x218] sm:$0xff]  ;;  %v2331_v25 = vrot.slane %v4792_v29, 2 }
 0x318   :  { %2235 = vmatpush1.msra.mxu0 %v2208_v28  ;;  %2347 = vmatpush1.msra.mxu1 %v2316_v33  ;;  %v2298_v33 = vld [vmem:[#allocation15 + $0x300] sm:$0xff] }
 0x319   :  { %2236 = vmatprep.subr.mxu0 %v2207_v55  ;;  %2348 = vmatprep.subr.mxu1 %v2315_v35  ;;  %v2189_v55 = vld [vmem:[#allocation15 + $0x208] sm:$0xff]  ;;  %v2330_v35 = vrot.slane %v4789_v34, 3 }
 0x31a   :  { %2237 = vmatpush1.msra.mxu0 %v2206_v57  ;;  %2349 = vmatpush1.msra.mxu1 %v2314_v36  ;;  %v2549_v57 = vld [vmem:[#allocation15 + $0x5f8] sm:$0xff]  ;;  %v2188_v36 = vld [vmem:[#allocation15 + $0x200] sm:$0xff] }
 0x31b   :  { %2238 = vmatprep.subr.mxu0 %v2205_v47  ;;  %2350 = vmatprep.subr.mxu1 %v2313_v37  ;;  %v2221_v47 = vrot.slane %v4792_v29, 1  ;;  %v2332_v37 = vsel %vm2002_vm10, %v2331_v25, %v2330_v35  ;;  %v2546_v29 = vld [vmem:[#allocation15 + $0x5e0] sm:$0xff]  ;;  %v2531_v25 = vld [vmem:[#allocation15 + $0x568] sm:$0xff]  ;;  %v2529_v35 = vld [vmem:[#allocation15 + $0x558] sm:$0xff] }
 0x31c   :  { %2239 = vmatpush1.msra.mxu0 %v2204_v50  ;;  %2351 = vmatpush1.msra.mxu1 %v2312_v52  ;;  %v2548_v50 = vld [vmem:[#allocation15 + $0x5f0] sm:$0xff]  ;;  %v2220_v52 = vrot.slane %v4789_v34, 2  ;;  %v2435_v34 = vld [vmem:[#allocation15 + $0x4d8] sm:$0xff] }
 0x31d   :  { %2240 = vmatprep.subr.mxu0 %v2203_v1  ;;  %2352 = vmatprep.subr.mxu1 %v2311_v58  ;;  %v4821_v27 = vpop.eup %4056  ;;  %v2439_v1 = vld [vmem:[#allocation15 + $0x4f8] sm:$0xff]  ;;  %v2547_v58 = vld [vmem:[#allocation15 + $0x5e8] sm:$0xff] }
 0x31e   :  { %2241 = vmatpush1.msra.mxu0 %v2202_v59  ;;  %2353 = vmatpush1.msra.mxu1 %v2310_v49  ;;  %v3204_v10 = vmul.f32 %v4821_v27, %v4749_v51  ;;  %v2299_v51 = vld [vmem:[#allocation15 + $0x308] sm:$0xff]  ;;  %v2438_v59 = vld [vmem:[#allocation15 + $0x4f0] sm:$0xff]  ;;  %v2222_v49 = vsel %vm2002_vm10, %v2221_v47, %v2220_v52  ;;  %v2419_v47 = vld [vmem:[#allocation15 + $0x458] sm:$0xff] }
 0x31f   :  { %2242 = vmatprep.subr.mxu0 %v2201_v12  ;;  %2354 = vmatprep.subr.mxu1 %v2309_v60  ;;  %v4823_v24 = vpop.eup %4058  ;;  %v2437_v12 = vld [vmem:[#allocation15 + $0x4e8] sm:$0xff]  ;;  %v2545_v60 = vld [vmem:[#allocation15 + $0x5d8] sm:$0xff]  ;;  %v2526_v52 = vld [vmem:[#allocation15 + $0x540] sm:$0xff] }
 0x320   :  { %2243 = vmatpush1.msra.mxu0 %v2200_v61  ;;  %2355 = vmatpush1.msra.mxu1 %v2308_v4  ;;  %v3209_v56 = vmul.f32 %v4823_v24, %v4753_v39  ;;  %v3211_v18 = vmul.f32 %v4823_v24, %v4771_v2  ;;  %v3206_v39 = vmul.f32 %v4821_v27, %v4766_v46  ;;  %v2300_v2 = vld [vmem:[#allocation15 + $0x310] sm:$0xff]  ;;  %v2436_v61 = vld [vmem:[#allocation15 + $0x4e0] sm:$0xff] }
 0x321   :  { %2244 = vmatprep.subr.mxu0 %v2199_v6  ;;  %2356 = vmatprep.subr.mxu1 %v2307_v7  ;;  %v2190_v46 = vld [vmem:[#allocation15 + $0x210] sm:$0xff]  ;;  %v2543_v6 = vld [vmem:[#allocation15 + $0x5c8] sm:$0xff] }
 0x322   :  { %2245 = vmatpush1.msra.mxu0 %v2198_v5  ;;  %2357 = vmatpush1.msra.mxu1 %v2306_v13  ;;  %v3499_v16 = vrot.slane %v3209_v56, 7  ;;  %v3503_v32 = vrot.slane %v3211_v18, 7  ;;  %v2544_v4 = vld [vmem:[#allocation15 + $0x5d0] sm:$0xff]  ;;  %v2542_v5 = vld [vmem:[#allocation15 + $0x5c0] sm:$0xff]  ;;  %v2433_v13 = vld [vmem:[#allocation15 + $0x4c8] sm:$0xff] }
 0x323   :  { %2246 = vmatprep.subr.mxu0 %v2197_v62  ;;  %2358 = vmatprep.subr.mxu1 %v2305_v8  ;;  %v2434_v7 = vld [vmem:[#allocation15 + $0x4d0] sm:$0xff]  ;;  %v2541_v62 = vld [vmem:[#allocation15 + $0x5b8] sm:$0xff]  ;;  %v2432_v8 = vld [vmem:[#allocation15 + $0x4c0] sm:$0xff] }
 0x324   :  { %2247 = vmatpush1.msra.mxu0 %v2196_v15  ;;  %2359 = vmatpush1.msra.mxu1 %v2304_v11  ;;  %v4834_v20 = vsel %vm2002_vm10, %v3499_v16, %v3204_v10  ;;  %v4838_v28 = vsel %vm2002_vm10, %v3503_v32, %v3206_v39  ;;  %v2540_v15 = vld [vmem:[#allocation15 + $0x5b0] sm:$0xff]  ;;  %v2431_v11 = vld [vmem:[#allocation15 + $0x4b8] sm:$0xff]  ;;  %v2539_v56 = vld [vmem:[#allocation15 + $0x5a8] sm:$0xff] }
 0x325   :  { %2248 = vmatprep.subr.mxu0 %v2195_v22  ;;  %2360 = vmatprep.subr.mxu1 %v2303_v63  ;;  %v2430_v22 = vld [vmem:[#allocation15 + $0x4b0] sm:$0xff]  ;;  %v2538_v63 = vld [vmem:[#allocation15 + $0x5a0] sm:$0xff]  ;;  %v2429_v18 = vld [vmem:[#allocation15 + $0x4a8] sm:$0xff] }
 0x326   :  { %2249 = vmatpush1.msra.mxu0 %v2194_v9  ;;  %2361 = vmatpush1.msra.mxu1 %v2302_v41  ;;  %v2537_v9 = vld [vmem:[#allocation15 + $0x598] sm:$0xff]  ;;  %v2428_v41 = vld [vmem:[#allocation15 + $0x4a0] sm:$0xff]  ;;  %v2536_v10 = vld [vmem:[#allocation15 + $0x590] sm:$0xff] }
 0x327   :  { %2250 = vmatprep.subr.mxu0 %v2193_v30  ;;  %2362 = vmatprep.subr.mxu1 %v2301_v19  ;;  %v2427_v16 = vld [vmem:[#allocation15 + $0x498] sm:$0xff]  ;;  %v2535_v30 = vld [vmem:[#allocation15 + $0x588] sm:$0xff]  ;;  %v2426_v19 = vld [vmem:[#allocation15 + $0x490] sm:$0xff] }
 0x328   :  { %2251 = vmatpush1.msra.mxu0 %v2192_v21  ;;  %2363 = vmatpush1.msra.mxu1 %v2300_v2  ;;  %v2534_v39 = vld [vmem:[#allocation15 + $0x580] sm:$0xff]  ;;  %v2425_v32 = vld [vmem:[#allocation15 + $0x488] sm:$0xff]  ;;  %v2533_v21 = vld [vmem:[#allocation15 + $0x578] sm:$0xff] }
 0x329   :  { %2252 = vmatprep.subr.mxu0 %v2191_v23  ;;  %2364 = vmatprep.subr.mxu1 %v2299_v51  ;;  %v2424_v2 = vld [vmem:[#allocation15 + $0x480] sm:$0xff]  ;;  %v2532_v23 = vld [vmem:[#allocation15 + $0x570] sm:$0xff]  ;;  %v2423_v51 = vld [vmem:[#allocation15 + $0x478] sm:$0xff] }
 0x32a   :  { %2253 = vmatpush1.msra.mxu0 %v2190_v46  ;;  %2365 = vmatpush1.msra.mxu1 %v2298_v33  ;;  %v2422_v46 = vld [vmem:[#allocation15 + $0x470] sm:$0xff]  ;;  %v2530_v33 = vld [vmem:[#allocation15 + $0x560] sm:$0xff] }
 0x32b   :  { %2254 = vmatprep.subr.mxu0 %v2189_v55  ;;  %2399 = vmatmul.mubr.f32.vlgmr.msra.gmra.mxu1 %v2332_v37  ;;  %v2421_v55 = vld [vmem:[#allocation15 + $0x468] sm:$0xff] }
 0x32c   :  { %2554 = vmatprep.subr.mxu1 %v2549_v57  ;;  %2255 = vmatpush1.msra.mxu0 %v2188_v36  ;;  %v2420_v57 = vld [vmem:[#allocation15 + $0x460] sm:$0xff]  ;;  %v2528_v36 = vld [vmem:[#allocation15 + $0x550] sm:$0xff]  ;;  %v2527_v37 = vld [vmem:[#allocation15 + $0x548] sm:$0xff] }
 0x32d   :  { %2288 = vmatprep.mubr.f32.mxu0 %v4337_v38  ;;  %2555 = vmatpush1.msra.mxu1 %v2548_v50  ;;  %v2418_v50 = vld [vmem:[#allocation15 + $0x450] sm:$0xff] }
 0x32e   :  { %2289 = vmatmul.mubr.f32.vlgmr.msra.gmra.mxu0 %v2222_v49  ;;  %2444 = vmatprep.subr.mxu0 %v2439_v1  ;;  %v2417_v1 = vld [vmem:[#allocation15 + $0x448] sm:$0xff]  ;;  %v2524_v49 = vld [vmem:[#allocation15 + $0x530] sm:$0xff] }
 0x32f   :  { %2556 = vmatprep.subr.mxu1 %v2547_v58  ;;  %2445 = vmatpush1.msra.mxu0 %v2438_v59  ;;  %v2525_v58 = vld [vmem:[#allocation15 + $0x538] sm:$0xff]  ;;  %v2416_v59 = vld [vmem:[#allocation15 + $0x440] sm:$0xff] }
 0x330   :  { %2557 = vmatpush1.msra.mxu1 %v2546_v29  ;;  %2446 = vmatprep.subr.mxu0 %v2437_v12  ;;  %v2415_v29 = vld [vmem:[#allocation15 + $0x438] sm:$0xff]  ;;  %v2523_v12 = vld [vmem:[#allocation15 + $0x528] sm:$0xff] }
 0x331   :  { %2558 = vmatprep.subr.mxu1 %v2545_v60  ;;  %2447 = vmatpush1.msra.mxu0 %v2436_v61  ;;  %v2414_v60 = vld [vmem:[#allocation15 + $0x430] sm:$0xff]  ;;  %v2522_v61 = vld [vmem:[#allocation15 + $0x520] sm:$0xff] }
 0x332   :  { %2559 = vmatpush1.msra.mxu1 %v2544_v4  ;;  %2448 = vmatprep.subr.mxu0 %v2435_v34  ;;  %v2413_v4 = vld [vmem:[#allocation15 + $0x428] sm:$0xff]  ;;  %v2521_v34 = vld [vmem:[#allocation15 + $0x518] sm:$0xff] }
 0x333   :  { %2560 = vmatprep.subr.mxu1 %v2543_v6  ;;  %2449 = vmatpush1.msra.mxu0 %v2434_v7  ;;  %v2412_v6 = vld [vmem:[#allocation15 + $0x420] sm:$0xff]  ;;  %v2520_v7 = vld [vmem:[#allocation15 + $0x510] sm:$0xff] }
 0x334   :  { %2561 = vmatpush1.msra.mxu1 %v2542_v5  ;;  %2450 = vmatprep.subr.mxu0 %v2433_v13  ;;  %v2411_v5 = vld [vmem:[#allocation15 + $0x418] sm:$0xff]  ;;  %v2519_v13 = vld [vmem:[#allocation15 + $0x508] sm:$0xff] }
 0x335   :  { %2562 = vmatprep.subr.mxu1 %v2541_v62  ;;  %2451 = vmatpush1.msra.mxu0 %v2432_v8  ;;  %v2410_v62 = vld [vmem:[#allocation15 + $0x410] sm:$0xff]  ;;  %v2518_v8 = vld [vmem:[#allocation15 + $0x500] sm:$0xff] }
 0x336   :  { %2563 = vmatpush1.msra.mxu1 %v2540_v15  ;;  %2452 = vmatprep.subr.mxu0 %v2431_v11  ;;  %v2409_v15 = vld [vmem:[#allocation15 + $0x408] sm:$0xff]  ;;  %v2769_v11 = vld [vmem:[#allocation15 + $0x7f8] sm:$0xff] }
 0x337   :  { %2564 = vmatprep.subr.mxu1 %v2539_v56  ;;  %2453 = vmatpush1.msra.mxu0 %v2430_v22  ;;  %v2408_v56 = vld [vmem:[#allocation15 + $0x400] sm:$0xff]  ;;  %v2768_v22 = vld [vmem:[#allocation15 + $0x7f0] sm:$0xff] }
 0x338   :  { %2565 = vmatpush1.msra.mxu1 %v2538_v63  ;;  %2454 = vmatprep.subr.mxu0 %v2429_v18  ;;  %v2659_v63 = vld [vmem:[#allocation15 + $0x6f8] sm:$0xff]  ;;  %v2767_v18 = vld [vmem:[#allocation15 + $0x7e8] sm:$0xff] }
 0x339   :  { %2566 = vmatprep.subr.mxu1 %v2537_v9  ;;  %2455 = vmatpush1.msra.mxu0 %v2428_v41  ;;  %v2658_v9 = vld [vmem:[#allocation15 + $0x6f0] sm:$0xff]  ;;  %v2766_v41 = vld [vmem:[#allocation15 + $0x7e0] sm:$0xff] }
 0x33a   :  { %2567 = vmatpush1.msra.mxu1 %v2536_v10  ;;  %2456 = vmatprep.subr.mxu0 %v2427_v16  ;;  %v2657_v10 = vld [vmem:[#allocation15 + $0x6e8] sm:$0xff]  ;;  %v2765_v16 = vld [vmem:[#allocation15 + $0x7d8] sm:$0xff] }
 0x33b   :  { %2568 = vmatprep.subr.mxu1 %v2535_v30  ;;  %2457 = vmatpush1.msra.mxu0 %v2426_v19  ;;  %v2656_v30 = vld [vmem:[#allocation15 + $0x6e0] sm:$0xff]  ;;  %v2764_v19 = vld [vmem:[#allocation15 + $0x7d0] sm:$0xff] }
 0x33c   :  { %2569 = vmatpush1.msra.mxu1 %v2534_v39  ;;  %2458 = vmatprep.subr.mxu0 %v2425_v32  ;;  %v2655_v39 = vld [vmem:[#allocation15 + $0x6d8] sm:$0xff]  ;;  %v2654_v32 = vld [vmem:[#allocation15 + $0x6d0] sm:$0xff] }
 0x33d   :  { %2570 = vmatprep.subr.mxu1 %v2533_v21  ;;  %2459 = vmatpush1.msra.mxu0 %v2424_v2  ;;  %v2762_v21 = vld [vmem:[#allocation15 + $0x7c0] sm:$0xff]  ;;  %v2653_v2 = vld [vmem:[#allocation15 + $0x6c8] sm:$0xff] }
 0x33e   :  { %2571 = vmatpush1.msra.mxu1 %v2532_v23  ;;  %2460 = vmatprep.subr.mxu0 %v2423_v51  ;;  %v2761_v23 = vld [vmem:[#allocation15 + $0x7b8] sm:$0xff]  ;;  %v2652_v51 = vld [vmem:[#allocation15 + $0x6c0] sm:$0xff] }
 0x33f   :  { %2572 = vmatprep.subr.mxu1 %v2531_v25  ;;  %2461 = vmatpush1.msra.mxu0 %v2422_v46  ;;  %v2651_v25 = vld [vmem:[#allocation15 + $0x6b8] sm:$0xff]  ;;  %v2759_v46 = vld [vmem:[#allocation15 + $0x7a8] sm:$0xff] }
 0x340   :  { %2573 = vmatpush1.msra.mxu1 %v2530_v33  ;;  %2462 = vmatprep.subr.mxu0 %v2421_v55  ;;  %v2650_v33 = vld [vmem:[#allocation15 + $0x6b0] sm:$0xff]  ;;  %v2758_v55 = vld [vmem:[#allocation15 + $0x7a0] sm:$0xff] }
 0x341   :  { %2574 = vmatprep.subr.mxu1 %v2529_v35  ;;  %2463 = vmatpush1.msra.mxu0 %v2420_v57  ;;  %v2649_v35 = vld [vmem:[#allocation15 + $0x6a8] sm:$0xff]  ;;  %v2757_v57 = vld [vmem:[#allocation15 + $0x798] sm:$0xff] }
 0x342   :  { %2575 = vmatpush1.msra.mxu1 %v2528_v36  ;;  %2464 = vmatprep.subr.mxu0 %v2419_v47  ;;  %v2648_v36 = vld [vmem:[#allocation15 + $0x6a0] sm:$0xff]  ;;  %v2756_v47 = vld [vmem:[#allocation15 + $0x790] sm:$0xff] }
 0x343   :  { %2576 = vmatprep.subr.mxu1 %v2527_v37  ;;  %2465 = vmatpush1.msra.mxu0 %v2418_v50  ;;  %v2647_v37 = vld [vmem:[#allocation15 + $0x698] sm:$0xff]  ;;  %v2755_v50 = vld [vmem:[#allocation15 + $0x788] sm:$0xff] }
 0x344   :  { %2577 = vmatpush1.msra.mxu1 %v2526_v52  ;;  %2466 = vmatprep.subr.mxu0 %v2417_v1  ;;  %v2646_v52 = vld [vmem:[#allocation15 + $0x690] sm:$0xff]  ;;  %v2754_v1 = vld [vmem:[#allocation15 + $0x780] sm:$0xff] }
 0x345   :  { %2578 = vmatprep.subr.mxu1 %v2525_v58  ;;  %2467 = vmatpush1.msra.mxu0 %v2416_v59  ;;  %v2645_v58 = vld [vmem:[#allocation15 + $0x688] sm:$0xff]  ;;  %v2753_v59 = vld [vmem:[#allocation15 + $0x778] sm:$0xff] }
 0x346   :  { %2579 = vmatpush1.msra.mxu1 %v2524_v49  ;;  %2468 = vmatprep.subr.mxu0 %v2415_v29  ;;  %v2644_v49 = vld [vmem:[#allocation15 + $0x680] sm:$0xff]  ;;  %v2752_v29 = vld [vmem:[#allocation15 + $0x770] sm:$0xff] }
 0x347   :  { %2580 = vmatprep.subr.mxu1 %v2523_v12  ;;  %2469 = vmatpush1.msra.mxu0 %v2414_v60  ;;  %v2643_v12 = vld [vmem:[#allocation15 + $0x678] sm:$0xff]  ;;  %v2751_v60 = vld [vmem:[#allocation15 + $0x768] sm:$0xff] }
 0x348   :  { %2581 = vmatpush1.msra.mxu1 %v2522_v61  ;;  %2470 = vmatprep.subr.mxu0 %v2413_v4  ;;  %v2642_v61 = vld [vmem:[#allocation15 + $0x670] sm:$0xff]  ;;  %v2750_v4 = vld [vmem:[#allocation15 + $0x760] sm:$0xff] }
 0x349   :  { %2582 = vmatprep.subr.mxu1 %v2521_v34  ;;  %2471 = vmatpush1.msra.mxu0 %v2412_v6  ;;  %v2641_v34 = vld [vmem:[#allocation15 + $0x668] sm:$0xff]  ;;  %v2749_v6 = vld [vmem:[#allocation15 + $0x758] sm:$0xff] }
 0x34a   :  { %2583 = vmatpush1.msra.mxu1 %v2520_v7  ;;  %2472 = vmatprep.subr.mxu0 %v2411_v5  ;;  %v2640_v7 = vld [vmem:[#allocation15 + $0x660] sm:$0xff]  ;;  %v2748_v5 = vld [vmem:[#allocation15 + $0x750] sm:$0xff] }
 0x34b   :  { %2584 = vmatprep.subr.mxu1 %v2519_v13  ;;  %2473 = vmatpush1.msra.mxu0 %v2410_v62  ;;  %v2639_v13 = vld [vmem:[#allocation15 + $0x658] sm:$0xff]  ;;  %v2747_v62 = vld [vmem:[#allocation15 + $0x748] sm:$0xff] }
 0x34c   :  { %2585 = vmatpush1.msra.mxu1 %v2518_v8  ;;  %2618 = vmatprep.mubr.f32.mxu1 %v4337_v38  ;;  %v2638_v8 = vld [vmem:[#allocation15 + $0x650] sm:$0xff] }
 0x34d   :  { %2474 = vmatprep.subr.mxu0 %v2409_v15  ;;  %2619 = vmatmul.mubr.f32.vlgmr.msra.gmra.mxu1 %v4810_v26  ;;  %v2763_v26 = vld [vmem:[#allocation15 + $0x7c8] sm:$0xff]  ;;  %v2746_v15 = vld [vmem:[#allocation15 + $0x740] sm:$0xff] }
 0x34e   :  { %2774 = vmatprep.subr.mxu1 %v2769_v11  ;;  %2475 = vmatpush1.msra.mxu0 %v2408_v56  ;;  %v2637_v11 = vld [vmem:[#allocation15 + $0x648] sm:$0xff]  ;;  %v2745_v56 = vld [vmem:[#allocation15 + $0x738] sm:$0xff] }
 0x34f   :  { %2508 = vmatprep.mubr.f32.mxu0 %v4337_v38  ;;  %2775 = vmatpush1.msra.mxu1 %v2768_v22  ;;  %v2636_v22 = vld [vmem:[#allocation15 + $0x640] sm:$0xff] }
 0x350   :  { %2509 = vmatmul.mubr.f32.vlgmr.msra.gmra.mxu0 %v4813_v42  ;;  %2664 = vmatprep.subr.mxu0 %v2659_v63  ;;  %v2760_v42 = vld [vmem:[#allocation15 + $0x7b0] sm:$0xff] }
 0x351   :  { %2776 = vmatprep.subr.mxu1 %v2767_v18  ;;  %2665 = vmatpush1.msra.mxu0 %v2658_v9  ;;  %v2744_v63 = vld [vmem:[#allocation15 + $0x730] sm:$0xff]  ;;  %v2635_v18 = vld [vmem:[#allocation15 + $0x638] sm:$0xff]  ;;  %v2743_v9 = vld [vmem:[#allocation15 + $0x728] sm:$0xff] }
 0x352   :  { %2777 = vmatpush1.msra.mxu1 %v2766_v41  ;;  %2666 = vmatprep.subr.mxu0 %v2657_v10  ;;  %v2634_v41 = vld [vmem:[#allocation15 + $0x630] sm:$0xff]  ;;  %v2742_v10 = vld [vmem:[#allocation15 + $0x720] sm:$0xff] }
 0x353   :  { %2778 = vmatprep.subr.mxu1 %v2765_v16  ;;  %2667 = vmatpush1.msra.mxu0 %v2656_v30  ;;  %v2633_v16 = vld [vmem:[#allocation15 + $0x628] sm:$0xff]  ;;  %v2741_v30 = vld [vmem:[#allocation15 + $0x718] sm:$0xff] }
 0x354   :  { %2779 = vmatpush1.msra.mxu1 %v2764_v19  ;;  %2668 = vmatprep.subr.mxu0 %v2655_v39  ;;  %v2632_v19 = vld [vmem:[#allocation15 + $0x620] sm:$0xff]  ;;  %v2740_v39 = vld [vmem:[#allocation15 + $0x710] sm:$0xff] }
 0x355   :  { %2780 = vmatprep.subr.mxu1 %v2763_v26  ;;  %2669 = vmatpush1.msra.mxu0 %v2654_v32  ;;  %v2631_v26 = vld [vmem:[#allocation15 + $0x618] sm:$0xff]  ;;  %v2739_v32 = vld [vmem:[#allocation15 + $0x708] sm:$0xff] }
 0x356   :  { %2781 = vmatpush1.msra.mxu1 %v2762_v21  ;;  %2670 = vmatprep.subr.mxu0 %v2653_v2  ;;  %v2630_v21 = vld [vmem:[#allocation15 + $0x610] sm:$0xff]  ;;  %v2738_v2 = vld [vmem:[#allocation15 + $0x700] sm:$0xff] }
 0x357   :  { %2782 = vmatprep.subr.mxu1 %v2761_v23  ;;  %2671 = vmatpush1.msra.mxu0 %v2652_v51  ;;  %v2629_v23 = vld [vmem:[#allocation15 + $0x608] sm:$0xff]  ;;  %v2628_v51 = vld [vmem:[#allocation15 + $0x600] sm:$0xff] }
 0x358   :  { %2783 = vmatpush1.msra.mxu1 %v2760_v42  ;;  %2672 = vmatprep.subr.mxu0 %v2651_v25  ;;  %v2927_v42 = vld [vmem:[#allocation18 + $0x1e8] sm:$0xff]  ;;  %v2929_v25 = vld [vmem:[#allocation18 + $0x1f8] sm:$0xff] }
 0x359   :  { %2784 = vmatprep.subr.mxu1 %v2759_v46  ;;  %2673 = vmatpush1.msra.mxu0 %v2650_v33  ;;  %v2926_v46 = vld [vmem:[#allocation18 + $0x1e0] sm:$0xff]  ;;  %v2928_v33 = vld [vmem:[#allocation18 + $0x1f0] sm:$0xff] }
 0x35a   :  { %2785 = vmatpush1.msra.mxu1 %v2758_v55  ;;  %2674 = vmatprep.subr.mxu0 %v2649_v35  ;;  %v2923_v55 = vld [vmem:[#allocation18 + $0x1c8] sm:$0xff]  ;;  %v2925_v35 = vld [vmem:[#allocation18 + $0x1d8] sm:$0xff] }
 0x35b   :  { %2786 = vmatprep.subr.mxu1 %v2757_v57  ;;  %2675 = vmatpush1.msra.mxu0 %v2648_v36  ;;  %v2922_v57 = vld [vmem:[#allocation18 + $0x1c0] sm:$0xff]  ;;  %v2924_v36 = vld [vmem:[#allocation18 + $0x1d0] sm:$0xff] }
 0x35c   :  { %2787 = vmatpush1.msra.mxu1 %v2756_v47  ;;  %2676 = vmatprep.subr.mxu0 %v2647_v37  ;;  %v2919_v47 = vld [vmem:[#allocation18 + $0x1a8] sm:$0xff]  ;;  %v2918_v37 = vld [vmem:[#allocation18 + $0x1a0] sm:$0xff] }
 0x35d   :  { %2788 = vmatprep.subr.mxu1 %v2755_v50  ;;  %2677 = vmatpush1.msra.mxu0 %v2646_v52  ;;  %v2917_v50 = vld [vmem:[#allocation18 + $0x198] sm:$0xff]  ;;  %v2914_v52 = vld [vmem:[#allocation18 + $0x180] sm:$0xff] }
 0x35e   :  { %2789 = vmatpush1.msra.mxu1 %v2754_v1  ;;  %2678 = vmatprep.subr.mxu0 %v2645_v58  ;;  %v2916_v1 = vld [vmem:[#allocation18 + $0x190] sm:$0xff]  ;;  %v2911_v58 = vld [vmem:[#allocation18 + $0x168] sm:$0xff] }
 0x35f   :  { %2790 = vmatprep.subr.mxu1 %v2753_v59  ;;  %2679 = vmatpush1.msra.mxu0 %v2644_v49  ;;  %v2913_v59 = vld [vmem:[#allocation18 + $0x178] sm:$0xff]  ;;  %v2910_v49 = vld [vmem:[#allocation18 + $0x160] sm:$0xff] }
 0x360   :  { %2791 = vmatpush1.msra.mxu1 %v2752_v29  ;;  %2680 = vmatprep.subr.mxu0 %v2643_v12  ;;  %v2912_v29 = vld [vmem:[#allocation18 + $0x170] sm:$0xff]  ;;  %v2907_v12 = vld [vmem:[#allocation18 + $0x148] sm:$0xff] }
 0x361   :  { %2792 = vmatprep.subr.mxu1 %v2751_v60  ;;  %2681 = vmatpush1.msra.mxu0 %v2642_v61  ;;  %v2909_v60 = vld [vmem:[#allocation18 + $0x158] sm:$0xff]  ;;  %v2906_v61 = vld [vmem:[#allocation18 + $0x140] sm:$0xff] }
 0x362   :  { %2793 = vmatpush1.msra.mxu1 %v2750_v4  ;;  %2682 = vmatprep.subr.mxu0 %v2641_v34  ;;  %v2908_v4 = vld [vmem:[#allocation18 + $0x150] sm:$0xff]  ;;  %v2903_v34 = vld [vmem:[#allocation18 + $0x128] sm:$0xff] }
 0x363   :  { %2794 = vmatprep.subr.mxu1 %v2749_v6  ;;  %2683 = vmatpush1.msra.mxu0 %v2640_v7  ;;  %v2905_v6 = vld [vmem:[#allocation18 + $0x138] sm:$0xff]  ;;  %v2902_v7 = vld [vmem:[#allocation18 + $0x120] sm:$0xff] }
 0x364   :  { %2795 = vmatpush1.msra.mxu1 %v2748_v5  ;;  %2684 = vmatprep.subr.mxu0 %v2639_v13  ;;  %v2904_v5 = vld [vmem:[#allocation18 + $0x130] sm:$0xff]  ;;  %v2899_v13 = vld [vmem:[#allocation18 + $0x108] sm:$0xff] }
 0x365   :  { %2796 = vmatprep.subr.mxu1 %v2747_v62  ;;  %2685 = vmatpush1.msra.mxu0 %v2638_v8  ;;  %v2901_v62 = vld [vmem:[#allocation18 + $0x118] sm:$0xff]  ;;  %v2898_v8 = vld [vmem:[#allocation18 + $0x100] sm:$0xff] }
 0x366   :  { %2797 = vmatpush1.msra.mxu1 %v2746_v15  ;;  %2686 = vmatprep.subr.mxu0 %v2637_v11  ;;  %v2900_v15 = vld [vmem:[#allocation18 + $0x110] sm:$0xff]  ;;  %v2895_v11 = vld [vmem:[#allocation18 + $0xe8] sm:$0xff] }
 0x367   :  { %2798 = vmatprep.subr.mxu1 %v2745_v56  ;;  %2687 = vmatpush1.msra.mxu0 %v2636_v22  ;;  %v2897_v56 = vld [vmem:[#allocation18 + $0xf8] sm:$0xff]  ;;  %v2894_v22 = vld [vmem:[#allocation18 + $0xe0] sm:$0xff] }
 0x368   :  { %2799 = vmatpush1.msra.mxu1 %v2744_v63  ;;  %2688 = vmatprep.subr.mxu0 %v2635_v18  ;;  %v2896_v63 = vld [vmem:[#allocation18 + $0xf0] sm:$0xff]  ;;  %v2891_v18 = vld [vmem:[#allocation18 + $0xc8] sm:$0xff] }
 0x369   :  { %2800 = vmatprep.subr.mxu1 %v2743_v9  ;;  %2689 = vmatpush1.msra.mxu0 %v2634_v41  ;;  %v2893_v9 = vld [vmem:[#allocation18 + $0xd8] sm:$0xff]  ;;  %v2890_v41 = vld [vmem:[#allocation18 + $0xc0] sm:$0xff] }
 0x36a   :  { %2801 = vmatpush1.msra.mxu1 %v2742_v10  ;;  %2690 = vmatprep.subr.mxu0 %v2633_v16  ;;  %v2892_v10 = vld [vmem:[#allocation18 + $0xd0] sm:$0xff]  ;;  %v2887_v16 = vld [vmem:[#allocation18 + $0xa8] sm:$0xff] }
 0x36b   :  { %2802 = vmatprep.subr.mxu1 %v2741_v30  ;;  %2691 = vmatpush1.msra.mxu0 %v2632_v19  ;;  %v2889_v30 = vld [vmem:[#allocation18 + $0xb8] sm:$0xff]  ;;  %v2886_v19 = vld [vmem:[#allocation18 + $0xa0] sm:$0xff] }
 0x36c   :  { %2803 = vmatpush1.msra.mxu1 %v2740_v39  ;;  %2692 = vmatprep.subr.mxu0 %v2631_v26  ;;  %v2888_v39 = vld [vmem:[#allocation18 + $0xb0] sm:$0xff]  ;;  %v2883_v26 = vld [vmem:[#allocation18 + $0x88] sm:$0xff] }
 0x36d   :  { %2804 = vmatprep.subr.mxu1 %v2739_v32  ;;  %2693 = vmatpush1.msra.mxu0 %v2630_v21  ;;  %v2885_v32 = vld [vmem:[#allocation18 + $0x98] sm:$0xff]  ;;  %v2882_v21 = vld [vmem:[#allocation18 + $0x80] sm:$0xff] }
 0x36e   :  { %2805 = vmatpush1.msra.mxu1 %v2738_v2  ;;  %2838 = vmatprep.mubr.f32.mxu1 %v4337_v38  ;;  %v2884_v2 = vld [vmem:[#allocation18 + $0x90] sm:$0xff] }
 0x36f   :  { %2694 = vmatprep.subr.mxu0 %v2629_v23  ;;  %2839 = vmatmul.mubr.f32.vlgmr.msra.gmra.mxu1 %v4816_v0  ;;  %v2921_v0 = vld [vmem:[#allocation18 + $0x1b8] sm:$0xff]  ;;  %v2879_v23 = vld [vmem:[#allocation18 + $0x68] sm:$0xff] }
 0x370   :  { %2695 = vmatpush1.msra.mxu0 %v2628_v51  ;;  %2728 = vmatprep.mubr.f32.mxu0 %v4337_v38  ;;  %v2920_v38 = vld [vmem:[#allocation18 + $0x1b0] sm:$0xff]  ;;  %v2881_v51 = vld [vmem:[#allocation18 + $0x78] sm:$0xff] }
 0x371   :  { %2729 = vmatmul.mubr.f32.vlgmr.msra.gmra.mxu0 %v4819_v48  ;;  %3016 = vmatprep.subr.mxu0 %v2927_v42  ;;  %v2915_v48 = vld [vmem:[#allocation18 + $0x188] sm:$0xff]  ;;  %v2878_v42 = vld [vmem:[#allocation18 + $0x60] sm:$0xff] }
 0x372   :  { %3087 = vmatprep.subr.mxu1 %v2929_v25  ;;  %3017 = vmatpush1.msra.mxu0 %v2926_v46  ;;  %v2880_v25 = vld [vmem:[#allocation18 + $0x70] sm:$0xff]  ;;  %v2875_v46 = vld [vmem:[#allocation18 + $0x48] sm:$0xff] }
 0x373   :  { %3088 = vmatpush1.msra.mxu1 %v2928_v33  ;;  %3018 = vmatprep.subr.mxu0 %v2923_v55  ;;  %v2877_v33 = vld [vmem:[#allocation18 + $0x58] sm:$0xff]  ;;  %v2874_v55 = vld [vmem:[#allocation18 + $0x40] sm:$0xff] }
 0x374   :  { %3089 = vmatprep.subr.mxu1 %v2925_v35  ;;  %3019 = vmatpush1.msra.mxu0 %v2922_v57  ;;  %v2876_v35 = vld [vmem:[#allocation18 + $0x50] sm:$0xff]  ;;  %v1953_v57 = vld [vmem:[#allocation17] sm:$0x3] }
 0x375   :  { %3090 = vmatpush1.msra.mxu1 %v2924_v36  ;;  %3020 = vmatprep.subr.mxu0 %v2919_v47  ;;  %v1958_v47 = vrot.slane %v1953_v57, %v4572_v43 }
 0x376   :  { %3091 = vmatprep.subr.mxu1 %v2921_v0  ;;  %3021 = vmatpush1.msra.mxu0 %v2918_v37  ;;  %v1962_v0 = vrot.slane %v1953_v57, %v4575_v44  ;;  %v2990_v57 = vld [vmem:[#allocation18 + $0x3e0] sm:$0xff] }
 0x377   :  { %3092 = vmatpush1.msra.mxu1 %v2920_v38  ;;  %3022 = vmatprep.subr.mxu0 %v2915_v48 }
 0x378   :  { %3093 = vmatprep.subr.mxu1 %v2917_v50  ;;  %3023 = vmatpush1.msra.mxu0 %v2914_v52 }
 0x379   :  { %3094 = vmatpush1.msra.mxu1 %v2916_v1  ;;  %3024 = vmatprep.subr.mxu0 %v2911_v58 }
 0x37a   :  { %3095 = vmatprep.subr.mxu1 %v2913_v59  ;;  %3025 = vmatpush1.msra.mxu0 %v2910_v49 }
 0x37b   :  { %3096 = vmatpush1.msra.mxu1 %v2912_v29  ;;  %3026 = vmatprep.subr.mxu0 %v2907_v12 }
 0x37c   :  { %3097 = vmatprep.subr.mxu1 %v2909_v60  ;;  %3027 = vmatpush1.msra.mxu0 %v2906_v61 }
 0x37d   :  { %3098 = vmatpush1.msra.mxu1 %v2908_v4  ;;  %3028 = vmatprep.subr.mxu0 %v2903_v34 }
 0x37e   :  { %3099 = vmatprep.subr.mxu1 %v2905_v6  ;;  %3029 = vmatpush1.msra.mxu0 %v2902_v7 }
 0x37f   :  { %3100 = vmatpush1.msra.mxu1 %v2904_v5  ;;  %3030 = vmatprep.subr.mxu0 %v2899_v13 }
 0x380   :  { %3101 = vmatprep.subr.mxu1 %v2901_v62  ;;  %3031 = vmatpush1.msra.mxu0 %v2898_v8 }
 0x381   :  { %3102 = vmatpush1.msra.mxu1 %v2900_v15  ;;  %3032 = vmatprep.subr.mxu0 %v2895_v11 }
 0x382   :  { %3103 = vmatprep.subr.mxu1 %v2897_v56  ;;  %3033 = vmatpush1.msra.mxu0 %v2894_v22 }
 0x383   :  { %3104 = vmatpush1.msra.mxu1 %v2896_v63  ;;  %3034 = vmatprep.subr.mxu0 %v2891_v18 }
 0x384   :  { %3105 = vmatprep.subr.mxu1 %v2893_v9  ;;  %3035 = vmatpush1.msra.mxu0 %v2890_v41 }
 0x385   :  { %3106 = vmatpush1.msra.mxu1 %v2892_v10  ;;  %3036 = vmatprep.subr.mxu0 %v2887_v16 }
 0x386   :  { %3107 = vmatprep.subr.mxu1 %v2889_v30  ;;  %3037 = vmatpush1.msra.mxu0 %v2886_v19 }
 0x387   :  { %3108 = vmatpush1.msra.mxu1 %v2888_v39  ;;  %3038 = vmatprep.subr.mxu0 %v2883_v26 }
 0x388   :  { %3109 = vmatprep.subr.mxu1 %v2885_v32  ;;  %3039 = vmatpush1.msra.mxu0 %v2882_v21  ;;  %v2871_v21 = vld [vmem:[#allocation18 + $0x28] sm:$0xff] }
 0x389   :  { %3110 = vmatpush1.msra.mxu1 %v2884_v2  ;;  %3040 = vmatprep.subr.mxu0 %v2879_v23  ;;  %v2873_v2 = vld [vmem:[#allocation18 + $0x38] sm:$0xff]  ;;  %v2870_v23 = vld [vmem:[#allocation18 + $0x20] sm:$0xff] }
 0x38a   :  { %3111 = vmatprep.subr.mxu1 %v2881_v51  ;;  %3041 = vmatpush1.msra.mxu0 %v2878_v42  ;;  %v2872_v51 = vld [vmem:[#allocation18 + $0x30] sm:$0xff]  ;;  %v2867_v42 = vld [vmem:[#allocation18 + $0x8] sm:$0xff] }
 0x38b   :  { %3112 = vmatpush1.msra.mxu1 %v2880_v25  ;;  %3042 = vmatprep.subr.mxu0 %v2875_v46  ;;  %v2869_v25 = vld [vmem:[#allocation18 + $0x18] sm:$0xff]  ;;  %v2866_v46 = vld [vmem:[#allocation18] sm:$0xff] }
 0x38c   :  { %3113 = vmatprep.subr.mxu1 %v2877_v33  ;;  %3043 = vmatpush1.msra.mxu0 %v2874_v55  ;;  %v2868_v33 = vld [vmem:[#allocation18 + $0x10] sm:$0xff]  ;;  %v2991_v55 = vld [vmem:[#allocation18 + $0x3e8] sm:$0xff] }
 0x38d   :  { %3114 = vmatpush1.msra.mxu1 %v2876_v35  ;;  %3044 = vmatprep.subr.mxu0 %v2871_v21  ;;  %v2993_v35 = vld [vmem:[#allocation18 + $0x3f8] sm:$0xff]  ;;  %v2951_v21 = vld [vmem:[#allocation18 + $0x2a8] sm:$0xff] }
 0x38e   :  { %3115 = vmatprep.subr.mxu1 %v2873_v2  ;;  %3045 = vmatpush1.msra.mxu0 %v2870_v23  ;;  %v2953_v2 = vld [vmem:[#allocation18 + $0x2b8] sm:$0xff]  ;;  %v2950_v23 = vld [vmem:[#allocation18 + $0x2a0] sm:$0xff] }
 0x38f   :  { %3116 = vmatpush1.msra.mxu1 %v2872_v51  ;;  %3046 = vmatprep.subr.mxu0 %v2867_v42  ;;  %v2952_v51 = vld [vmem:[#allocation18 + $0x2b0] sm:$0xff]  ;;  %v2947_v42 = vld [vmem:[#allocation18 + $0x288] sm:$0xff] }
 0x390   :  { %3117 = vmatprep.subr.mxu1 %v2869_v25  ;;  %3047 = vmatpush1.msra.mxu0 %v2866_v46  ;;  %v2949_v25 = vld [vmem:[#allocation18 + $0x298] sm:$0xff]  ;;  %v2946_v46 = vld [vmem:[#allocation18 + $0x280] sm:$0xff] }
 0x391   :  { %3118 = vmatpush1.msra.mxu1 %v2868_v33  ;;  %3048 = vmatprep.subr.mxu0 %v2991_v55  ;;  %v2948_v33 = vld [vmem:[#allocation18 + $0x290] sm:$0xff]  ;;  %v2943_v55 = vld [vmem:[#allocation18 + $0x268] sm:$0xff] }
 0x392   :  { %3119 = vmatprep.subr.mxu1 %v2993_v35  ;;  %3049 = vmatpush2.msra.mxu0 %v2990_v57  ;;  %v2945_v35 = vld [vmem:[#allocation18 + $0x278] sm:$0xff]  ;;  %v2942_v57 = vld [vmem:[#allocation18 + $0x260] sm:$0xff] }
 0x3cb   :  { %v2180_v37 = vpop.f32.mrf.mxu1 }
 0x3cd   :  { %v2071_v36 = vpop.f32.mrf.mxu0  ;;  %v2182_v1 = vpop.f32.mrf.mxu1 }
 0x3ce   :  { %v2076_v48 = vadd.f32 %v2071_v36, %v1958_v47  ;;  %v2992_v36 = vld [vmem:[#allocation18 + $0x3f0] sm:$0xff]  ;;  %v2987_v47 = vld [vmem:[#allocation18 + $0x3c8] sm:$0xff] }
 0x3cf   :  { %v2073_v38 = vpop.f32.mrf.mxu0  ;;  %3120 = vmatpush2.msra.mxu1 %v2992_v36  ;;  %3050 = vmatprep.subr.mxu0 %v2987_v47  ;;  %v2944_v36 = vld [vmem:[#allocation18 + $0x270] sm:$0xff]  ;;  %v2939_v47 = vld [vmem:[#allocation18 + $0x248] sm:$0xff] }
 0x3d0   :  { %v2077_v52 = vadd.f32 %v2073_v38, %v1962_v0  ;;  %v2185_v58 = vadd.f32 %v2180_v37, %v2076_v48  ;;  %v2989_v0 = vld [vmem:[#allocation18 + $0x3d8] sm:$0xff]  ;;  %v2986_v37 = vld [vmem:[#allocation18 + $0x3c0] sm:$0xff]  ;;  %v2988_v38 = vld [vmem:[#allocation18 + $0x3d0] sm:$0xff] }
 0x3d1   :  { %3121 = vmatprep.subr.mxu1 %v2989_v0  ;;  %3051 = vmatpush2.msra.mxu0 %v2986_v37  ;;  %v2983_v48 = vld [vmem:[#allocation18 + $0x3a8] sm:$0xff]  ;;  %v2941_v0 = vld [vmem:[#allocation18 + $0x258] sm:$0xff]  ;;  %v2938_v37 = vld [vmem:[#allocation18 + $0x240] sm:$0xff] }
 0x3d2   :  { %v2186_v12 = vadd.f32 %v2182_v1, %v2077_v52  ;;  %3122 = vmatpush2.msra.mxu1 %v2988_v38  ;;  %3052 = vmatprep.subr.mxu0 %v2983_v48  ;;  %v2982_v52 = vld [vmem:[#allocation18 + $0x3a0] sm:$0xff]  ;;  %v2984_v1 = vld [vmem:[#allocation18 + $0x3b0] sm:$0xff]  ;;  %v2935_v48 = vld [vmem:[#allocation18 + $0x228] sm:$0xff] }
 0x3d3   :  { %3053 = vmatpush2.msra.mxu0 %v2982_v52  ;;  %v2940_v38 = vld [vmem:[#allocation18 + $0x250] sm:$0xff]  ;;  %v2934_v52 = vld [vmem:[#allocation18 + $0x220] sm:$0xff] }
 0x3eb   :  { %v2400_v59 = vpop.f32.mrf.mxu1 }
 0x3ed   :  { %v2402_v4 = vpop.f32.mrf.mxu1 }
 0x3ee   :  { %v2290_v50 = vpop.f32.mrf.mxu0 }
 0x3ef   :  { %v2295_v29 = vadd.f32 %v2290_v50, %v2185_v58  ;;  %v2985_v50 = vld [vmem:[#allocation18 + $0x3b8] sm:$0xff]  ;;  %v2979_v58 = vld [vmem:[#allocation18 + $0x388] sm:$0xff] }
 0x3f0   :  { %v2292_v49 = vpop.f32.mrf.mxu0  ;;  %3123 = vmatprep.subr.mxu1 %v2985_v50  ;;  %3054 = vmatprep.subr.mxu0 %v2979_v58  ;;  %v2937_v50 = vld [vmem:[#allocation18 + $0x238] sm:$0xff]  ;;  %v2931_v58 = vld [vmem:[#allocation18 + $0x208] sm:$0xff] }
 0x3f1   :  { %v2296_v61 = vadd.f32 %v2292_v49, %v2186_v12  ;;  %v2405_v34 = vadd.f32 %v2400_v59, %v2295_v29  ;;  %3124 = vmatpush2.msra.mxu1 %v2984_v1  ;;  %v2981_v59 = vld [vmem:[#allocation18 + $0x398] sm:$0xff]  ;;  %v2978_v49 = vld [vmem:[#allocation18 + $0x380] sm:$0xff]  ;;  %v2980_v29 = vld [vmem:[#allocation18 + $0x390] sm:$0xff] }
 0x3f2   :  { %3125 = vmatprep.subr.mxu1 %v2981_v59  ;;  %3055 = vmatpush2.msra.mxu0 %v2978_v49  ;;  %v2975_v12 = vld [vmem:[#allocation18 + $0x368] sm:$0xff]  ;;  %v2936_v1 = vld [vmem:[#allocation18 + $0x230] sm:$0xff]  ;;  %v2933_v59 = vld [vmem:[#allocation18 + $0x218] sm:$0xff] }
 0x3f3   :  { %v2406_v13 = vadd.f32 %v2402_v4, %v2296_v61  ;;  %3126 = vmatpush2.msra.mxu1 %v2980_v29  ;;  %3056 = vmatprep.subr.mxu0 %v2975_v12  ;;  %v2974_v61 = vld [vmem:[#allocation18 + $0x360] sm:$0xff]  ;;  %v2976_v4 = vld [vmem:[#allocation18 + $0x370] sm:$0xff]  ;;  %v3274_v12 = vld [vmem:[#allocation20 + $0x1e8] sm:$0xff] }
 0x3f4   :  { %3057 = vmatpush2.msra.mxu0 %v2974_v61  ;;  %v2930_v49 = vld [vmem:[#allocation18 + $0x200] sm:$0xff]  ;;  %v2932_v29 = vld [vmem:[#allocation18 + $0x210] sm:$0xff] }
 0x40d   :  { %v2620_v6 = vpop.f32.mrf.mxu1 }
 0x40f   :  { %v2622_v8 = vpop.f32.mrf.mxu1 }
 0x410   :  { %v2510_v60 = vpop.f32.mrf.mxu0 }
 0x411   :  { %v2515_v5 = vadd.f32 %v2510_v60, %v2405_v34  ;;  %v2977_v60 = vld [vmem:[#allocation18 + $0x378] sm:$0xff]  ;;  %v2971_v34 = vld [vmem:[#allocation18 + $0x348] sm:$0xff] }
 0x412   :  { %v2512_v7 = vpop.f32.mrf.mxu0  ;;  %3127 = vmatprep.subr.mxu1 %v2977_v60  ;;  %3058 = vmatprep.subr.mxu0 %v2971_v34  ;;  %v3402_v60 = vld [vmem:[#allocation20 + $0x5e8] sm:$0xff] }
 0x413   :  { %v2516_v62 = vadd.f32 %v2512_v7, %v2406_v13  ;;  %v2625_v15 = vadd.f32 %v2620_v6, %v2515_v5  ;;  %3128 = vmatpush2.msra.mxu1 %v2976_v4  ;;  %v2973_v6 = vld [vmem:[#allocation18 + $0x358] sm:$0xff]  ;;  %v2970_v7 = vld [vmem:[#allocation18 + $0x340] sm:$0xff]  ;;  %v2972_v5 = vld [vmem:[#allocation18 + $0x350] sm:$0xff] }
 0x414   :  { %3129 = vmatprep.subr.mxu1 %v2973_v6  ;;  %v2967_v13 = vld [vmem:[#allocation18 + $0x328] sm:$0xff]  ;;  %3059 = vmatpush2.msra.mxu0 %v2970_v7 }
 0x415   :  { %v2626_v63 = vadd.f32 %v2622_v8, %v2516_v62  ;;  %3130 = vmatpush2.msra.mxu1 %v2972_v5  ;;  %v2969_v62 = vld [vmem:[#allocation18 + $0x338] sm:$0xff]  ;;  %v2966_v8 = vld [vmem:[#allocation18 + $0x320] sm:$0xff]  ;;  %3060 = vmatprep.subr.mxu0 %v2967_v13 }
 0x416   :  { %3131 = vmatprep.subr.mxu1 %v2969_v62  ;;  %3061 = vmatpush2.msra.mxu0 %v2966_v8  ;;  %v3210_v62 = vmul.f32 %v4823_v24, %v4755_v40  ;;  %v3212_v8 = vmul.f32 %v4823_v24, %v4775_v3  ;;  %v3398_v40 = vld [vmem:[#allocation20 + $0x5c8] sm:$0xff]  ;;  %v3207_v3 = vmul.f32 %v4821_v27, %v4769_v17  ;;  %v3393_v17 = vld [vmem:[#allocation20 + $0x5a0] sm:$0xff] }
 0x42f   :  { %v2840_v11 = vpop.f32.mrf.mxu1 }
 0x431   :  { %v2730_v56 = vpop.f32.mrf.mxu0  ;;  %v2842_v10 = vpop.f32.mrf.mxu1 }
 0x432   :  { %v2735_v22 = vadd.f32 %v2730_v56, %v2625_v15  ;;  %v2968_v15 = vld [vmem:[#allocation18 + $0x330] sm:$0xff]  ;;  %v2965_v56 = vld [vmem:[#allocation18 + $0x318] sm:$0xff] }
 0x433   :  { %v2732_v18 = vpop.f32.mrf.mxu0  ;;  %3132 = vmatpush2.msra.mxu1 %v2968_v15 }
 0x434   :  { %v4856_v9 = vadd.f32 %v2840_v11, %v2735_v22  ;;  %v2736_v41 = vadd.f32 %v2732_v18, %v2626_v63  ;;  %v2963_v11 = vld [vmem:[#allocation18 + $0x308] sm:$0xff]  ;;  %v2962_v22 = vld [vmem:[#allocation18 + $0x300] sm:$0xff]  ;;  %v2964_v63 = vld [vmem:[#allocation18 + $0x310] sm:$0xff]  ;;  %3133 = vmatprep.subr.mxu1 %v2965_v56 }
 0x435   :  { %v2959_v18 = vld [vmem:[#allocation18 + $0x2e8] sm:$0xff]  ;;  %3062 = vmatprep.subr.mxu0 %v2963_v11  ;;  %3134 = vmatpush2.msra.mxu1 %v2964_v63  ;;  %v3273_v63 = vld [vmem:[#allocation20 + $0x1e0] sm:$0xff] }
 0x436   :  { %v4858_v16 = vadd.f32 %v2842_v10, %v2736_v41  ;;  %v2847_v30 = vmul.f32 %v4856_v9, %v4856_v9  ;;  %v2961_v41 = vld [vmem:[#allocation18 + $0x2f8] sm:$0xff]  ;;  %v2958_v10 = vld [vmem:[#allocation18 + $0x2e0] sm:$0xff]  ;;  %3063 = vmatpush2.msra.mxu0 %v2962_v22  ;;  %v3501_v22 = vrot.slane %v3210_v62, 7 }
 0x437   :  { %3064 = vmatprep.subr.mxu0 %v2959_v18  ;;  %3135 = vmatprep.subr.mxu1 %v2961_v41  ;;  %v3401_v18 = vld [vmem:[#allocation20 + $0x5e0] sm:$0xff]  ;;  %v3505_v41 = vrot.slane %v3212_v8, 7  ;;  %v3226_v8 = vld [vmem:[#allocation20 + $0x68] sm:$0xff] }
 0x438   :  { %v2848_v19 = vmul.f32 %v4858_v16, %v4858_v16  ;;  %v2850_v39 = vsel %vm2849_vm11, %v2847_v30, 0.0  ;;  %v2960_v30 = vld [vmem:[#allocation18 + $0x2f0] sm:$0xff]  ;;  %3065 = vmatpush2.msra.mxu0 %v2958_v10  ;;  %v3270_v10 = vld [vmem:[#allocation20 + $0x1c8] sm:$0xff]  ;;  %v3357_v62 = vld [vmem:[#allocation20 + $0x480] sm:$0xff] }
 0x439   :  { %3136 = vmatpush2.msra.mxu1 %v2960_v30  ;;  %v3205_v30 = vmul.f32 %v4821_v27, %v4751_v53  ;;  %v3266_v53 = vld [vmem:[#allocation20 + $0x1a8] sm:$0xff] }
 0x43a   :  { %v2851_v26 = vsel %vm2849_vm11, %v2848_v19, 0.0  ;;  %v2955_v19 = vld [vmem:[#allocation18 + $0x2c8] sm:$0xff] }
 0x43b   :  { %v2852_v32 = vadd.f32 %v2851_v26, %v2850_v39  ;;  %v2957_v39 = vld [vmem:[#allocation18 + $0x2d8] sm:$0xff]  ;;  %v2954_v26 = vld [vmem:[#allocation18 + $0x2c0] sm:$0xff]  ;;  %3066 = vmatprep.subr.mxu0 %v2955_v19  ;;  %v4877_v24 = vsel %vm2002_vm10, %v3501_v22, %v3205_v30  ;;  %v4881_v19 = vsel %vm2002_vm10, %v3505_v41, %v3207_v3  ;;  %v3262_v27 = vld [vmem:[#allocation20 + $0x188] sm:$0xff] }
 0x43c   :  { %3137 = vmatprep.subr.mxu1 %v2957_v39  ;;  %3067 = vmatpush2.msra.mxu0 %v2954_v26  ;;  %v3394_v39 = vld [vmem:[#allocation20 + $0x5a8] sm:$0xff]  ;;  %v3265_v26 = vld [vmem:[#allocation20 + $0x1a0] sm:$0xff] }
 0x43d   :  { %2853 = vadd.xlane.f32.xlu0 %v2852_v32  ;;  %v2956_v32 = vld [vmem:[#allocation18 + $0x2d0] sm:$0xff]  ;;  %3068 = vmatprep.subr.mxu0 %v2951_v21  ;;  %v3261_v21 = vld [vmem:[#allocation20 + $0x180] sm:$0xff]  ;;  %v3222_v22 = vld [vmem:[#allocation20 + $0x48] sm:$0xff] }
 0x43e   :  { %3138 = vmatpush2.msra.mxu1 %v2956_v32  ;;  %3069 = vmatpush2.msra.mxu0 %v2950_v23  ;;  %v3390_v32 = vld [vmem:[#allocation20 + $0x588] sm:$0xff]  ;;  %v3349_v41 = vld [vmem:[#allocation20 + $0x440] sm:$0xff] }
 0x43f   :  { %3139 = vmatprep.subr.mxu1 %v2953_v2  ;;  %3070 = vmatprep.subr.mxu0 %v2947_v42  ;;  %v3389_v2 = vld [vmem:[#allocation20 + $0x580] sm:$0xff]  ;;  %v3258_v23 = vld [vmem:[#allocation20 + $0x168] sm:$0xff] }
 0x440   :  { %3140 = vmatpush2.msra.mxu1 %v2952_v51  ;;  %3071 = vmatpush2.msra.mxu0 %v2946_v46  ;;  %v3386_v51 = vld [vmem:[#allocation20 + $0x568] sm:$0xff]  ;;  %v3257_v42 = vld [vmem:[#allocation20 + $0x160] sm:$0xff] }
 0x441   :  { %3141 = vmatprep.subr.mxu1 %v2949_v25  ;;  %3072 = vmatprep.subr.mxu0 %v2943_v55  ;;  %v3385_v25 = vld [vmem:[#allocation20 + $0x560] sm:$0xff]  ;;  %v3254_v46 = vld [vmem:[#allocation20 + $0x148] sm:$0xff] }
 0x442   :  { %3142 = vmatpush2.msra.mxu1 %v2948_v33  ;;  %3073 = vmatpush2.msra.mxu0 %v2942_v57  ;;  %v3382_v33 = vld [vmem:[#allocation20 + $0x548] sm:$0xff]  ;;  %v3253_v55 = vld [vmem:[#allocation20 + $0x140] sm:$0xff] }
 0x443   :  { %3143 = vmatprep.subr.mxu1 %v2945_v35  ;;  %3074 = vmatprep.subr.mxu0 %v2939_v47  ;;  %v3381_v35 = vld [vmem:[#allocation20 + $0x540] sm:$0xff]  ;;  %v3250_v57 = vld [vmem:[#allocation20 + $0x128] sm:$0xff] }
 0x444   :  { %3144 = vmatpush2.msra.mxu1 %v2944_v36  ;;  %3075 = vmatpush2.msra.mxu0 %v2938_v37  ;;  %v3378_v36 = vld [vmem:[#allocation20 + $0x528] sm:$0xff]  ;;  %v3249_v47 = vld [vmem:[#allocation20 + $0x120] sm:$0xff] }
 0x445   :  { %3145 = vmatprep.subr.mxu1 %v2941_v0  ;;  %3076 = vmatprep.subr.mxu0 %v2935_v48  ;;  %v3377_v0 = vld [vmem:[#allocation20 + $0x520] sm:$0xff]  ;;  %v3246_v37 = vld [vmem:[#allocation20 + $0x108] sm:$0xff] }
 0x446   :  { %3146 = vmatpush2.msra.mxu1 %v2940_v38  ;;  %3077 = vmatpush2.msra.mxu0 %v2934_v52  ;;  %v3374_v38 = vld [vmem:[#allocation20 + $0x508] sm:$0xff]  ;;  %v3245_v48 = vld [vmem:[#allocation20 + $0x100] sm:$0xff] }
 0x447   :  { %3147 = vmatprep.subr.mxu1 %v2937_v50  ;;  %3078 = vmatprep.subr.mxu0 %v2931_v58  ;;  %v3373_v50 = vld [vmem:[#allocation20 + $0x500] sm:$0xff]  ;;  %v3242_v52 = vld [vmem:[#allocation20 + $0xe8] sm:$0xff] }
 0x448   :  { %3148 = vmatpush2.msra.mxu1 %v2936_v1  ;;  %3079 = vmatpush2.msra.mxu0 %v2930_v49  ;;  %v3370_v1 = vld [vmem:[#allocation20 + $0x4e8] sm:$0xff]  ;;  %v3241_v58 = vld [vmem:[#allocation20 + $0xe0] sm:$0xff] }
 0x449   :  { %3149 = vmatprep.subr.mxu1 %v2933_v59  ;;  %3511 = vmatprep.subr.mxu0 %v3274_v12  ;;  %v3369_v59 = vld [vmem:[#allocation20 + $0x4e0] sm:$0xff]  ;;  %v3238_v49 = vld [vmem:[#allocation20 + $0xc8] sm:$0xff] }
 0x44a   :  { %3150 = vmatpush2.msra.mxu1 %v2932_v29  ;;  %v3366_v29 = vld [vmem:[#allocation20 + $0x4c8] sm:$0xff]  ;;  %v3237_v12 = vld [vmem:[#allocation20 + $0xc0] sm:$0xff] }
 0x44b   :  { %3582 = vmatprep.subr.mxu1 %v3402_v60  ;;  %v3365_v60 = vld [vmem:[#allocation20 + $0x4c0] sm:$0xff]  ;;  %v3346_v30 = vld [vmem:[#allocation20 + $0x428] sm:$0xff] }
 0x44c   :  { %v3345_v3 = vld [vmem:[#allocation20 + $0x420] sm:$0xff] }
 0x4c6   :  { %v2854_v61 = vpop.xlane.xlu0 %2853 }
 0x4c7   :  { %4060 = vrsqrt.f32 %v2854_v61  ;;  %vm2857_vm14 = vcmp.eq.f32.partialorder %v2854_v61, inf  ;;  %v2860_v6 = vand.u32 2147483648, %v2854_v61  ;;  %vm2859_vm15 = vcmp.eq.f32.partialorder %v2854_v61, 0.0 }
 0x4d4   :  { %v4061_v4 = vpop.eup %4060 }
 0x4d5   :  { %v2856_v34 = vmul.f32 %v4061_v4, %v2854_v61  ;;  %v3362_v4 = vld [vmem:[#allocation20 + $0x4a8] sm:$0xff] }
 0x4d7   :  { %v2858_v7 = vsel %vm2857_vm14, %v2854_v61, %v2856_v34  ;;  %v3234_v61 = vld [vmem:[#allocation20 + $0xa8] sm:$0xff]  ;;  %v3233_v34 = vld [vmem:[#allocation20 + $0xa0] sm:$0xff] }
 0x4d8   :  { %v2861_v5 = vsel %vm2859_vm15, %v2860_v6, %v2858_v7  ;;  %v3361_v6 = vld [vmem:[#allocation20 + $0x4a0] sm:$0xff]  ;;  %v3230_v7 = vld [vmem:[#allocation20 + $0x88] sm:$0xff] }
 0x4d9   :  { %v2862_v13 = vmax.f32 %v2861_v5, 1e-12  ;;  %v3358_v5 = vld [vmem:[#allocation20 + $0x488] sm:$0xff] }
 0x4db   :  { %4062 = vrcp.f32 %v2862_v13  ;;  %v3229_v13 = vld [vmem:[#allocation20 + $0x80] sm:$0xff] }
 0x4e8   :  { %v4063_v15 = vpop.eup %4062 }
 0x4e9   :  { %v2865_v11 = vmul.f32 %v4063_v15, %v4858_v16  ;;  %v2864_v56 = vmul.f32 %v4063_v15, %v4856_v9  ;;  %v3269_v9 = vld [vmem:[#allocation20 + $0x1c0] sm:$0xff]  ;;  %v3354_v15 = vld [vmem:[#allocation20 + $0x468] sm:$0xff] }
 0x4ea   :  { %v3397_v16 = vld [vmem:[#allocation20 + $0x5c0] sm:$0xff] }
 0x4eb   :  { %3080 = vmatprep.mubr.f32.mxu0 %v2865_v11  ;;  %3151 = vmatprep.mubr.f32.mxu1 %v2865_v11  ;;  %v3225_v11 = vld [vmem:[#allocation20 + $0x60] sm:$0xff] }
 0x4ec   :  { %3081 = vmatmul.mubr.f32.vlgmr.msra.gmra.mxu0 %v2864_v56  ;;  %3152 = vmatmul.mubr.f32.vlgmr.msra.gmra.mxu1 %v2864_v56  ;;  %v3353_v56 = vld [vmem:[#allocation20 + $0x460] sm:$0xff] }
 0x4ed   :  { %3512 = vmatpush1.msra.mxu0 %v3273_v63  ;;  %3583 = vmatpush1.msra.mxu1 %v3401_v18  ;;  %v3350_v63 = vld [vmem:[#allocation20 + $0x448] sm:$0xff]  ;;  %v3221_v18 = vld [vmem:[#allocation20 + $0x40] sm:$0xff] }
 0x4ee   :  { %3513 = vmatprep.subr.mxu0 %v3270_v10  ;;  %3575 = vmatprep.mubr.f32.mxu0 %v4877_v24  ;;  %v3218_v10 = vld [vmem:[#allocation20 + $0x28] sm:$0xff] }
 0x4ef   :  { %3584 = vmatprep.subr.mxu1 %v3398_v40  ;;  %3646 = vmatprep.mubr.f32.mxu1 %v4881_v19  ;;  %v3217_v40 = vld [vmem:[#allocation20 + $0x20] sm:$0xff] }
 0x4f0   :  { %3514 = vmatpush1.msra.mxu0 %v3269_v9  ;;  %3585 = vmatpush1.msra.mxu1 %v3397_v16  ;;  %v3214_v9 = vld [vmem:[#allocation20 + $0x8] sm:$0xff] }
 0x4f1   :  { %3515 = vmatprep.subr.mxu0 %v3266_v53  ;;  %3586 = vmatprep.subr.mxu1 %v3394_v39  ;;  %v3342_v16 = vld [vmem:[#allocation20 + $0x408] sm:$0xff]  ;;  %v3213_v53 = vld [vmem:[#allocation20] sm:$0xff] }
 0x4f2   :  { %3516 = vmatpush1.msra.mxu0 %v3265_v26  ;;  %3587 = vmatpush1.msra.mxu1 %v3393_v17  ;;  %v3341_v39 = vld [vmem:[#allocation20 + $0x400] sm:$0xff]  ;;  %v3338_v26 = vld [vmem:[#allocation20 + $0x3e8] sm:$0xff] }
 0x4f3   :  { %3517 = vmatprep.subr.mxu0 %v3262_v27  ;;  %3588 = vmatprep.subr.mxu1 %v3390_v32  ;;  %v3466_v17 = vld [vmem:[#allocation20 + $0x7e8] sm:$0xff]  ;;  %v3337_v27 = vld [vmem:[#allocation20 + $0x3e0] sm:$0xff] }
 0x4f4   :  { %3518 = vmatpush1.msra.mxu0 %v3261_v21  ;;  %3589 = vmatpush1.msra.mxu1 %v3389_v2  ;;  %v3465_v32 = vld [vmem:[#allocation20 + $0x7e0] sm:$0xff]  ;;  %v3334_v21 = vld [vmem:[#allocation20 + $0x3c8] sm:$0xff] }
 0x4f5   :  { %3519 = vmatprep.subr.mxu0 %v3258_v23  ;;  %3590 = vmatprep.subr.mxu1 %v3386_v51  ;;  %v3462_v2 = vld [vmem:[#allocation20 + $0x7c8] sm:$0xff]  ;;  %v3333_v23 = vld [vmem:[#allocation20 + $0x3c0] sm:$0xff] }
 0x4f6   :  { %3520 = vmatpush1.msra.mxu0 %v3257_v42  ;;  %3591 = vmatpush1.msra.mxu1 %v3385_v25  ;;  %v3461_v51 = vld [vmem:[#allocation20 + $0x7c0] sm:$0xff]  ;;  %v3330_v42 = vld [vmem:[#allocation20 + $0x3a8] sm:$0xff] }
 0x4f7   :  { %3521 = vmatprep.subr.mxu0 %v3254_v46  ;;  %3592 = vmatprep.subr.mxu1 %v3382_v33  ;;  %v3458_v25 = vld [vmem:[#allocation20 + $0x7a8] sm:$0xff]  ;;  %v3329_v46 = vld [vmem:[#allocation20 + $0x3a0] sm:$0xff] }
 0x4f8   :  { %3522 = vmatpush1.msra.mxu0 %v3253_v55  ;;  %3593 = vmatpush1.msra.mxu1 %v3381_v35  ;;  %v3457_v33 = vld [vmem:[#allocation20 + $0x7a0] sm:$0xff]  ;;  %v3326_v55 = vld [vmem:[#allocation20 + $0x388] sm:$0xff] }
 0x4f9   :  { %3523 = vmatprep.subr.mxu0 %v3250_v57  ;;  %3594 = vmatprep.subr.mxu1 %v3378_v36  ;;  %v3454_v35 = vld [vmem:[#allocation20 + $0x788] sm:$0xff]  ;;  %v3325_v57 = vld [vmem:[#allocation20 + $0x380] sm:$0xff] }
 0x4fa   :  { %3524 = vmatpush1.msra.mxu0 %v3249_v47  ;;  %3595 = vmatpush1.msra.mxu1 %v3377_v0  ;;  %v3453_v36 = vld [vmem:[#allocation20 + $0x780] sm:$0xff]  ;;  %v3322_v47 = vld [vmem:[#allocation20 + $0x368] sm:$0xff] }
 0x4fb   :  { %3525 = vmatprep.subr.mxu0 %v3246_v37  ;;  %3596 = vmatprep.subr.mxu1 %v3374_v38  ;;  %v3450_v0 = vld [vmem:[#allocation20 + $0x768] sm:$0xff]  ;;  %v3321_v37 = vld [vmem:[#allocation20 + $0x360] sm:$0xff] }
 0x4fc   :  { %3526 = vmatpush1.msra.mxu0 %v3245_v48  ;;  %3597 = vmatpush1.msra.mxu1 %v3373_v50  ;;  %v3449_v38 = vld [vmem:[#allocation20 + $0x760] sm:$0xff]  ;;  %v3318_v48 = vld [vmem:[#allocation20 + $0x348] sm:$0xff] }
 0x4fd   :  { %3527 = vmatprep.subr.mxu0 %v3242_v52  ;;  %3598 = vmatprep.subr.mxu1 %v3370_v1  ;;  %v3446_v50 = vld [vmem:[#allocation20 + $0x748] sm:$0xff]  ;;  %v3317_v52 = vld [vmem:[#allocation20 + $0x340] sm:$0xff] }
 0x4fe   :  { %3528 = vmatpush1.msra.mxu0 %v3241_v58  ;;  %3599 = vmatpush1.msra.mxu1 %v3369_v59  ;;  %v3445_v1 = vld [vmem:[#allocation20 + $0x740] sm:$0xff]  ;;  %v3314_v58 = vld [vmem:[#allocation20 + $0x328] sm:$0xff] }
 0x4ff   :  { %3529 = vmatprep.subr.mxu0 %v3238_v49  ;;  %3600 = vmatprep.subr.mxu1 %v3366_v29  ;;  %v3442_v59 = vld [vmem:[#allocation20 + $0x728] sm:$0xff]  ;;  %v3313_v49 = vld [vmem:[#allocation20 + $0x320] sm:$0xff] }
 0x500   :  { %3530 = vmatpush1.msra.mxu0 %v3237_v12  ;;  %3601 = vmatpush1.msra.mxu1 %v3365_v60  ;;  %v3441_v29 = vld [vmem:[#allocation20 + $0x720] sm:$0xff]  ;;  %v3310_v12 = vld [vmem:[#allocation20 + $0x308] sm:$0xff] }
 0x501   :  { %3531 = vmatprep.subr.mxu0 %v3234_v61  ;;  %3602 = vmatprep.subr.mxu1 %v3362_v4  ;;  %v3438_v60 = vld [vmem:[#allocation20 + $0x708] sm:$0xff]  ;;  %v3309_v61 = vld [vmem:[#allocation20 + $0x300] sm:$0xff] }
 0x502   :  { %3532 = vmatpush1.msra.mxu0 %v3233_v34  ;;  %3603 = vmatpush1.msra.mxu1 %v3361_v6  ;;  %v3437_v4 = vld [vmem:[#allocation20 + $0x700] sm:$0xff]  ;;  %v3306_v34 = vld [vmem:[#allocation20 + $0x2e8] sm:$0xff] }
 0x503   :  { %3533 = vmatprep.subr.mxu0 %v3230_v7  ;;  %3604 = vmatprep.subr.mxu1 %v3358_v5  ;;  %v3434_v6 = vld [vmem:[#allocation20 + $0x6e8] sm:$0xff]  ;;  %v3305_v7 = vld [vmem:[#allocation20 + $0x2e0] sm:$0xff] }
 0x504   :  { %3534 = vmatpush1.msra.mxu0 %v3229_v13  ;;  %3605 = vmatpush1.msra.mxu1 %v3357_v62  ;;  %v3433_v5 = vld [vmem:[#allocation20 + $0x6e0] sm:$0xff]  ;;  %v3302_v13 = vld [vmem:[#allocation20 + $0x2c8] sm:$0xff] }
 0x505   :  { %3535 = vmatprep.subr.mxu0 %v3226_v8  ;;  %3606 = vmatprep.subr.mxu1 %v3354_v15  ;;  %v3430_v62 = vld [vmem:[#allocation20 + $0x6c8] sm:$0xff]  ;;  %v3301_v8 = vld [vmem:[#allocation20 + $0x2c0] sm:$0xff] }
 0x506   :  { %3536 = vmatpush1.msra.mxu0 %v3225_v11  ;;  %3607 = vmatpush1.msra.mxu1 %v3353_v56  ;;  %v3429_v15 = vld [vmem:[#allocation20 + $0x6c0] sm:$0xff]  ;;  %v3298_v11 = vld [vmem:[#allocation20 + $0x2a8] sm:$0xff] }
 0x507   :  { %3537 = vmatprep.subr.mxu0 %v3222_v22  ;;  %3608 = vmatprep.subr.mxu1 %v3350_v63  ;;  %v3426_v56 = vld [vmem:[#allocation20 + $0x6a8] sm:$0xff]  ;;  %v3297_v22 = vld [vmem:[#allocation20 + $0x2a0] sm:$0xff] }
 0x508   :  { %3538 = vmatpush1.msra.mxu0 %v3221_v18  ;;  %3609 = vmatpush1.msra.mxu1 %v3349_v41  ;;  %v3425_v63 = vld [vmem:[#allocation20 + $0x6a0] sm:$0xff]  ;;  %v3294_v18 = vld [vmem:[#allocation20 + $0x288] sm:$0xff] }
 0x509   :  { %3539 = vmatprep.subr.mxu0 %v3218_v10  ;;  %3610 = vmatprep.subr.mxu1 %v3346_v30  ;;  %v3422_v41 = vld [vmem:[#allocation20 + $0x688] sm:$0xff]  ;;  %v3293_v10 = vld [vmem:[#allocation20 + $0x280] sm:$0xff] }
 0x50a   :  { %3540 = vmatpush1.msra.mxu0 %v3217_v40  ;;  %3611 = vmatpush1.msra.mxu1 %v3345_v3  ;;  %v3421_v30 = vld [vmem:[#allocation20 + $0x680] sm:$0xff]  ;;  %v3290_v40 = vld [vmem:[#allocation20 + $0x268] sm:$0xff] }
 0x50b   :  { %3541 = vmatprep.subr.mxu0 %v3214_v9  ;;  %3612 = vmatprep.subr.mxu1 %v3342_v16  ;;  %v3418_v3 = vld [vmem:[#allocation20 + $0x668] sm:$0xff]  ;;  %v3289_v9 = vld [vmem:[#allocation20 + $0x260] sm:$0xff] }
 0x50c   :  { %3542 = vmatpush1.msra.mxu0 %v3213_v53  ;;  %3613 = vmatpush1.msra.mxu1 %v3341_v39  ;;  %v3417_v16 = vld [vmem:[#allocation20 + $0x660] sm:$0xff]  ;;  %v3286_v53 = vld [vmem:[#allocation20 + $0x248] sm:$0xff] }
 0x50d   :  { %3543 = vmatprep.subr.mxu0 %v3338_v26  ;;  %3614 = vmatprep.subr.mxu1 %v3466_v17  ;;  %v3414_v39 = vld [vmem:[#allocation20 + $0x648] sm:$0xff]  ;;  %v3285_v26 = vld [vmem:[#allocation20 + $0x240] sm:$0xff] }
 0x50e   :  { %3544 = vmatpush2.msra.mxu0 %v3337_v27  ;;  %3615 = vmatpush2.msra.mxu1 %v3465_v32  ;;  %v3413_v17 = vld [vmem:[#allocation20 + $0x640] sm:$0xff]  ;;  %v3282_v27 = vld [vmem:[#allocation20 + $0x228] sm:$0xff] }
 0x50f   :  { %3545 = vmatprep.subr.mxu0 %v3334_v21  ;;  %3616 = vmatprep.subr.mxu1 %v3462_v2  ;;  %v3410_v32 = vld [vmem:[#allocation20 + $0x628] sm:$0xff]  ;;  %v3281_v21 = vld [vmem:[#allocation20 + $0x220] sm:$0xff] }
 0x510   :  { %3546 = vmatpush2.msra.mxu0 %v3333_v23  ;;  %3617 = vmatpush2.msra.mxu1 %v3461_v51  ;;  %v3409_v2 = vld [vmem:[#allocation20 + $0x620] sm:$0xff]  ;;  %v3278_v23 = vld [vmem:[#allocation20 + $0x208] sm:$0xff] }
 0x511   :  { %3547 = vmatprep.subr.mxu0 %v3330_v42  ;;  %3618 = vmatprep.subr.mxu1 %v3458_v25  ;;  %v3406_v51 = vld [vmem:[#allocation20 + $0x608] sm:$0xff]  ;;  %v3277_v42 = vld [vmem:[#allocation20 + $0x200] sm:$0xff] }
 0x512   :  { %3548 = vmatpush2.msra.mxu0 %v3329_v46  ;;  %3619 = vmatpush2.msra.mxu1 %v3457_v33  ;;  %v3405_v25 = vld [vmem:[#allocation20 + $0x600] sm:$0xff]  ;;  %v3276_v46 = vld [vmem:[#allocation20 + $0x1f8] sm:$0xff] }
 0x513   :  { %3549 = vmatprep.subr.mxu0 %v3326_v55  ;;  %3620 = vmatprep.subr.mxu1 %v3454_v35  ;;  %v3404_v33 = vld [vmem:[#allocation20 + $0x5f8] sm:$0xff]  ;;  %v3275_v55 = vld [vmem:[#allocation20 + $0x1f0] sm:$0xff] }
 0x514   :  { %3550 = vmatpush2.msra.mxu0 %v3325_v57  ;;  %3621 = vmatpush2.msra.mxu1 %v3453_v36  ;;  %v3403_v35 = vld [vmem:[#allocation20 + $0x5f0] sm:$0xff]  ;;  %v3272_v57 = vld [vmem:[#allocation20 + $0x1d8] sm:$0xff] }
 0x515   :  { %3551 = vmatprep.subr.mxu0 %v3322_v47  ;;  %3622 = vmatprep.subr.mxu1 %v3450_v0  ;;  %v3400_v36 = vld [vmem:[#allocation20 + $0x5d8] sm:$0xff]  ;;  %v3271_v47 = vld [vmem:[#allocation20 + $0x1d0] sm:$0xff] }
 0x516   :  { %3552 = vmatpush2.msra.mxu0 %v3321_v37  ;;  %3623 = vmatpush2.msra.mxu1 %v3449_v38  ;;  %v3399_v0 = vld [vmem:[#allocation20 + $0x5d0] sm:$0xff]  ;;  %v3268_v37 = vld [vmem:[#allocation20 + $0x1b8] sm:$0xff] }
 0x517   :  { %3553 = vmatprep.subr.mxu0 %v3318_v48  ;;  %3624 = vmatprep.subr.mxu1 %v3446_v50  ;;  %v3396_v38 = vld [vmem:[#allocation20 + $0x5b8] sm:$0xff]  ;;  %v3267_v48 = vld [vmem:[#allocation20 + $0x1b0] sm:$0xff] }
 0x518   :  { %3554 = vmatpush2.msra.mxu0 %v3317_v52  ;;  %3625 = vmatpush2.msra.mxu1 %v3445_v1  ;;  %v3395_v50 = vld [vmem:[#allocation20 + $0x5b0] sm:$0xff]  ;;  %v3264_v52 = vld [vmem:[#allocation20 + $0x198] sm:$0xff] }
 0x519   :  { %3555 = vmatprep.subr.mxu0 %v3314_v58  ;;  %3626 = vmatprep.subr.mxu1 %v3442_v59  ;;  %v3392_v1 = vld [vmem:[#allocation20 + $0x598] sm:$0xff]  ;;  %v3263_v58 = vld [vmem:[#allocation20 + $0x190] sm:$0xff] }
 0x51a   :  { %3556 = vmatpush2.msra.mxu0 %v3313_v49  ;;  %3627 = vmatpush2.msra.mxu1 %v3441_v29  ;;  %v3391_v59 = vld [vmem:[#allocation20 + $0x590] sm:$0xff]  ;;  %v3388_v49 = vld [vmem:[#allocation20 + $0x578] sm:$0xff] }
 0x51b   :  { %3557 = vmatprep.subr.mxu0 %v3310_v12  ;;  %3628 = vmatprep.subr.mxu1 %v3438_v60  ;;  %v3387_v29 = vld [vmem:[#allocation20 + $0x570] sm:$0xff]  ;;  %v3256_v12 = vld [vmem:[#allocation20 + $0x158] sm:$0xff] }
 0x51c   :  { %3558 = vmatpush2.msra.mxu0 %v3309_v61  ;;  %3629 = vmatpush2.msra.mxu1 %v3437_v4  ;;  %v3384_v60 = vld [vmem:[#allocation20 + $0x558] sm:$0xff]  ;;  %v3255_v61 = vld [vmem:[#allocation20 + $0x150] sm:$0xff] }
 0x51d   :  { %3559 = vmatprep.subr.mxu0 %v3306_v34  ;;  %3630 = vmatprep.subr.mxu1 %v3434_v6  ;;  %v3383_v4 = vld [vmem:[#allocation20 + $0x550] sm:$0xff]  ;;  %v3252_v34 = vld [vmem:[#allocation20 + $0x138] sm:$0xff] }
 0x51e   :  { %3560 = vmatpush2.msra.mxu0 %v3305_v7  ;;  %3631 = vmatpush2.msra.mxu1 %v3433_v5  ;;  %v3380_v6 = vld [vmem:[#allocation20 + $0x538] sm:$0xff]  ;;  %v3251_v7 = vld [vmem:[#allocation20 + $0x130] sm:$0xff] }
 0x51f   :  { %3561 = vmatprep.subr.mxu0 %v3302_v13  ;;  %3632 = vmatprep.subr.mxu1 %v3430_v62  ;;  %v3379_v5 = vld [vmem:[#allocation20 + $0x530] sm:$0xff]  ;;  %v3248_v13 = vld [vmem:[#allocation20 + $0x118] sm:$0xff] }
 0x520   :  { %3562 = vmatpush2.msra.mxu0 %v3301_v8  ;;  %3633 = vmatpush2.msra.mxu1 %v3429_v15  ;;  %v3376_v62 = vld [vmem:[#allocation20 + $0x518] sm:$0xff]  ;;  %v3247_v8 = vld [vmem:[#allocation20 + $0x110] sm:$0xff] }
 0x521   :  { %3563 = vmatprep.subr.mxu0 %v3298_v11  ;;  %3634 = vmatprep.subr.mxu1 %v3426_v56  ;;  %v3375_v15 = vld [vmem:[#allocation20 + $0x510] sm:$0xff]  ;;  %v3244_v11 = vld [vmem:[#allocation20 + $0xf8] sm:$0xff] }
 0x522   :  { %3564 = vmatpush2.msra.mxu0 %v3297_v22  ;;  %3635 = vmatpush2.msra.mxu1 %v3425_v63  ;;  %v3372_v56 = vld [vmem:[#allocation20 + $0x4f8] sm:$0xff]  ;;  %v3243_v22 = vld [vmem:[#allocation20 + $0xf0] sm:$0xff] }
 0x523   :  { %3565 = vmatprep.subr.mxu0 %v3294_v18  ;;  %3636 = vmatprep.subr.mxu1 %v3422_v41  ;;  %v3371_v63 = vld [vmem:[#allocation20 + $0x4f0] sm:$0xff]  ;;  %v3240_v18 = vld [vmem:[#allocation20 + $0xd8] sm:$0xff] }
 0x524   :  { %3566 = vmatpush2.msra.mxu0 %v3293_v10  ;;  %3637 = vmatpush2.msra.mxu1 %v3421_v30  ;;  %v3368_v41 = vld [vmem:[#allocation20 + $0x4d8] sm:$0xff]  ;;  %v3239_v10 = vld [vmem:[#allocation20 + $0xd0] sm:$0xff] }
 0x525   :  { %3567 = vmatprep.subr.mxu0 %v3290_v40  ;;  %3638 = vmatprep.subr.mxu1 %v3418_v3  ;;  %v3367_v30 = vld [vmem:[#allocation20 + $0x4d0] sm:$0xff]  ;;  %v3236_v40 = vld [vmem:[#allocation20 + $0xb8] sm:$0xff] }
 0x526   :  { %3568 = vmatpush2.msra.mxu0 %v3289_v9  ;;  %3639 = vmatpush2.msra.mxu1 %v3417_v16  ;;  %v3364_v3 = vld [vmem:[#allocation20 + $0x4b8] sm:$0xff]  ;;  %v3235_v9 = vld [vmem:[#allocation20 + $0xb0] sm:$0xff] }
 0x527   :  { %3569 = vmatprep.subr.mxu0 %v3286_v53  ;;  %3640 = vmatprep.subr.mxu1 %v3414_v39  ;;  %v3363_v16 = vld [vmem:[#allocation20 + $0x4b0] sm:$0xff]  ;;  %v3232_v53 = vld [vmem:[#allocation20 + $0x98] sm:$0xff] }
 0x528   :  { %3570 = vmatpush2.msra.mxu0 %v3285_v26  ;;  %3641 = vmatpush2.msra.mxu1 %v3413_v17  ;;  %v3360_v39 = vld [vmem:[#allocation20 + $0x498] sm:$0xff]  ;;  %v3231_v26 = vld [vmem:[#allocation20 + $0x90] sm:$0xff] }
 0x529   :  { %3571 = vmatprep.subr.mxu0 %v3282_v27  ;;  %3642 = vmatprep.subr.mxu1 %v3410_v32  ;;  %v3359_v17 = vld [vmem:[#allocation20 + $0x490] sm:$0xff]  ;;  %v3228_v27 = vld [vmem:[#allocation20 + $0x78] sm:$0xff] }
 0x52a   :  { %3572 = vmatpush2.msra.mxu0 %v3281_v21  ;;  %3643 = vmatpush2.msra.mxu1 %v3409_v2  ;;  %v3356_v32 = vld [vmem:[#allocation20 + $0x478] sm:$0xff]  ;;  %v3227_v21 = vld [vmem:[#allocation20 + $0x70] sm:$0xff] }
 0x52b   :  { %3573 = vmatprep.subr.mxu0 %v3278_v23  ;;  %3644 = vmatprep.subr.mxu1 %v3406_v51  ;;  %v3355_v2 = vld [vmem:[#allocation20 + $0x470] sm:$0xff]  ;;  %v3224_v23 = vld [vmem:[#allocation20 + $0x58] sm:$0xff] }
 0x52c   :  { %3574 = vmatpush2.msra.mxu0 %v3277_v42  ;;  %3645 = vmatpush2.msra.mxu1 %v3405_v25  ;;  %v3352_v51 = vld [vmem:[#allocation20 + $0x458] sm:$0xff]  ;;  %v3223_v42 = vld [vmem:[#allocation20 + $0x50] sm:$0xff] }
 0x52d   :  { %3576 = vmatmul.mubr.f32.vlgmr.msra.gmra.mxu0 %v4834_v20  ;;  %3647 = vmatmul.mubr.f32.vlgmr.msra.gmra.mxu1 %v4838_v28  ;;  %v3351_v25 = vld [vmem:[#allocation20 + $0x450] sm:$0xff] }
 0x52e   :  { %3653 = vmatprep.subr.mxu0 %v3276_v46  ;;  %3724 = vmatprep.subr.mxu1 %v3404_v33  ;;  %v3220_v46 = vld [vmem:[#allocation20 + $0x38] sm:$0xff] }
 0x52f   :  { %3654 = vmatpush1.msra.mxu0 %v3275_v55  ;;  %3717 = vmatprep.mubr.f32.mxu0 %v4877_v24  ;;  %v3260_v24 = vld [vmem:[#allocation20 + $0x178] sm:$0xff]  ;;  %v3219_v55 = vld [vmem:[#allocation20 + $0x30] sm:$0xff] }
 0x530   :  { %3725 = vmatpush1.msra.mxu1 %v3403_v35  ;;  %3788 = vmatprep.mubr.f32.mxu1 %v4881_v19  ;;  %v3259_v19 = vld [vmem:[#allocation20 + $0x170] sm:$0xff]  ;;  %v3348_v33 = vld [vmem:[#allocation20 + $0x438] sm:$0xff] }
 0x531   :  { %3655 = vmatprep.subr.mxu0 %v3272_v57  ;;  %3726 = vmatprep.subr.mxu1 %v3400_v36  ;;  %v3347_v35 = vld [vmem:[#allocation20 + $0x430] sm:$0xff]  ;;  %v3216_v57 = vld [vmem:[#allocation20 + $0x18] sm:$0xff] }
 0x532   :  { %3656 = vmatpush1.msra.mxu0 %v3271_v47  ;;  %3727 = vmatpush1.msra.mxu1 %v3399_v0  ;;  %v3344_v36 = vld [vmem:[#allocation20 + $0x418] sm:$0xff]  ;;  %v3215_v47 = vld [vmem:[#allocation20 + $0x10] sm:$0xff] }
 0x533   :  { %3657 = vmatprep.subr.mxu0 %v3268_v37  ;;  %3728 = vmatprep.subr.mxu1 %v3396_v38  ;;  %v3343_v0 = vld [vmem:[#allocation20 + $0x410] sm:$0xff]  ;;  %v3340_v37 = vld [vmem:[#allocation20 + $0x3f8] sm:$0xff] }
 0x534   :  { %3658 = vmatpush1.msra.mxu0 %v3267_v48  ;;  %3729 = vmatpush1.msra.mxu1 %v3395_v50  ;;  %v3468_v38 = vld [vmem:[#allocation20 + $0x7f8] sm:$0xff]  ;;  %v3339_v48 = vld [vmem:[#allocation20 + $0x3f0] sm:$0xff] }
 0x535   :  { %3659 = vmatprep.subr.mxu0 %v3264_v52  ;;  %3730 = vmatprep.subr.mxu1 %v3392_v1  ;;  %v3467_v50 = vld [vmem:[#allocation20 + $0x7f0] sm:$0xff]  ;;  %v3336_v52 = vld [vmem:[#allocation20 + $0x3d8] sm:$0xff] }
 0x536   :  { %3660 = vmatpush1.msra.mxu0 %v3263_v58  ;;  %3731 = vmatpush1.msra.mxu1 %v3391_v59  ;;  %v3464_v1 = vld [vmem:[#allocation20 + $0x7d8] sm:$0xff]  ;;  %v3335_v58 = vld [vmem:[#allocation20 + $0x3d0] sm:$0xff] }
 0x537   :  { %3661 = vmatprep.subr.mxu0 %v3260_v24  ;;  %3732 = vmatprep.subr.mxu1 %v3388_v49  ;;  %v3463_v59 = vld [vmem:[#allocation20 + $0x7d0] sm:$0xff]  ;;  %v3332_v24 = vld [vmem:[#allocation20 + $0x3b8] sm:$0xff] }
 0x538   :  { %3662 = vmatpush1.msra.mxu0 %v3259_v19  ;;  %3733 = vmatpush1.msra.mxu1 %v3387_v29  ;;  %v3460_v49 = vld [vmem:[#allocation20 + $0x7b8] sm:$0xff]  ;;  %v3331_v19 = vld [vmem:[#allocation20 + $0x3b0] sm:$0xff] }
 0x539   :  { %3663 = vmatprep.subr.mxu0 %v3256_v12  ;;  %3734 = vmatprep.subr.mxu1 %v3384_v60  ;;  %v3459_v29 = vld [vmem:[#allocation20 + $0x7b0] sm:$0xff]  ;;  %v3328_v12 = vld [vmem:[#allocation20 + $0x398] sm:$0xff] }
 0x53a   :  { %3664 = vmatpush1.msra.mxu0 %v3255_v61  ;;  %3735 = vmatpush1.msra.mxu1 %v3383_v4  ;;  %v3456_v60 = vld [vmem:[#allocation20 + $0x798] sm:$0xff]  ;;  %v3327_v61 = vld [vmem:[#allocation20 + $0x390] sm:$0xff] }
 0x53b   :  { %3665 = vmatprep.subr.mxu0 %v3252_v34  ;;  %3736 = vmatprep.subr.mxu1 %v3380_v6  ;;  %v3455_v4 = vld [vmem:[#allocation20 + $0x790] sm:$0xff]  ;;  %v3324_v34 = vld [vmem:[#allocation20 + $0x378] sm:$0xff] }
 0x53c   :  { %3666 = vmatpush1.msra.mxu0 %v3251_v7  ;;  %3737 = vmatpush1.msra.mxu1 %v3379_v5  ;;  %v3452_v6 = vld [vmem:[#allocation20 + $0x778] sm:$0xff]  ;;  %v3323_v7 = vld [vmem:[#allocation20 + $0x370] sm:$0xff] }
 0x53d   :  { %3667 = vmatprep.subr.mxu0 %v3248_v13  ;;  %3738 = vmatprep.subr.mxu1 %v3376_v62  ;;  %v3451_v5 = vld [vmem:[#allocation20 + $0x770] sm:$0xff]  ;;  %v3320_v13 = vld [vmem:[#allocation20 + $0x358] sm:$0xff] }
 0x53e   :  { %3668 = vmatpush1.msra.mxu0 %v3247_v8  ;;  %3739 = vmatpush1.msra.mxu1 %v3375_v15  ;;  %v3448_v62 = vld [vmem:[#allocation20 + $0x758] sm:$0xff]  ;;  %v3319_v8 = vld [vmem:[#allocation20 + $0x350] sm:$0xff] }
 0x53f   :  { %3669 = vmatprep.subr.mxu0 %v3244_v11  ;;  %3740 = vmatprep.subr.mxu1 %v3372_v56  ;;  %v3447_v15 = vld [vmem:[#allocation20 + $0x750] sm:$0xff]  ;;  %v3316_v11 = vld [vmem:[#allocation20 + $0x338] sm:$0xff] }
 0x540   :  { %3670 = vmatpush1.msra.mxu0 %v3243_v22  ;;  %3741 = vmatpush1.msra.mxu1 %v3371_v63  ;;  %v3444_v56 = vld [vmem:[#allocation20 + $0x738] sm:$0xff]  ;;  %v3315_v22 = vld [vmem:[#allocation20 + $0x330] sm:$0xff] }
 0x541   :  { %3671 = vmatprep.subr.mxu0 %v3240_v18  ;;  %3742 = vmatprep.subr.mxu1 %v3368_v41  ;;  %v3443_v63 = vld [vmem:[#allocation20 + $0x730] sm:$0xff]  ;;  %v3312_v18 = vld [vmem:[#allocation20 + $0x318] sm:$0xff] }
 0x542   :  { %3672 = vmatpush1.msra.mxu0 %v3239_v10  ;;  %3743 = vmatpush1.msra.mxu1 %v3367_v30  ;;  %v3440_v41 = vld [vmem:[#allocation20 + $0x718] sm:$0xff]  ;;  %v3311_v10 = vld [vmem:[#allocation20 + $0x310] sm:$0xff] }
 0x543   :  { %3673 = vmatprep.subr.mxu0 %v3236_v40  ;;  %3744 = vmatprep.subr.mxu1 %v3364_v3  ;;  %v3439_v30 = vld [vmem:[#allocation20 + $0x710] sm:$0xff]  ;;  %v3308_v40 = vld [vmem:[#allocation20 + $0x2f8] sm:$0xff] }
 0x544   :  { %3674 = vmatpush1.msra.mxu0 %v3235_v9  ;;  %3745 = vmatpush1.msra.mxu1 %v3363_v16  ;;  %v3436_v3 = vld [vmem:[#allocation20 + $0x6f8] sm:$0xff]  ;;  %v3307_v9 = vld [vmem:[#allocation20 + $0x2f0] sm:$0xff] }
 0x545   :  { %3675 = vmatprep.subr.mxu0 %v3232_v53  ;;  %3746 = vmatprep.subr.mxu1 %v3360_v39  ;;  %v3435_v16 = vld [vmem:[#allocation20 + $0x6f0] sm:$0xff]  ;;  %v3304_v53 = vld [vmem:[#allocation20 + $0x2d8] sm:$0xff] }
 0x546   :  { %3676 = vmatpush1.msra.mxu0 %v3231_v26  ;;  %3747 = vmatpush1.msra.mxu1 %v3359_v17  ;;  %v3432_v39 = vld [vmem:[#allocation20 + $0x6d8] sm:$0xff]  ;;  %v3303_v26 = vld [vmem:[#allocation20 + $0x2d0] sm:$0xff] }
 0x547   :  { %3677 = vmatprep.subr.mxu0 %v3228_v27  ;;  %3748 = vmatprep.subr.mxu1 %v3356_v32  ;;  %v3431_v17 = vld [vmem:[#allocation20 + $0x6d0] sm:$0xff]  ;;  %v3300_v27 = vld [vmem:[#allocation20 + $0x2b8] sm:$0xff] }
 0x548   :  { %3678 = vmatpush1.msra.mxu0 %v3227_v21  ;;  %3749 = vmatpush1.msra.mxu1 %v3355_v2  ;;  %v3428_v32 = vld [vmem:[#allocation20 + $0x6b8] sm:$0xff]  ;;  %v3299_v21 = vld [vmem:[#allocation20 + $0x2b0] sm:$0xff] }
 0x549   :  { %3679 = vmatprep.subr.mxu0 %v3224_v23  ;;  %3750 = vmatprep.subr.mxu1 %v3352_v51  ;;  %v3427_v2 = vld [vmem:[#allocation20 + $0x6b0] sm:$0xff]  ;;  %v3296_v23 = vld [vmem:[#allocation20 + $0x298] sm:$0xff] }
 0x54a   :  { %3680 = vmatpush1.msra.mxu0 %v3223_v42  ;;  %3751 = vmatpush1.msra.mxu1 %v3351_v25  ;;  %v3424_v51 = vld [vmem:[#allocation20 + $0x698] sm:$0xff]  ;;  %v3295_v42 = vld [vmem:[#allocation20 + $0x290] sm:$0xff] }
 0x54b   :  { %3681 = vmatprep.subr.mxu0 %v3220_v46  ;;  %3752 = vmatprep.subr.mxu1 %v3348_v33  ;;  %v3423_v25 = vld [vmem:[#allocation20 + $0x690] sm:$0xff]  ;;  %v3292_v46 = vld [vmem:[#allocation20 + $0x278] sm:$0xff] }
 0x54c   :  { %3682 = vmatpush1.msra.mxu0 %v3219_v55  ;;  %3753 = vmatpush1.msra.mxu1 %v3347_v35  ;;  %v3420_v33 = vld [vmem:[#allocation20 + $0x678] sm:$0xff]  ;;  %v3291_v55 = vld [vmem:[#allocation20 + $0x270] sm:$0xff] }
 0x54d   :  { %3683 = vmatprep.subr.mxu0 %v3216_v57  ;;  %3754 = vmatprep.subr.mxu1 %v3344_v36  ;;  %v3419_v35 = vld [vmem:[#allocation20 + $0x670] sm:$0xff]  ;;  %v3288_v57 = vld [vmem:[#allocation20 + $0x258] sm:$0xff] }
 0x54e   :  { %3684 = vmatpush1.msra.mxu0 %v3215_v47  ;;  %3755 = vmatpush1.msra.mxu1 %v3343_v0  ;;  %v3416_v36 = vld [vmem:[#allocation20 + $0x658] sm:$0xff]  ;;  %v3287_v47 = vld [vmem:[#allocation20 + $0x250] sm:$0xff] }
 0x54f   :  { %3685 = vmatprep.subr.mxu0 %v3340_v37  ;;  %3756 = vmatprep.subr.mxu1 %v3468_v38  ;;  %v3415_v0 = vld [vmem:[#allocation20 + $0x650] sm:$0xff]  ;;  %v3284_v37 = vld [vmem:[#allocation20 + $0x238] sm:$0xff] }
 0x550   :  { %3686 = vmatpush2.msra.mxu0 %v3339_v48  ;;  %3757 = vmatpush2.msra.mxu1 %v3467_v50  ;;  %v3412_v38 = vld [vmem:[#allocation20 + $0x638] sm:$0xff]  ;;  %v3283_v48 = vld [vmem:[#allocation20 + $0x230] sm:$0xff] }
 0x551   :  { %3687 = vmatprep.subr.mxu0 %v3336_v52  ;;  %3758 = vmatprep.subr.mxu1 %v3464_v1  ;;  %v3411_v50 = vld [vmem:[#allocation20 + $0x630] sm:$0xff]  ;;  %v3280_v52 = vld [vmem:[#allocation20 + $0x218] sm:$0xff] }
 0x552   :  { %3688 = vmatpush2.msra.mxu0 %v3335_v58  ;;  %3759 = vmatpush2.msra.mxu1 %v3463_v59  ;;  %v3408_v1 = vld [vmem:[#allocation20 + $0x618] sm:$0xff]  ;;  %v3279_v58 = vld [vmem:[#allocation20 + $0x210] sm:$0xff] }
 0x553   :  { %3689 = vmatprep.subr.mxu0 %v3332_v24  ;;  %3760 = vmatprep.subr.mxu1 %v3460_v49  ;;  %v3407_v59 = vld [vmem:[#allocation20 + $0x610] sm:$0xff] }
 0x554   :  { %3690 = vmatpush2.msra.mxu0 %v3331_v19  ;;  %3761 = vmatpush2.msra.mxu1 %v3459_v29 }
 0x555   :  { %3691 = vmatprep.subr.mxu0 %v3328_v12  ;;  %3762 = vmatprep.subr.mxu1 %v3456_v60  ;;  %v3469_v12 = vld [vmem:[%s4925_s16] sm:$0xf] }
 0x556   :  { %3692 = vmatpush2.msra.mxu0 %v3327_v61  ;;  %3763 = vmatpush2.msra.mxu1 %v3455_v4  ;;  %v3478_v60 = vrot.slane %v3469_v12, %v4575_v44 }
 0x557   :  { %3693 = vmatprep.subr.mxu0 %v3324_v34  ;;  %3764 = vmatprep.subr.mxu1 %v3452_v6  ;;  %v3474_v34 = vrot.slane %v3469_v12, %v4572_v43 }
 0x558   :  { %3694 = vmatpush2.msra.mxu0 %v3323_v7  ;;  %3765 = vmatpush2.msra.mxu1 %v3451_v5 }
 0x559   :  { %3695 = vmatprep.subr.mxu0 %v3320_v13  ;;  %3766 = vmatprep.subr.mxu1 %v3448_v62  ;;  %v3482_v13 = vrot.slane %v3469_v12, %v4578_v45 }
 0x55a   :  { %3696 = vmatpush2.msra.mxu0 %v3319_v8  ;;  %3767 = vmatpush2.msra.mxu1 %v3447_v15  ;;  %v4339_v8 = vmov 1966171168  }
 0x55b   :  { %3697 = vmatprep.subr.mxu0 %v3316_v11  ;;  %3768 = vmatprep.subr.mxu1 %v3444_v56  ;;  %v3806_v15 = vunpack.c.l.s4 %v4339_v8 }
 0x55c   :  { %3698 = vmatpush2.msra.mxu0 %v3315_v22  ;;  %3769 = vmatpush2.msra.mxu1 %v3443_v63  ;;  %v3486_v22 = vrot.slane %v3469_v12, %v4590_v54 }
 0x55d   :  { %3699 = vmatprep.subr.mxu0 %v3312_v18  ;;  %3770 = vmatprep.subr.mxu1 %v3440_v41 }
 0x55e   :  { %3700 = vmatpush2.msra.mxu0 %v3311_v10  ;;  %3771 = vmatpush2.msra.mxu1 %v3439_v30 }
 0x55f   :  { %3701 = vmatprep.subr.mxu0 %v3308_v40  ;;  %3772 = vmatprep.subr.mxu1 %v3436_v3  ;;  %v3807_v3 = vunpack.c.0.s8 %v3806_v15 }
 0x560   :  { %3702 = vmatpush2.msra.mxu0 %v3307_v9  ;;  %3773 = vmatpush2.msra.mxu1 %v3435_v16 }
 0x561   :  { %3703 = vmatprep.subr.mxu0 %v3304_v53  ;;  %3774 = vmatprep.subr.mxu1 %v3432_v39 }
 0x562   :  { %3704 = vmatpush2.msra.mxu0 %v3303_v26  ;;  %3775 = vmatpush2.msra.mxu1 %v3431_v17 }
 0x563   :  { %3705 = vmatprep.subr.mxu0 %v3300_v27  ;;  %3776 = vmatprep.subr.mxu1 %v3428_v32 }
 0x564   :  { %3706 = vmatpush2.msra.mxu0 %v3299_v21  ;;  %3777 = vmatpush2.msra.mxu1 %v3427_v2 }
 0x565   :  { %3707 = vmatprep.subr.mxu0 %v3296_v23  ;;  %3778 = vmatprep.subr.mxu1 %v3424_v51 }
 0x566   :  { %3708 = vmatpush2.msra.mxu0 %v3295_v42  ;;  %3779 = vmatpush2.msra.mxu1 %v3423_v25 }
 0x567   :  { %3709 = vmatprep.subr.mxu0 %v3292_v46  ;;  %3780 = vmatprep.subr.mxu1 %v3420_v33 }
 0x568   :  { %3710 = vmatpush2.msra.mxu0 %v3291_v55  ;;  %3781 = vmatpush2.msra.mxu1 %v3419_v35 }
 0x569   :  { %3711 = vmatprep.subr.mxu0 %v3288_v57  ;;  %3782 = vmatprep.subr.mxu1 %v3416_v36 }
 0x56a   :  { %3712 = vmatpush2.msra.mxu0 %v3287_v47  ;;  %3783 = vmatpush2.msra.mxu1 %v3415_v0 }
 0x56b   :  { %3713 = vmatprep.subr.mxu0 %v3284_v37  ;;  %3784 = vmatprep.subr.mxu1 %v3412_v38 }
 0x56c   :  { %3714 = vmatpush2.msra.mxu0 %v3283_v48  ;;  %3785 = vmatpush2.msra.mxu1 %v3411_v50 }
 0x56d   :  { %3715 = vmatprep.subr.mxu0 %v3280_v52  ;;  %3786 = vmatprep.subr.mxu1 %v3408_v1 }
 0x56e   :  { %3716 = vmatpush2.msra.mxu0 %v3279_v58  ;;  %3787 = vmatpush2.msra.mxu1 %v3407_v59 }
 0x56f   :  { %3718 = vmatmul.mubr.f32.vlgmr.msra.gmra.mxu0 %v4834_v20  ;;  %3789 = vmatmul.mubr.f32.vlgmr.msra.gmra.mxu1 %v4838_v28  ;;  %v2994_v20 = vld [vmem:[%s4923_s14] sm:$0xf]  ;;  %s4340_s14 = smov [#allocation21]  }
 0x570   :  { %v3003_v28 = vrot.slane %v2994_v20, %v4575_v44  ;;  %v2999_v11 = vrot.slane %v2994_v20, %v4572_v43  ;;  %v3007_v63 = vrot.slane %v2994_v20, %v4578_v45  ;;  %v3011_v30 = vrot.slane %v2994_v20, %v4590_v54  ;;  %s3848_s16 = sshll.u32 %s4340_s14, 4  ;;  %s3849_s16 = int_to_ptr.vmem [resolvable:$true] %s3848_s16 }
 0x571   :  { %v3810_v45 = vsub.s32 %v3807_v3, %v4566_v31  ;;  %s4284_s27 = scalar_lea.vmem %s3849_s16, 128  ;;  %p4289_p0 = scmp.lt.s32.totalorder %s3849_s16, %s3849_s16 }
 0x572   :  { %p4285_p13 = scmp.ne.s32.totalorder %s3849_s16, %s4284_s27  ;;  %p4290_p1 = scmp.lt.s32.totalorder %s4284_s27, %s4284_s27 }
 0x574   :  { %p4291_p2 = por %p4290_p1, %p4289_p0 }
 0x576   :  { %p4292_p3 = pnand %p4291_p2, %p4285_p13 }
 0x5ac   :  { %v3082_v24 = vpop.f32.mrf.mxu0  ;;  %v3153_v19 = vpop.f32.mrf.mxu1 }
 0x5ad   :  { %v3083_v16 = vadd.f32 %v3082_v24, %v2999_v11  ;;  %v3154_v43 = vadd.f32 %v3153_v19, %v3007_v63 }
 0x5ae   :  { %v3084_v49 = vpop.f32.mrf.mxu0  ;;  %v3155_v61 = vpop.f32.mrf.mxu1 }
 0x5af   :  { %v3085_v10 = vadd.f32 %v3084_v49, %v3003_v28  ;;  %v3156_v27 = vadd.f32 %v3155_v61, %v3011_v30 }
 0x5ed   :  { %v3577_v29 = vpop.f32.mrf.mxu0  ;;  %v3648_v6 = vpop.f32.mrf.mxu1 }
 0x5ee   :  { %v3578_v5 = vadd.f32 %v3577_v29, %v3474_v34 }
 0x5ef   :  { %v3579_v4 = vpop.f32.mrf.mxu0  ;;  %v3650_v62 = vpop.f32.mrf.mxu1 }
 0x5f0   :  { %v3580_v7 = vadd.f32 %v3579_v4, %v3478_v60  ;;  %v3649_v40 = vadd.f32 %v3648_v6, %v3578_v5 }
 0x5f2   :  { %v3651_v56 = vadd.f32 %v3650_v62, %v3580_v7  ;;  %v3795_v32 = vadd.f32 %v3649_v40, %v3083_v16 }
 0x5f4   :  { %v3796_v53 = vadd.f32 %v3651_v56, %v3085_v10 }
 0x5f6   :  { %v3803_v2 = vcombine.low %v3795_v32, %v3796_v53 }
 0x5f8   :  { %v3811_v54 = vrot.slane %v3803_v2, %v3810_v45 }
 0x62f   :  { %v3719_v18 = vpop.f32.mrf.mxu0  ;;  %v3790_v41 = vpop.f32.mrf.mxu1 }
 0x630   :  { %v3720_v44 = vadd.f32 %v3719_v18, %v3482_v13 }
 0x631   :  { %v3721_v9 = vpop.f32.mrf.mxu0  ;;  %v3792_v17 = vpop.f32.mrf.mxu1 }
 0x632   :  { %v3791_v39 = vadd.f32 %v3790_v41, %v3720_v44  ;;  %v3722_v26 = vadd.f32 %v3721_v9, %v3486_v22 }
 0x634   :  { %v3793_v21 = vadd.f32 %v3792_v17, %v3722_v26  ;;  %v3797_v23 = vadd.f32 %v3791_v39, %v3154_v43 }
 0x636   :  { %v3798_v51 = vadd.f32 %v3793_v21, %v3156_v27 }
 0x638   :  { %v3804_v42 = vcombine.low %v3797_v23, %v3798_v51 }
 0x63a   :  { %v3818_v25 = vrot.slane %v3804_v42, %v3810_v45 }
 0x63c   :  { %v3819_v46 = vcombine.low %v3811_v54, %v3818_v25  ;;  %v3820_v33 = vcombine.high %v3811_v54, %v3818_v25 }
 0x63e   :  { %v3827_v55 = vrot.slane %v3819_v46, %v3810_v45  ;;  %v3834_v35 = vrot.slane %v3820_v33, %v3810_v45 }
 0x640   :  { %3841 = vst.msk [vmem:[#allocation21] sm:$0xf] %vm3839_vm0, %v3827_v55  ;;  %3842 = vst.msk [vmem:[#allocation21 + $0x4] sm:$0xf] %vm3839_vm0, %v3834_v35 }
 0x641   :  { %4295 = shalt.err (!%p4292_p3)
}
 0x642   :  { %s4341_s28 = smov 64   ;;  %s4342_s2 = smov 4  }
 0x643   :  { %3854 = dma.vmem_to_hbm [thread:$0]  %s3849_s16, 128, %s4926_s17, [#allocation5], %s4341_s28, %s4341_s28, %s4342_s2  }
 0x644   :  { %4316 = dma.done.wait [#allocation5], 128  }
 0x645   :  { %4317 = vsyncadd [#allocation5], 4294967168 }
 0x646   :  { %3858 = vsyncpa [#allocation4], 1 }
 0x647   :  { %3859 = vsyncpa [#allocation7], 1 }
 0x648   :  { %3860 = vsyncpa [#allocation10], 1 }
 0x649   :  { %3861 = vsyncpa [#allocation13], 1 }
 0x64a   :  { %3862 = vsyncpa [#allocation16], 1 }
 0x64b   :  { %3863 = vsyncpa [#allocation19], 1 }
 0x64c   :  { %3864 = vsyncpa [#allocation5], 1 }

</bundles_post_ra>
